<compile_context>
chip_gen: v5e
topology: v5e:2x2
jax: 0.10.0
libtpu: 0.0.40
codegen_flags: <defaults>
</compile_context>

<pallas_src>
import functools

import jax
import jax.numpy as jnp
from jax import lax
from jax.experimental import pallas as pl
from jax.experimental.pallas import tpu as pltpu

EPS = 1e-5                      # BatchNorm2d eps
KSIZE = 3                       # depthwise kernel size
MM_TILE = 1024                  # rows per matmul / normalize tile
VMEM_LIMIT = 32 * 1024 * 1024   # explicit scoped-VMEM budget (>= every default)


def _round_up(x, m):
    return (x + m - 1) // m * m


# ---------------------------------------------------------------------------
# Kernel 1: 1x1 conv == tiled MXU matmul (bf16 in, f32 accumulate, bf16 out)
# with the BatchNorm sum / sum-of-squares partials fused into the epilogue.
# The padded-row mask is only emitted when needed and only on the last tile.
# ---------------------------------------------------------------------------
def _mm_bias_stats_kernel(x_ref, w_ref, b_ref, y_ref, stats_ref,
                          *, tm, m_valid, need_mask):
    y = jnp.dot(x_ref[...], w_ref[...], preferred_element_type=jnp.float32)
    y = y + b_ref[...]                       # folded-BN bias row (zeros if none)
    y_ref[...] = y.astype(y_ref.dtype)       # bf16 store (halves HBM writeback)

    def write_stats(yv):
        s = jnp.sum(yv, axis=0, keepdims=True)
        ss = jnp.sum(yv * yv, axis=0, keepdims=True)
        stats_ref[0] = jnp.concatenate([s, ss], axis=0)     # (2, Cout)

    if need_mask:
        i = pl.program_id(0)
        last = pl.num_programs(0) - 1

        @pl.when(i == last)      # only the last tile contains M-padding rows
        def _():
            row = i * tm + lax.broadcasted_iota(jnp.int32, (tm, 1), 0)
            write_stats(y * (row < m_valid).astype(jnp.float32))

        @pl.when(i != last)
        def _():
            write_stats(y)
    else:
        write_stats(y)


def _pw_conv_stats(x_mc, w_mat, bias_row):
    """x_mc (M, Cin), w_mat (Cin, Cout) f32, bias_row (1, Cout) f32.
    Returns y (M_pad, Cout) bf16 and stats (2, Cout) f32 = [sum, sumsq]."""
    m, cin = x_mc.shape
    cout = w_mat.shape[1]
    tm = min(MM_TILE, _round_up(m, 8))
    m_pad = _round_up(m, tm)
    x_p = jnp.pad(x_mc, ((0, m_pad - m), (0, 0))).astype(jnp.bfloat16)
    w_bf = w_mat.astype(jnp.bfloat16)
    grid = (m_pad // tm,)
    kernel = functools.partial(_mm_bias_stats_kernel, tm=tm, m_valid=m,
                               need_mask=(m_pad != m))
    # TODO(synk): on v7x, pipeline_mode=pl.Buffered(3) on the x in_spec would
    # deepen buffering for short grids; omitted to keep compatibility broad.
    y, psum = pl.pallas_call(
        kernel,
        out_shape=(jax.ShapeDtypeStruct((m_pad, cout), jnp.bfloat16),
                   jax.ShapeDtypeStruct((grid[0], 2, cout), jnp.float32)),
        grid_spec=pltpu.PrefetchScalarGridSpec(
            num_scalar_prefetch=0,
            grid=grid,
            in_specs=[
                pl.BlockSpec((tm, cin), lambda i: (i, 0)),
                pl.BlockSpec((cin, cout), lambda i: (0, 0)),
                pl.BlockSpec((1, cout), lambda i: (0, 0)),
            ],
            out_specs=[
                pl.BlockSpec((tm, cout), lambda i: (i, 0)),
                pl.BlockSpec((1, 2, cout), lambda i: (i, 0, 0)),
            ],
        ),
        compiler_params=pltpu.CompilerParams(
            dimension_semantics=("parallel",), vmem_limit_bytes=VMEM_LIMIT),
    )(x_p, w_bf, bias_row.astype(jnp.float32))
    return y, jnp.sum(psum, axis=0)


# ---------------------------------------------------------------------------
# Kernel 2: normalize + ReLU for the FINAL 1x1 conv of each branch (the mid BN
# is fused into the dw kernel).  Rows are folded into lanes so stores are
# >=128 lanes wide when the channel count is small.  Input bf16, output f32.
# ---------------------------------------------------------------------------
def _norm_relu_kernel(y_ref, s_ref, b_ref, o_ref):
    o_ref[...] = jnp.maximum(y_ref[...] * s_ref[...] + b_ref[...], 0.0)


def _norm_relu(y_pad, scale, bias):
    m_pad, c = y_pad.shape
    fold = 128 // c if (c < 128 and 128 % c == 0) else 1
    while fold > 1 and (m_pad % fold or (m_pad // fold) % 8):
        fold //= 2
    rows = m_pad // fold
    y_f = y_pad.reshape(rows, c * fold)
    s_f = jnp.tile(scale, (1, fold))
    b_f = jnp.tile(bias, (1, fold))
    tm = min(MM_TILE, rows)
    while rows % tm:
        tm -= 8
    # TODO(synk): the channel_shuffle interleave / NHWC->NCHW transpose could be
    # folded into this kernel's out_spec to save 1-2 extra output round trips.
    out = pl.pallas_call(
        _norm_relu_kernel,
        out_shape=jax.ShapeDtypeStruct((rows, c * fold), jnp.float32),
        grid_spec=pltpu.PrefetchScalarGridSpec(
            num_scalar_prefetch=0,
            grid=(rows // tm,),
            in_specs=[
                pl.BlockSpec((tm, c * fold), lambda i: (i, 0)),
                pl.BlockSpec((1, c * fold), lambda i: (0, 0)),
                pl.BlockSpec((1, c * fold), lambda i: (0, 0)),
            ],
            out_specs=pl.BlockSpec((tm, c * fold), lambda i: (i, 0)),
        ),
        compiler_params=pltpu.CompilerParams(
            dimension_semantics=("parallel",), vmem_limit_bytes=VMEM_LIMIT),
    )(y_f, s_f, b_f)
    return out.reshape(m_pad, c)


# ---------------------------------------------------------------------------
# Kernel 3: depthwise 3x3 conv (stride 1 or 2) over lane-dense stride-parity
# planes (Ph, Pw*C), with the *preceding* BN + ReLU optionally fused into the
# plane prologue and BN partial stats fused into the epilogue.
# ---------------------------------------------------------------------------
def _dw_conv_stats_kernel(*args, stride, ksize, oh, ow, c, fuse_norm):
    if fuse_norm:
        p_ref, sb_ref, mask_ref, w_ref, y_ref, stats_ref = args
    else:
        p_ref, w_ref, y_ref, stats_ref = args
    owc = ow * c
    acc = jnp.zeros((oh, owc), jnp.float32)
    for a in range(stride):
        for b in range(stride):
            idx = a * stride + b
            plane = p_ref[0, idx].astype(jnp.float32)        # (Ph, Pw*C)
            if fuse_norm:
                # BN + ReLU of the previous 1x1 conv, then re-zero the halo so
                # padding behaves like padding of the normalized activation.
                plane = jnp.maximum(plane * sb_ref[0:1, :] + sb_ref[1:2, :], 0.0)
                plane = plane * mask_ref[idx]
            for kh in range(a, ksize, stride):
                i = kh // stride
                rows = plane[i:i + oh, :]                    # (oh, Pw*C)
                for kw in range(b, ksize, stride):
                    j = kw // stride
                    k = kh * ksize + kw
                    tap = rows[:, j * c: j * c + owc]        # lane-dense FMA
                    acc = acc + tap * w_ref[k:k + 1, :]
    y_ref[0] = acc.astype(y_ref.dtype)                       # bf16 store
    s = jnp.sum(acc, axis=0, keepdims=True)                  # (1, ow*C)
    ss = jnp.sum(acc * acc, axis=0, keepdims=True)
    stats_ref[0] = jnp.concatenate([s, ss], axis=0)          # (2, ow*C)


def _dw_conv(planes, w_tiled, oh, ow, stride, c, sb=None, mask=None, ksize=KSIZE):
    """planes (N, s*s, Ph, Pw*C) bf16, w_tiled (K*K, ow*C) f32.
    Optional sb (2, Pw*C) / mask (s*s, Ph, Pw*C): fuse preceding BN + ReLU.
    Returns y (N, oh, ow*C) bf16 and per-channel stats (2, C) f32."""
    # TODO(synk): for production spatial extents (v7x: 64 MiB VMEM, 2 TCs) this
    # should additionally be tiled over output rows; unnecessary at these sizes.
    n, nplanes, ph, pwc = planes.shape
    fuse_norm = sb is not None
    kernel = functools.partial(_dw_conv_stats_kernel, stride=stride, ksize=ksize,
                               oh=oh, ow=ow, c=c, fuse_norm=fuse_norm)
    in_specs = [pl.BlockSpec((1, nplanes, ph, pwc), lambda i: (i, 0, 0, 0))]
    inputs = [planes]
    if fuse_norm:
        in_specs += [pl.BlockSpec((2, pwc), lambda i: (0, 0)),
                     pl.BlockSpec((nplanes, ph, pwc), lambda i: (0, 0, 0))]
        inputs += [sb, mask]
    in_specs += [pl.BlockSpec((ksize * ksize, ow * c), lambda i: (0, 0))]
    inputs += [w_tiled]

    y, psum = pl.pallas_call(
        kernel,
        out_shape=(jax.ShapeDtypeStruct((n, oh, ow * c), jnp.bfloat16),
                   jax.ShapeDtypeStruct((n, 2, ow * c), jnp.float32)),
        grid_spec=pltpu.PrefetchScalarGridSpec(
            num_scalar_prefetch=0,
            grid=(n,),
            in_specs=in_specs,
            out_specs=[
                pl.BlockSpec((1, oh, ow * c), lambda i: (i, 0, 0)),
                pl.BlockSpec((1, 2, ow * c), lambda i: (i, 0, 0)),
            ],
        ),
        compiler_params=pltpu.CompilerParams(
            dimension_semantics=("parallel",), vmem_limit_bytes=VMEM_LIMIT),
    )(*inputs)
    stats = psum.reshape(n, 2, ow, c).sum(axis=(0, 2))       # (2, C)
    return y, stats


# ---------------------------------------------------------------------------
# Wrapper-level glue
# ---------------------------------------------------------------------------
def _bn_scale_bias(stats, count, gamma, beta):
    # TODO(synk): E[x^2]-E[x]^2 in f32 can cancel for very large M; a Welford
    # combine would be safer if this ever feeds training at scale.
    mean = stats[0] / count
    var = jnp.maximum(stats[1] / count - mean * mean, 0.0)   # biased (training)
    scale = gamma * lax.rsqrt(var + EPS)
    bias = beta - mean * scale
    return (scale.reshape(1, -1).astype(jnp.float32),
            bias.reshape(1, -1).astype(jnp.float32))


def _make_parity_planes(x_nhwc, stride, oh, ow, ksize=KSIZE, pad=1):
    """Zero-pad spatially and split into stride x stride parity planes laid out
    lane-dense as (N, s*s, Ph, Pw*C) bf16 (channels minor on the lane axis).
    For stride=1 this is a single plane (just the halo pad, no duplication)."""
    # TODO(synk): for stride=1 the halo pad copy could be removed entirely by
    # handling the halo with masked edge taps inside the dw kernel.
    xpad = jnp.pad(x_nhwc, ((0, 0), (pad, pad), (pad, pad), (0, 0)))
    ph = oh + (ksize - 1) // stride
    pw = ow + (ksize - 1) // stride
    c = x_nhwc.shape[-1]
    planes = []
    for a in range(stride):
        for b in range(stride):
            pab = xpad[:, a::stride, b::stride, :][:, :ph, :pw, :]
            dh, dw = ph - pab.shape[1], pw - pab.shape[2]
            if dh or dw:
                pab = jnp.pad(pab, ((0, 0), (0, dh), (0, dw), (0, 0)))
            planes.append(pab)
    out = jnp.stack(planes, axis=1)                 # (N, s*s, Ph, Pw, C)
    return out.reshape(out.shape[0], stride * stride, ph, pw * c).astype(jnp.bfloat16)


def _make_parity_mask(h, w, c, stride, oh, ow):
    """Halo-validity mask per parity plane, lane-dense (s*s, Ph, Pw*C) f32."""
    ones = jnp.ones((1, h, w, 1), jnp.float32)
    m = _make_parity_planes(ones, stride, oh, ow)   # (1, s*s, Ph, Pw) (c=1)
    nplanes, ph, pw = m.shape[1], m.shape[2], m.shape[3]
    m = m[0].astype(jnp.float32)                    # (s*s, Ph, Pw)
    m = jnp.repeat(m[..., None], c, axis=-1)        # (s*s, Ph, Pw, C)
    return m.reshape(nplanes, ph, pw * c)


def _branch_pw_dw_pw(x_nhwc, p, stride):
    """Conv1x1+BN+ReLU -> depthwise3x3(stride)+BN -> Conv1x1+BN+ReLU.
    BN1+ReLU is fused into the dw kernel; BN2 is folded into conv3."""
    n, h, w, cin = x_nhwc.shape
    cmid = p["w1"].shape[1]
    cout = p["w3"].shape[1]

    m = n * h * w
    y1, st1 = _pw_conv_stats(x_nhwc.reshape(m, cin), p["w1"],
                             jnp.zeros((1, cmid), jnp.float32))
    sc1, bi1 = _bn_scale_bias(st1, m, p["g1"], p["b1"])

    oh = (h + 2 - KSIZE) // stride + 1
    ow = (w + 2 - KSIZE) // stride + 1
    pw_plane = ow + (KSIZE - 1) // stride

    planes = _make_parity_planes(y1[:m].reshape(n, h, w, cmid), stride, oh, ow)
    mask = _make_parity_mask(h, w, cmid, stride, oh, ow)
    sb = jnp.concatenate([jnp.tile(sc1, (1, pw_plane)),
                          jnp.tile(bi1, (1, pw_plane))], axis=0)   # (2, Pw*C)
    w_tiled = jnp.tile(p["wdw"], (1, ow))                          # (K*K, ow*C)

    y2, st2 = _dw_conv(planes, w_tiled, oh, ow, stride, cmid, sb=sb, mask=mask)
    sc2, bi2 = _bn_scale_bias(st2, n * oh * ow, p["g2"], p["b2"])

    # BN2 has no activation -> fold it exactly into the last 1x1 conv
    w3_eff = sc2.reshape(-1, 1) * p["w3"]
    b3_row = bi2.reshape(1, -1) @ p["w3"]

    m2 = n * oh * ow
    y3, st3 = _pw_conv_stats(y2.reshape(m2, cmid), w3_eff, b3_row)
    sc3, bi3 = _bn_scale_bias(st3, m2, p["g3"], p["b3"])
    return _norm_relu(y3, sc3, bi3)[:m2].reshape(n, oh, ow, cout)


def _branch_dw_pw(x_nhwc, p, stride):
    """depthwise3x3(stride)+BN -> Conv1x1+BN+ReLU  (benchmodel=2 banch1)."""
    n, h, w, cin = x_nhwc.shape
    cout = p["w2"].shape[1]
    oh = (h + 2 - KSIZE) // stride + 1
    ow = (w + 2 - KSIZE) // stride + 1
    planes = _make_parity_planes(x_nhwc, stride, oh, ow)
    w_tiled = jnp.tile(p["wdw"], (1, ow))
    y1, st1 = _dw_conv(planes, w_tiled, oh, ow, stride, cin)   # no fused BN
    sc1, bi1 = _bn_scale_bias(st1, n * oh * ow, p["g1"], p["b1"])

    w2_eff = sc1.reshape(-1, 1) * p["w2"]        # fold activation-free BN
    b2_row = bi1.reshape(1, -1) @ p["w2"]
    m = n * oh * ow
    y2, st2 = _pw_conv_stats(y1.reshape(m, cin), w2_eff, b2_row)
    sc2, bi2 = _bn_scale_bias(st2, m, p["g2"], p["b2"])
    return _norm_relu(y2, sc2, bi2)[:m].reshape(n, oh, ow, cout)


@functools.partial(jax.jit, static_argnames=("stride", "benchmodel"))
def shuffle_block_forward(x_nchw, params, *, stride, benchmodel):
    n, c, h, w = x_nchw.shape
    x = jnp.transpose(x_nchw, (0, 2, 3, 1)).astype(jnp.float32)   # NHWC
    if benchmodel == 1:
        assert stride == 1, "benchmodel=1 keeps x1 untouched -> stride must be 1"
        half = c // 2
        y1 = x[..., :half]
        y2 = _branch_pw_dw_pw(x[..., half:], params["banch2"], stride)
    else:
        y1 = _branch_dw_pw(x, params["banch1"], stride)
        y2 = _branch_pw_dw_pw(x, params["banch2"], stride)
    # concat along channels + channel_shuffle(groups=2) == interleave the halves
    # TODO(synk): this interleave and the NCHW<->NHWC transposes are wrapper-level
    # XLA ops; they could be absorbed into the final normalize kernel's out_spec.
    oh, ow = y2.shape[1], y2.shape[2]
    out = jnp.stack([y1, y2], axis=-1).reshape(
        n, oh, ow, y1.shape[-1] + y2.shape[-1])
    return jnp.transpose(out, (0, 3, 1, 2))                       # NCHW


# ---------------------------------------------------------------------------
# Weight layout converters (PyTorch layouts -> kernel layouts)
# ---------------------------------------------------------------------------
def _pw_weight(w_oihw):           # (Cout, Cin, 1, 1) -> (Cin, Cout)
    return jnp.transpose(w_oihw[:, :, 0, 0], (1, 0)).astype(jnp.float32)


def _dw_weight(w_oihw):           # (C, 1, K, K) -> (K*K, C)
    c, _, k, _ = w_oihw.shape
    return jnp.transpose(w_oihw[:, 0].reshape(c, k * k), (1, 0)).astype(jnp.float32)


def _convert_branch2(r):
    return {"w1": _pw_weight(r["w1"]), "g1": r["g1"], "b1": r["b1"],
            "wdw": _dw_weight(r["wdw"]), "g2": r["g2"], "b2": r["b2"],
            "w3": _pw_weight(r["w3"]), "g3": r["g3"], "b3": r["b3"]}


def _convert_branch1(r):
    return {"wdw": _dw_weight(r["wdw"]), "g1": r["g1"], "b1": r["b1"],
            "w2": _pw_weight(r["w2"]), "g2": r["g2"], "b2": r["b2"]}


def _make_raw_branch2(key, cin, cmid):
    k = jax.random.split(key, 9)
    return {
        "w1": 0.2 * jax.random.normal(k[0], (cmid, cin, 1, 1), jnp.float32),
        "g1": 0.8 + 0.4 * jax.random.uniform(k[1], (cmid,), jnp.float32),
        "b1": 0.1 * jax.random.normal(k[2], (cmid,), jnp.float32),
        "wdw": 0.2 * jax.random.normal(k[3], (cmid, 1, KSIZE, KSIZE), jnp.float32),
        "g2": 0.8 + 0.4 * jax.random.uniform(k[4], (cmid,), jnp.float32),
        "b2": 0.1 * jax.random.normal(k[5], (cmid,), jnp.float32),
        "w3": 0.2 * jax.random.normal(k[6], (cmid, cmid, 1, 1), jnp.float32),
        "g3": 0.8 + 0.4 * jax.random.uniform(k[7], (cmid,), jnp.float32),
        "b3": 0.1 * jax.random.normal(k[8], (cmid,), jnp.float32),
    }


def _make_raw_branch1(key, cin, cout):
    k = jax.random.split(key, 6)
    return {
        "wdw": 0.2 * jax.random.normal(k[0], (cin, 1, KSIZE, KSIZE), jnp.float32),
        "g1": 0.8 + 0.4 * jax.random.uniform(k[1], (cin,), jnp.float32),
        "b1": 0.1 * jax.random.normal(k[2], (cin,), jnp.float32),
        "w2": 0.2 * jax.random.normal(k[3], (cout, cin, 1, 1), jnp.float32),
        "g2": 0.8 + 0.4 * jax.random.uniform(k[4], (cout,), jnp.float32),
        "b2": 0.1 * jax.random.normal(k[5], (cout,), jnp.float32),
    }


# ---------------------------------------------------------------------------
# Pure-JAX (XLA) reference for the correctness check
# ---------------------------------------------------------------------------
def _conv_bn_act_ref(x, w, gamma, beta, stride, padding, groups, relu):
    y = lax.conv_general_dilated(
        x, w, (stride, stride), [(padding, padding)] * 2,
        dimension_numbers=("NCHW", "OIHW", "NCHW"), feature_group_count=groups)
    mean = jnp.mean(y, axis=(0, 2, 3), keepdims=True)
    var = jnp.mean((y - mean) ** 2, axis=(0, 2, 3), keepdims=True)
    y = (y - mean) * lax.rsqrt(var + EPS) * gamma.reshape(1, -1, 1, 1) \
        + beta.reshape(1, -1, 1, 1)
    return jnp.maximum(y, 0.0) if relu else y


def _branch2_ref(x, r, stride):
    y = _conv_bn_act_ref(x, r["w1"], r["g1"], r["b1"], 1, 0, 1, True)
    y = _conv_bn_act_ref(y, r["wdw"], r["g2"], r["b2"], stride, 1, y.shape[1], False)
    return _conv_bn_act_ref(y, r["w3"], r["g3"], r["b3"], 1, 0, 1, True)


def _branch1_ref(x, r, stride):
    y = _conv_bn_act_ref(x, r["wdw"], r["g1"], r["b1"], stride, 1, x.shape[1], False)
    return _conv_bn_act_ref(y, r["w2"], r["g2"], r["b2"], 1, 0, 1, True)


def _channel_shuffle_ref(x, groups=2):
    n, c, h, w = x.shape
    return jnp.transpose(x.reshape(n, groups, c // groups, h, w),
                         (0, 2, 1, 3, 4)).reshape(n, c, h, w)


def shuffle_block_ref(x, raw, stride, benchmodel):
    if benchmodel == 1:
        half = x.shape[1] // 2
        out = jnp.concatenate(
            [x[:, :half], _branch2_ref(x[:, half:], raw["banch2"], stride)], axis=1)
    else:
        out = jnp.concatenate(
            [_branch1_ref(x, raw["banch1"], stride),
             _branch2_ref(x, raw["banch2"], stride)], axis=1)
    return _channel_shuffle_ref(out, 2)


if __name__ == "__main__":
    root = jax.random.PRNGKey(0)
    kA, kB = jax.random.split(root)

    # --- config A: benchmodel=1 basic unit (stride 1), inp == oup == 32 ------
    n, c, h, w = 2, 32, 32, 32
    oup_inc = c // 2
    kx, kp = jax.random.split(kA)
    xA = jax.random.normal(kx, (n, c, h, w), jnp.float32)
    rawA = {"banch2": _make_raw_branch2(kp, oup_inc, oup_inc)}
    paramsA = {"banch2": _convert_branch2(rawA["banch2"])}
    outA = jax.block_until_ready(
        shuffle_block_forward(xA, paramsA, stride=1, benchmodel=1))
    assert outA.shape == (n, c, h, w), outA.shape
    refA = shuffle_block_ref(xA, rawA, 1, 1)
    if not jnp.allclose(outA, refA, atol=5e-2, rtol=5e-2):
        raise AssertionError(
            f"benchmodel=1 mismatch, max |err| = {jnp.max(jnp.abs(outA - refA))}")

    # --- config B: benchmodel=2 down-sampling unit (stride 2), 16 -> 32 ch ---
    n, cin, oup, h, w = 2, 16, 32, 32, 32
    oup_inc = oup // 2
    kx, kp1, kp2 = jax.random.split(kB, 3)
    xB = jax.random.normal(kx, (n, cin, h, w), jnp.float32)
    rawB = {"banch1": _make_raw_branch1(kp1, cin, oup_inc),
            "banch2": _make_raw_branch2(kp2, cin, oup_inc)}
    paramsB = {"banch1": _convert_branch1(rawB["banch1"]),
               "banch2": _convert_branch2(rawB["banch2"])}
    outB = jax.block_until_ready(
        shuffle_block_forward(xB, paramsB, stride=2, benchmodel=2))
    assert outB.shape == (n, oup, h // 2, w // 2), outB.shape
    refB = shuffle_block_ref(xB, rawB, 2, 2)
    if not jnp.allclose(outB, refB, atol=5e-2, rtol=5e-2):
        raise AssertionError(
            f"benchmodel=2 mismatch, max |err| = {jnp.max(jnp.abs(outB - refB))}")

    print("KERNEL_OK")
</pallas_src>

<mosaic_0001>
module attributes {stable_mosaic.version = 11 : i64} {
  func.func @_mm_bias_stats_kernel(%arg0: i32, %arg1: memref<1024x16xbf16, #tpu.memory_space<vmem>>, %arg2: memref<16x16xbf16, #tpu.memory_space<vmem>>, %arg3: memref<1x16xf32, #tpu.memory_space<vmem>>, %arg4: memref<1024x16xbf16, #tpu.memory_space<vmem>>, %arg5: memref<1x2x16xf32, #tpu.memory_space<vmem>>) attributes {dimension_semantics = [#tpu.dimension_semantics<parallel>], iteration_bounds = array<i64: 2>, scalar_prefetch = 0 : i64, scratch_operands = 0 : i64, tpu.core_type = #tpu.core_type<tc>, window_params = [{transform_indices = @transform_0, window_bounds = array<i64: 1024, 16>}, {pipeline_mode = #tpu.pipeline_mode<synchronous>, transform_indices = @transform_1, window_bounds = array<i64: 16, 16>}, {pipeline_mode = #tpu.pipeline_mode<synchronous>, transform_indices = @transform_2, window_bounds = array<i64: 1, 16>}, {transform_indices = @transform_3, window_bounds = array<i64: 1024, 16>}, {transform_indices = @transform_4, window_bounds = array<i64: 1, 2, 16>}]} {
    %c0 = arith.constant 0 : index
    %c0_0 = arith.constant 0 : index
    %0 = vector.load %arg1[%c0, %c0_0] : memref<1024x16xbf16, #tpu.memory_space<vmem>>, vector<1024x16xbf16>
    %c0_1 = arith.constant 0 : index
    %c0_2 = arith.constant 0 : index
    %1 = vector.load %arg2[%c0_1, %c0_2] : memref<16x16xbf16, #tpu.memory_space<vmem>>, vector<16x16xbf16>
    %cst = arith.constant dense<0.000000e+00> : vector<1024x16xf32>
    %2 = tpu.matmul %0, %1, %cst {dimension_numbers = #tpu.dot_dimension_numbers<[1], [0], [0], [1], [0, 0, 1, 1], [], []>} : vector<1024x16xbf16>, vector<16x16xbf16>, vector<1024x16xf32> -> vector<1024x16xf32>
    %c0_3 = arith.constant 0 : index
    %c0_4 = arith.constant 0 : index
    %3 = vector.load %arg3[%c0_3, %c0_4] : memref<1x16xf32, #tpu.memory_space<vmem>>, vector<1x16xf32>
    %4 = vector.broadcast %3 : vector<1x16xf32> to vector<1024x16xf32>
    %5 = arith.addf %2, %4 : vector<1024x16xf32>
    %6 = arith.truncf %5 : vector<1024x16xf32> to vector<1024x16xbf16>
    %c0_5 = arith.constant 0 : index
    %c0_6 = arith.constant 0 : index
    %7 = vector.load %arg4[%c0_5, %c0_6] : memref<1024x16xbf16, #tpu.memory_space<vmem>>, vector<1024x16xbf16>
    tpu.vector_store %arg4[%c0_5, %c0_6], %6 {strides = array<i32>} : memref<1024x16xbf16, #tpu.memory_space<vmem>>, vector<1024x16xbf16>,
    %cst_7 = arith.constant dense<0.000000e+00> : vector<16xf32>
    %8 = vector.multi_reduction <add>, %5, %cst_7 [0] : vector<1024x16xf32> to vector<16xf32>
    %9 = vector.shape_cast %8 : vector<16xf32> to vector<1x16xf32>
    %10 = arith.mulf %5, %5 : vector<1024x16xf32>
    %cst_8 = arith.constant dense<0.000000e+00> : vector<16xf32>
    %11 = vector.multi_reduction <add>, %10, %cst_8 [0] : vector<1024x16xf32> to vector<16xf32>
    %12 = vector.shape_cast %11 : vector<16xf32> to vector<1x16xf32>
    %13 = tpu.concatenate %9, %12 in 0 : vector<1x16xf32>, vector<1x16xf32> -> vector<2x16xf32>
    %c0_9 = arith.constant 0 : index
    %c0_10 = arith.constant 0 : index
    %c0_11 = arith.constant 0 : index
    %14 = vector.load %arg5[%c0_9, %c0_10, %c0_11] : memref<1x2x16xf32, #tpu.memory_space<vmem>>, vector<1x2x16xf32>
    %15 = vector.shape_cast %14 : vector<1x2x16xf32> to vector<2x16xf32>
    %16 = vector.shape_cast %13 : vector<2x16xf32> to vector<1x2x16xf32>
    tpu.vector_store %arg5[%c0_9, %c0_10, %c0_11], %16 {strides = array<i32>} : memref<1x2x16xf32, #tpu.memory_space<vmem>>, vector<1x2x16xf32>,
    return
  }
  func.func @transform_0(%arg0: i32) -> (i32, i32) {
    %c0_i32 = arith.constant 0 : i32
    %c0_i32_0 = arith.constant 0 : i32
    return %arg0, %c0_i32 : i32, i32
  }
  func.func @transform_1(%arg0: i32) -> (i32, i32) {
    %c0_i32 = arith.constant 0 : i32
    %c0_i32_0 = arith.constant 0 : i32
    %c0_i32_1 = arith.constant 0 : i32
    return %c0_i32, %c0_i32_0 : i32, i32
  }
  func.func @transform_2(%arg0: i32) -> (i32, i32) {
    %c0_i32 = arith.constant 0 : i32
    %c0_i32_0 = arith.constant 0 : i32
    %c0_i32_1 = arith.constant 0 : i32
    return %c0_i32, %c0_i32_0 : i32, i32
  }
  func.func @transform_3(%arg0: i32) -> (i32, i32) {
    %c0_i32 = arith.constant 0 : i32
    %c0_i32_0 = arith.constant 0 : i32
    return %arg0, %c0_i32 : i32, i32
  }
  func.func @transform_4(%arg0: i32) -> (i32, i32, i32) {
    %c0_i32 = arith.constant 0 : i32
    %c0_i32_0 = arith.constant 0 : i32
    %c0_i32_1 = arith.constant 0 : i32
    return %arg0, %c0_i32, %c0_i32_0 : i32, i32, i32
  }
}

module attributes {stable_mosaic.version = 11 : i64} {
  func.func @_dw_conv_stats_kernel(%arg0: i32, %arg1: memref<1x1x34x544xbf16, #tpu.memory_space<vmem>>, %arg2: memref<2x544xf32, #tpu.memory_space<vmem>>, %arg3: memref<1x34x544xf32, #tpu.memory_space<vmem>>, %arg4: memref<9x512xf32, #tpu.memory_space<vmem>>, %arg5: memref<1x32x512xbf16, #tpu.memory_space<vmem>>, %arg6: memref<1x2x512xf32, #tpu.memory_space<vmem>>) attributes {dimension_semantics = [#tpu.dimension_semantics<parallel>], iteration_bounds = array<i64: 2>, scalar_prefetch = 0 : i64, scratch_operands = 0 : i64, tpu.core_type = #tpu.core_type<tc>, window_params = [{transform_indices = @transform_0, window_bounds = array<i64: 1, 1, 34, 544>}, {pipeline_mode = #tpu.pipeline_mode<synchronous>, transform_indices = @transform_1, window_bounds = array<i64: 2, 544>}, {pipeline_mode = #tpu.pipeline_mode<synchronous>, transform_indices = @transform_2, window_bounds = array<i64: 1, 34, 544>}, {pipeline_mode = #tpu.pipeline_mode<synchronous>, transform_indices = @transform_3, window_bounds = array<i64: 9, 512>}, {transform_indices = @transform_4, window_bounds = array<i64: 1, 32, 512>}, {transform_indices = @transform_5, window_bounds = array<i64: 1, 2, 512>}]} {
    %cst = arith.constant 0.000000e+00 : f32
    %0 = vector.broadcast %cst : f32 to vector<32x512xf32>
    %c0 = arith.constant 0 : index
    %c0_0 = arith.constant 0 : index
    %c0_1 = arith.constant 0 : index
    %c0_2 = arith.constant 0 : index
    %1 = vector.load %arg1[%c0, %c0_0, %c0_1, %c0_2] : memref<1x1x34x544xbf16, #tpu.memory_space<vmem>>, vector<1x1x34x544xbf16>
    %2 = vector.shape_cast %1 : vector<1x1x34x544xbf16> to vector<34x544xbf16>
    %3 = arith.extf %2 : vector<34x544xbf16> to vector<34x544xf32>
    %c0_3 = arith.constant 0 : index
    %c0_4 = arith.constant 0 : index
    %4 = vector.load %arg2[%c0_3, %c0_4] : memref<2x544xf32, #tpu.memory_space<vmem>>, vector<1x544xf32>
    %5 = vector.broadcast %4 : vector<1x544xf32> to vector<34x544xf32>
    %6 = arith.mulf %3, %5 : vector<34x544xf32>
    %c1 = arith.constant 1 : index
    %c0_5 = arith.constant 0 : index
    %7 = vector.load %arg2[%c1, %c0_5] : memref<2x544xf32, #tpu.memory_space<vmem>>, vector<1x544xf32>
    %8 = vector.broadcast %7 : vector<1x544xf32> to vector<34x544xf32>
    %9 = arith.addf %6, %8 : vector<34x544xf32>
    %cst_6 = arith.constant 0.000000e+00 : f32
    %10 = vector.broadcast %cst_6 : f32 to vector<34x544xf32>
    %11 = arith.maximumf %9, %10 : vector<34x544xf32>
    %c0_7 = arith.constant 0 : index
    %c0_8 = arith.constant 0 : index
    %c0_9 = arith.constant 0 : index
    %12 = vector.load %arg3[%c0_7, %c0_8, %c0_9] : memref<1x34x544xf32, #tpu.memory_space<vmem>>, vector<1x34x544xf32>
    %13 = vector.shape_cast %12 : vector<1x34x544xf32> to vector<34x544xf32>
    %14 = arith.mulf %11, %13 : vector<34x544xf32>
    %15 = vector.extract_strided_slice %14 {offsets = [0, 0], sizes = [32, 544], strides = [1, 1]} : vector<34x544xf32> to vector<32x544xf32>
    %16 = vector.extract_strided_slice %15 {offsets = [0, 0], sizes = [32, 512], strides = [1, 1]} : vector<32x544xf32> to vector<32x512xf32>
    %c0_10 = arith.constant 0 : index
    %c0_11 = arith.constant 0 : index
    %17 = vector.load %arg4[%c0_10, %c0_11] : memref<9x512xf32, #tpu.memory_space<vmem>>, vector<1x512xf32>
    %18 = vector.broadcast %17 : vector<1x512xf32> to vector<32x512xf32>
    %19 = arith.mulf %16, %18 : vector<32x512xf32>
    %20 = arith.addf %0, %19 : vector<32x512xf32>
    %21 = vector.extract_strided_slice %15 {offsets = [0, 16], sizes = [32, 512], strides = [1, 1]} : vector<32x544xf32> to vector<32x512xf32>
    %c1_12 = arith.constant 1 : index
    %c0_13 = arith.constant 0 : index
    %22 = vector.load %arg4[%c1_12, %c0_13] : memref<9x512xf32, #tpu.memory_space<vmem>>, vector<1x512xf32>
    %23 = vector.broadcast %22 : vector<1x512xf32> to vector<32x512xf32>
    %24 = arith.mulf %21, %23 : vector<32x512xf32>
    %25 = arith.addf %20, %24 : vector<32x512xf32>
    %26 = vector.extract_strided_slice %15 {offsets = [0, 32], sizes = [32, 512], strides = [1, 1]} : vector<32x544xf32> to vector<32x512xf32>
    %c2 = arith.constant 2 : index
    %c0_14 = arith.constant 0 : index
    %27 = vector.load %arg4[%c2, %c0_14] : memref<9x512xf32, #tpu.memory_space<vmem>>, vector<1x512xf32>
    %28 = vector.broadcast %27 : vector<1x512xf32> to vector<32x512xf32>
    %29 = arith.mulf %26, %28 : vector<32x512xf32>
    %30 = arith.addf %25, %29 : vector<32x512xf32>
    %31 = vector.extract_strided_slice %14 {offsets = [1, 0], sizes = [32, 544], strides = [1, 1]} : vector<34x544xf32> to vector<32x544xf32>
    %32 = vector.extract_strided_slice %31 {offsets = [0, 0], sizes = [32, 512], strides = [1, 1]} : vector<32x544xf32> to vector<32x512xf32>
    %c3 = arith.constant 3 : index
    %c0_15 = arith.constant 0 : index
    %33 = vector.load %arg4[%c3, %c0_15] : memref<9x512xf32, #tpu.memory_space<vmem>>, vector<1x512xf32>
    %34 = vector.broadcast %33 : vector<1x512xf32> to vector<32x512xf32>
    %35 = arith.mulf %32, %34 : vector<32x512xf32>
    %36 = arith.addf %30, %35 : vector<32x512xf32>
    %37 = vector.extract_strided_slice %31 {offsets = [0, 16], sizes = [32, 512], strides = [1, 1]} : vector<32x544xf32> to vector<32x512xf32>
    %c4 = arith.constant 4 : index
    %c0_16 = arith.constant 0 : index
    %38 = vector.load %arg4[%c4, %c0_16] : memref<9x512xf32, #tpu.memory_space<vmem>>, vector<1x512xf32>
    %39 = vector.broadcast %38 : vector<1x512xf32> to vector<32x512xf32>
    %40 = arith.mulf %37, %39 : vector<32x512xf32>
    %41 = arith.addf %36, %40 : vector<32x512xf32>
    %42 = vector.extract_strided_slice %31 {offsets = [0, 32], sizes = [32, 512], strides = [1, 1]} : vector<32x544xf32> to vector<32x512xf32>
    %c5 = arith.constant 5 : index
    %c0_17 = arith.constant 0 : index
    %43 = vector.load %arg4[%c5, %c0_17] : memref<9x512xf32, #tpu.memory_space<vmem>>, vector<1x512xf32>
    %44 = vector.broadcast %43 : vector<1x512xf32> to vector<32x512xf32>
    %45 = arith.mulf %42, %44 : vector<32x512xf32>
    %46 = arith.addf %41, %45 : vector<32x512xf32>
    %47 = vector.extract_strided_slice %14 {offsets = [2, 0], sizes = [32, 544], strides = [1, 1]} : vector<34x544xf32> to vector<32x544xf32>
    %48 = vector.extract_strided_slice %47 {offsets = [0, 0], sizes = [32, 512], strides = [1, 1]} : vector<32x544xf32> to vector<32x512xf32>
    %c6 = arith.constant 6 : index
    %c0_18 = arith.constant 0 : index
    %49 = vector.load %arg4[%c6, %c0_18] : memref<9x512xf32, #tpu.memory_space<vmem>>, vector<1x512xf32>
    %50 = vector.broadcast %49 : vector<1x512xf32> to vector<32x512xf32>
    %51 = arith.mulf %48, %50 : vector<32x512xf32>
    %52 = arith.addf %46, %51 : vector<32x512xf32>
    %53 = vector.extract_strided_slice %47 {offsets = [0, 16], sizes = [32, 512], strides = [1, 1]} : vector<32x544xf32> to vector<32x512xf32>
    %c7 = arith.constant 7 : index
    %c0_19 = arith.constant 0 : index
    %54 = vector.load %arg4[%c7, %c0_19] : memref<9x512xf32, #tpu.memory_space<vmem>>, vector<1x512xf32>
    %55 = vector.broadcast %54 : vector<1x512xf32> to vector<32x512xf32>
    %56 = arith.mulf %53, %55 : vector<32x512xf32>
    %57 = arith.addf %52, %56 : vector<32x512xf32>
    %58 = vector.extract_strided_slice %47 {offsets = [0, 32], sizes = [32, 512], strides = [1, 1]} : vector<32x544xf32> to vector<32x512xf32>
    %c8 = arith.constant 8 : index
    %c0_20 = arith.constant 0 : index
    %59 = vector.load %arg4[%c8, %c0_20] : memref<9x512xf32, #tpu.memory_space<vmem>>, vector<1x512xf32>
    %60 = vector.broadcast %59 : vector<1x512xf32> to vector<32x512xf32>
    %61 = arith.mulf %58, %60 : vector<32x512xf32>
    %62 = arith.addf %57, %61 : vector<32x512xf32>
    %63 = arith.truncf %62 : vector<32x512xf32> to vector<32x512xbf16>
    %c0_21 = arith.constant 0 : index
    %c0_22 = arith.constant 0 : index
    %c0_23 = arith.constant 0 : index
    %64 = vector.load %arg5[%c0_21, %c0_22, %c0_23] : memref<1x32x512xbf16, #tpu.memory_space<vmem>>, vector<1x32x512xbf16>
    %65 = vector.shape_cast %64 : vector<1x32x512xbf16> to vector<32x512xbf16>
    %66 = vector.shape_cast %63 : vector<32x512xbf16> to vector<1x32x512xbf16>
    tpu.vector_store %arg5[%c0_21, %c0_22, %c0_23], %66 {strides = array<i32>} : memref<1x32x512xbf16, #tpu.memory_space<vmem>>, vector<1x32x512xbf16>,
    %cst_24 = arith.constant dense<0.000000e+00> : vector<512xf32>
    %67 = vector.multi_reduction <add>, %62, %cst_24 [0] : vector<32x512xf32> to vector<512xf32>
    %68 = vector.shape_cast %67 : vector<512xf32> to vector<1x512xf32>
    %69 = arith.mulf %62, %62 : vector<32x512xf32>
    %cst_25 = arith.constant dense<0.000000e+00> : vector<512xf32>
    %70 = vector.multi_reduction <add>, %69, %cst_25 [0] : vector<32x512xf32> to vector<512xf32>
    %71 = vector.shape_cast %70 : vector<512xf32> to vector<1x512xf32>
    %72 = tpu.concatenate %68, %71 in 0 : vector<1x512xf32>, vector<1x512xf32> -> vector<2x512xf32>
    %c0_26 = arith.constant 0 : index
    %c0_27 = arith.constant 0 : index
    %c0_28 = arith.constant 0 : index
    %73 = vector.load %arg6[%c0_26, %c0_27, %c0_28] : memref<1x2x512xf32, #tpu.memory_space<vmem>>, vector<1x2x512xf32>
    %74 = vector.shape_cast %73 : vector<1x2x512xf32> to vector<2x512xf32>
    %75 = vector.shape_cast %72 : vector<2x512xf32> to vector<1x2x512xf32>
    tpu.vector_store %arg6[%c0_26, %c0_27, %c0_28], %75 {strides = array<i32>} : memref<1x2x512xf32, #tpu.memory_space<vmem>>, vector<1x2x512xf32>,
    return
  }
  func.func @transform_0(%arg0: i32) -> (i32, i32, i32, i32) {
    %c0_i32 = arith.constant 0 : i32
    %c0_i32_0 = arith.constant 0 : i32
    %c0_i32_1 = arith.constant 0 : i32
    %c0_i32_2 = arith.constant 0 : i32
    return %arg0, %c0_i32, %c0_i32_0, %c0_i32_1 : i32, i32, i32, i32
  }
  func.func @transform_1(%arg0: i32) -> (i32, i32) {
    %c0_i32 = arith.constant 0 : i32
    %c0_i32_0 = arith.constant 0 : i32
    %c0_i32_1 = arith.constant 0 : i32
    return %c0_i32, %c0_i32_0 : i32, i32
  }
  func.func @transform_2(%arg0: i32) -> (i32, i32, i32) {
    %c0_i32 = arith.constant 0 : i32
    %c0_i32_0 = arith.constant 0 : i32
    %c0_i32_1 = arith.constant 0 : i32
    %c0_i32_2 = arith.constant 0 : i32
    return %c0_i32, %c0_i32_0, %c0_i32_1 : i32, i32, i32
  }
  func.func @transform_3(%arg0: i32) -> (i32, i32) {
    %c0_i32 = arith.constant 0 : i32
    %c0_i32_0 = arith.constant 0 : i32
    %c0_i32_1 = arith.constant 0 : i32
    return %c0_i32, %c0_i32_0 : i32, i32
  }
  func.func @transform_4(%arg0: i32) -> (i32, i32, i32) {
    %c0_i32 = arith.constant 0 : i32
    %c0_i32_0 = arith.constant 0 : i32
    %c0_i32_1 = arith.constant 0 : i32
    return %arg0, %c0_i32, %c0_i32_0 : i32, i32, i32
  }
  func.func @transform_5(%arg0: i32) -> (i32, i32, i32) {
    %c0_i32 = arith.constant 0 : i32
    %c0_i32_0 = arith.constant 0 : i32
    %c0_i32_1 = arith.constant 0 : i32
    return %arg0, %c0_i32, %c0_i32_0 : i32, i32, i32
  }
}

module attributes {stable_mosaic.version = 11 : i64} {
  func.func @_norm_relu_kernel(%arg0: i32, %arg1: memref<256x128xbf16, #tpu.memory_space<vmem>>, %arg2: memref<1x128xf32, #tpu.memory_space<vmem>>, %arg3: memref<1x128xf32, #tpu.memory_space<vmem>>, %arg4: memref<256x128xf32, #tpu.memory_space<vmem>>) attributes {dimension_semantics = [#tpu.dimension_semantics<parallel>], iteration_bounds = array<i64: 1>, scalar_prefetch = 0 : i64, scratch_operands = 0 : i64, tpu.core_type = #tpu.core_type<tc>, window_params = [{transform_indices = @transform_0, window_bounds = array<i64: 256, 128>}, {pipeline_mode = #tpu.pipeline_mode<synchronous>, transform_indices = @transform_1, window_bounds = array<i64: 1, 128>}, {pipeline_mode = #tpu.pipeline_mode<synchronous>, transform_indices = @transform_2, window_bounds = array<i64: 1, 128>}, {transform_indices = @transform_3, window_bounds = array<i64: 256, 128>}]} {
    %c0 = arith.constant 0 : index
    %c0_0 = arith.constant 0 : index
    %0 = vector.load %arg1[%c0, %c0_0] : memref<256x128xbf16, #tpu.memory_space<vmem>>, vector<256x128xbf16>
    %c0_1 = arith.constant 0 : index
    %c0_2 = arith.constant 0 : index
    %1 = vector.load %arg2[%c0_1, %c0_2] : memref<1x128xf32, #tpu.memory_space<vmem>>, vector<1x128xf32>
    %2 = arith.extf %0 : vector<256x128xbf16> to vector<256x128xf32>
    %3 = vector.broadcast %1 : vector<1x128xf32> to vector<256x128xf32>
    %4 = arith.mulf %2, %3 : vector<256x128xf32>
    %c0_3 = arith.constant 0 : index
    %c0_4 = arith.constant 0 : index
    %5 = vector.load %arg3[%c0_3, %c0_4] : memref<1x128xf32, #tpu.memory_space<vmem>>, vector<1x128xf32>
    %6 = vector.broadcast %5 : vector<1x128xf32> to vector<256x128xf32>
    %7 = arith.addf %4, %6 : vector<256x128xf32>
    %cst = arith.constant 0.000000e+00 : f32
    %8 = vector.broadcast %cst : f32 to vector<256x128xf32>
    %9 = arith.maximumf %7, %8 : vector<256x128xf32>
    %c0_5 = arith.constant 0 : index
    %c0_6 = arith.constant 0 : index
    %10 = vector.load %arg4[%c0_5, %c0_6] : memref<256x128xf32, #tpu.memory_space<vmem>>, vector<256x128xf32>
    tpu.vector_store %arg4[%c0_5, %c0_6], %9 {strides = array<i32>} : memref<256x128xf32, #tpu.memory_space<vmem>>, vector<256x128xf32>,
    return
  }
  func.func @transform_0(%arg0: i32) -> (i32, i32) {
    %c0_i32 = arith.constant 0 : i32
    %c0_i32_0 = arith.constant 0 : i32
    return %arg0, %c0_i32 : i32, i32
  }
  func.func @transform_1(%arg0: i32) -> (i32, i32) {
    %c0_i32 = arith.constant 0 : i32
    %c0_i32_0 = arith.constant 0 : i32
    %c0_i32_1 = arith.constant 0 : i32
    return %c0_i32, %c0_i32_0 : i32, i32
  }
  func.func @transform_2(%arg0: i32) -> (i32, i32) {
    %c0_i32 = arith.constant 0 : i32
    %c0_i32_0 = arith.constant 0 : i32
    %c0_i32_1 = arith.constant 0 : i32
    return %c0_i32, %c0_i32_0 : i32, i32
  }
  func.func @transform_3(%arg0: i32) -> (i32, i32) {
    %c0_i32 = arith.constant 0 : i32
    %c0_i32_0 = arith.constant 0 : i32
    return %arg0, %c0_i32 : i32, i32
  }
}

</mosaic_0001>

<bundles_post_ra>
// kernel: tile.33
= control target key start
LH: loop header
LB: loop body
LE: loop exit
PB: predicated region body
PF: predicated region fallthrough
CT: control target
= control target key end

     0   :  { %vm60_vm0 = vcmask 1043459   ;;  %vm64_vm1 = vcmask 1044484   ;;  %vm68_vm2 = vcmask 1045509   ;;  %vm72_vm3 = vcmask 1046534   ;;  %s119_s6 = smov 6  ;;  %s83_s21 = smov 3  ;;  %s2707_s0 = inlined_call_operand.vmem [shape: f32[9,32,16], index: 0, kind: input, shape index: {}]   ;;  %s2708_s1 = inlined_call_operand.vmem [shape: f32[9,512], index: 1, kind: output, shape index: {}]  }
   0x1   :  { %vm76_vm4 = vcmask 1047559   ;;  %v1179_v0 = vld [vmem:[%s2707_s0 + $0x10f] sm:$0x1]   ;;  %vm121_vm5 = vcmask 1042433   ;;  %v1181_v3 = vld [vmem:[%s2707_s0 + $0x34] sm:$0x8]  }
   0x2   :  { %v1180_v1 = vld [vmem:[%s2707_s0 + $0x1c7] ss:$-216 sm:%s119_s6]   ;;  %vm56_vm6 = vcmask 1042434   ;;  %vm52_vm7 = vcmask 1041409   ;;  %s157_s9 = smov 12  ;;  %vm159_vm8 = vcmask 1043458  }
   0x3   :  { %v122_v2 = vsel %vm121_vm5, %v1180_v1, %v1179_v0  ;;  %v1182_v4 = vld [vmem:[%s2707_s0 + $0x53] sm:$0x10]   ;;  %v1171_v11 = vld [vmem:[%s2707_s0 + $0x2d] sm:$0x4]   ;;  %s1456_s14 = smov 112   ;;  %s276_s10 = smov 6 }
   0x4   :  { %v1183_v5 = vld [vmem:[%s2707_s0 + $0x72] sm:$0x20]   ;;  %v126_v6 = vsel %vm60_vm0, %v1181_v3, %v122_v2  ;;  %v1172_v12 = vld [vmem:[%s2707_s0 + $0x4c] sm:$0x8]   ;;  %v1191_v28 = vld [vmem:[%s2707_s0 + $0x3b] sm:$0x10]  }
   0x5   :  { %v1184_v7 = vld [vmem:[%s2707_s0 + $0x91] sm:$0x40]   ;;  %v130_v9 = vsel %vm64_vm1, %v1182_v4, %v126_v6  ;;  %v1173_v15 = vld [vmem:[%s2707_s0 + $0x6b] sm:$0x10]   ;;  %v1192_v29 = vld [vmem:[%s2707_s0 + $0x5a] sm:$0x20]  }
   0x6   :  { %v1185_v8 = vld [vmem:[%s2707_s0 + $0xb0] sm:$0x80]   ;;  %v134_v13 = vsel %vm68_vm2, %v1183_v5, %v130_v9  ;;  %v1174_v16 = vld [vmem:[%s2707_s0 + $0x8a] sm:$0x20]   ;;  %v1193_v30 = vld [vmem:[%s2707_s0 + $0x79] sm:$0x40]  }
   0x7   :  { %v1170_v10 = vld [vmem:[%s2707_s0 + $0x107] ss:$-248 sm:%s83_s21]   ;;  %v138_v18 = vsel %vm72_vm3, %v1184_v7, %v134_v13  ;;  %v1220_v48 = vld [vmem:[%s2707_s0 + $0x10e] sm:$0x1]   ;;  %v1222_v49 = vld [vmem:[%s2707_s0 + $0x33] sm:$0x8]  }
   0x8   :  { %v88_v14 = vsel %vm56_vm6, %v1171_v11, %v1170_v10  ;;  %v1175_v17 = vld [vmem:[%s2707_s0 + $0xa9] sm:$0x40]   ;;  %v1188_v21 = vld [vmem:[%s2707_s0 + $0x117] sm:$0x1]   ;;  %v142_v22 = vsel %vm76_vm4, %v1185_v8, %v138_v18  ;;  %v1194_v33 = vld [vmem:[%s2707_s0 + $0x98] sm:$0x80]  }
   0x9   :  { %v92_v19 = vsel %vm60_vm0, %v1172_v12, %v88_v14  ;;  %v1176_v20 = vld [vmem:[%s2707_s0 + $0xc8] sm:$0x80]   ;;  %v1189_v24 = vld [vmem:[%s2707_s0 + $0xd6] sm:$0x2]   ;;  %143 = vrot.lane.b32.xlu1 %v142_v22, %s1456_s14  ;;  %v1162_v34 = vld [vmem:[%s2707_s0 + $0x7] sm:$0x1]  }
   0xa   :  { %v96_v23 = vsel %vm64_vm1, %v1173_v15, %v92_v19  ;;  %v1190_v25 = vld [vmem:[%s2707_s0 + $0x2a7] ss:$-216 sm:%s157_s9]   ;;  %v155_v27 = vsel %vm52_vm7, %v1189_v24, %v1188_v21  ;;  %s240_s13 = smov 3  ;;  %v1221_v53 = vld [vmem:[%s2707_s0 + $0x1c6] ss:$-216 sm:%s276_s10]   ;;  %s471_s25 = smov 12 }
   0xb   :  { %v100_v26 = vsel %vm68_vm2, %v1174_v16, %v96_v23  ;;  %v160_v32 = vsel %vm159_vm8, %v1190_v25, %v155_v27  ;;  %v1163_v35 = vld [vmem:[%s2707_s0 + $0x26] sm:$0x2]   ;;  %v1223_v54 = vld [vmem:[%s2707_s0 + $0x52] sm:$0x10]   ;;  %v279_v56 = vsel %vm121_vm5, %v1221_v53, %v1220_v48  ;;  %v1212_v62 = vld [vmem:[%s2707_s0 + $0x2c] sm:$0x4]  }
   0xc   :  { %v104_v31 = vsel %vm72_vm3, %v1175_v17, %v100_v26  ;;  %v164_v37 = vsel %vm64_vm1, %v1191_v28, %v160_v32  ;;  %v53_v38 = vsel %vm52_vm7, %v1163_v35, %v1162_v34  ;;  %v1164_v39 = vld [vmem:[%s2707_s0 + $0x45] sm:$0x4]   ;;  %v1224_v57 = vld [vmem:[%s2707_s0 + $0x71] sm:$0x20]   ;;  %v283_v61 = vsel %vm60_vm0, %v1222_v49, %v279_v56  ;;  %v1213_v63 = vld [vmem:[%s2707_s0 + $0x4b] sm:$0x8]  }
   0xd   :  { %v108_v36 = vsel %vm76_vm4, %v1176_v20, %v104_v31  ;;  %v1165_v40 = vld [vmem:[%s2707_s0 + $0x64] sm:$0x8]   ;;  %v168_v42 = vsel %vm68_vm2, %v1192_v29, %v164_v37  ;;  %v57_v43 = vsel %vm56_vm6, %v1164_v39, %v53_v38  ;;  %v1225_v58 = vld [vmem:[%s2707_s0 + $0x90] sm:$0x40]   ;;  %v1214_v0 = vld [vmem:[%s2707_s0 + $0x6a] sm:$0x10]   ;;  %v287_v2 = vsel %vm64_vm1, %v1223_v54, %v283_v61 }
   0xe   :  { %v1166_v41 = vld [vmem:[%s2707_s0 + $0x83] sm:$0x10]   ;;  %109 = vrot.lane.b32.xlu0 %v108_v36, %s1456_s14  ;;  %v172_v46 = vsel %vm72_vm3, %v1193_v30, %v168_v42  ;;  %v61_v47 = vsel %vm60_vm0, %v1165_v40, %v57_v43  ;;  %v1211_v59 = vld [vmem:[%s2707_s0 + $0x106] ss:$-248 sm:%s240_s13]   ;;  %v291_v6 = vsel %vm68_vm2, %v1224_v57, %v287_v2  ;;  %s1457_s18 = smov 96   ;;  %s433_s24 = smov 6 }
   0xf   :  { %v1167_v44 = vld [vmem:[%s2707_s0 + $0xa2] sm:$0x20]   ;;  %v176_v50 = vsel %vm76_vm4, %v1194_v33, %v172_v46  ;;  %v65_v51 = vsel %vm64_vm1, %v1166_v41, %v61_v47  ;;  %v1226_v3 = vld [vmem:[%s2707_s0 + $0xaf] sm:$0x80]   ;;  %v245_v4 = vsel %vm56_vm6, %v1212_v62, %v1211_v59  ;;  %v1215_v5 = vld [vmem:[%s2707_s0 + $0x89] sm:$0x20]   ;;  %v295_v11 = vsel %vm72_vm3, %v1225_v58, %v291_v6 }
  0x10   :  { %v1168_v45 = vld [vmem:[%s2707_s0 + $0xc1] sm:$0x40]   ;;  %v69_v55 = vsel %vm68_vm2, %v1167_v44, %v65_v51  ;;  %v249_v7 = vsel %vm60_vm0, %v1213_v63, %v245_v4  ;;  %v1244_v8 = vld [vmem:[%s2707_s0 + $0x5] sm:$0x1]   ;;  %v1216_v13 = vld [vmem:[%s2707_s0 + $0xa8] sm:$0x40]   ;;  %v299_v22 = vsel %vm76_vm4, %v1226_v3, %v295_v11 }
  0x11   :  { %v1169_v52 = vld [vmem:[%s2707_s0 + $0xe0] sm:$0x80]   ;;  %v73_v60 = vsel %vm72_vm3, %v1168_v45, %v69_v55  ;;  %177 = vrot.lane.b32.xlu1 %v176_v50, %s1456_s14  ;;  %v1245_v9 = vld [vmem:[%s2707_s0 + $0x24] sm:$0x2]   ;;  %v253_v12 = vsel %vm64_vm1, %v1214_v0, %v249_v7  ;;  %v1217_v19 = vld [vmem:[%s2707_s0 + $0xc7] sm:$0x80]  }
  0x12   :  { %v77_v1 = vsel %vm76_vm4, %v1169_v52, %v73_v60  ;;  %v1246_v10 = vld [vmem:[%s2707_s0 + $0x43] sm:$0x4]   ;;  %v367_v14 = vsel %vm52_vm7, %v1245_v9, %v1244_v8  ;;  %v257_v17 = vsel %vm68_vm2, %v1215_v5, %v253_v12  ;;  %v1238_v26 = vld [vmem:[%s2707_s0 + $0x11e] sm:$0x1]   ;;  %v1197_v27 = vld [vmem:[%s2707_s0 + $0x11f] sm:$0x1]  }
  0x13   :  { %v1247_v15 = vld [vmem:[%s2707_s0 + $0x62] sm:$0x8]   ;;  %v371_v18 = vsel %vm56_vm6, %v1246_v10, %v367_v14  ;;  %v261_v23 = vsel %vm72_vm3, %v1216_v13, %v257_v17  ;;  %v1198_v28 = vld [vmem:[%s2707_s0 + $0xbe] sm:$0x2]   ;;  %v1270_v32 = vld [vmem:[%s2707_s0 + $0x115] sm:$0x1]  }
  0x14   :  { %v1248_v16 = vld [vmem:[%s2707_s0 + $0x81] sm:$0x10]   ;;  %v375_v20 = vsel %vm60_vm0, %v1247_v15, %v371_v18  ;;  %v189_v29 = vsel %vm52_vm7, %v1198_v28, %v1197_v27  ;;  %v1199_v30 = vld [vmem:[%s2707_s0 + $0xdd] sm:$0x4]   ;;  %v1239_v34 = vld [vmem:[%s2707_s0 + $0xbd] sm:$0x2]   ;;  %v265_v38 = vsel %vm76_vm4, %v1217_v19, %v261_v23 }
  0x15   :  { %v1249_v21 = vld [vmem:[%s2707_s0 + $0xa0] sm:$0x20]   ;;  %v379_v24 = vsel %vm64_vm1, %v1248_v16, %v375_v20  ;;  %v1200_v31 = vld [vmem:[%s2707_s0 + $0xfc] sm:$0x8]   ;;  %v193_v35 = vsel %vm56_vm6, %v1199_v30, %v189_v29  ;;  %v1271_v36 = vld [vmem:[%s2707_s0 + $0xd4] sm:$0x2]   ;;  %v346_v47 = vsel %vm52_vm7, %v1239_v34, %v1238_v26 }
  0x16   :  { %78 = vrot.lane.b32.xlu0 %v77_v1, %s1456_s14  ;;  %v1250_v25 = vld [vmem:[%s2707_s0 + $0xbf] sm:$0x40]   ;;  %v383_v33 = vsel %vm68_vm2, %v1249_v21, %v379_v24  ;;  %v197_v40 = vsel %vm60_vm0, %v1200_v31, %v193_v35  ;;  %v469_v41 = vsel %vm52_vm7, %v1271_v36, %v1270_v32  ;;  %v1273_v42 = vld [vmem:[%s2707_s0 + $0x39] sm:$0x10]   ;;  %v1261_v44 = vld [vmem:[%s2707_s0 + $0x10d] sm:$0x1]  }
  0x17   :  { %v1272_v37 = vld [vmem:[%s2707_s0 + $0x2a5] ss:$-216 sm:%s471_s25]   ;;  %198 = vrot.lane.b32.xlu2 %v197_v40, %s1456_s14  ;;  %v387_v46 = vsel %vm72_vm3, %v1250_v25, %v383_v33  ;;  %v1240_v48 = vld [vmem:[%s2707_s0 + $0xdc] sm:$0x4]   ;;  %s554_s25 = smov 3  ;;  %s1458_s5 = smov 80  }
  0x18   :  { %v1251_v39 = vld [vmem:[%s2707_s0 + $0xde] sm:$0x80]   ;;  %v474_v43 = vsel %vm159_vm8, %v1272_v37, %v469_v41  ;;  %v1263_v45 = vld [vmem:[%s2707_s0 + $0x32] sm:$0x8]   ;;  %v1241_v50 = vld [vmem:[%s2707_s0 + $0xfb] sm:$0x8]   ;;  %v350_v61 = vsel %vm56_vm6, %v1240_v48, %v346_v47 }
  0x19   :  { %300 = vrot.lane.b32.xlu1 %v299_v22, %s1457_s18  ;;  %v1262_v49 = vld [vmem:[%s2707_s0 + $0x1c5] ss:$-216 sm:%s433_s24]   ;;  %v1203_v54 = vld [vmem:[%s2707_s0 + $0x6] sm:$0x1]   ;;  %v478_v55 = vsel %vm64_vm1, %v1273_v42, %v474_v43  ;;  %v391_v60 = vsel %vm76_vm4, %v1251_v39, %v387_v46  ;;  %v354_v11 = vsel %vm60_vm0, %v1241_v50, %v350_v61  ;;  %s314_s10 = smov 12  ;;  %s628_s20 = smov 12 }
  0x1a   :  { %v1274_v51 = vld [vmem:[%s2707_s0 + $0x58] sm:$0x20]   ;;  %v436_v52 = vsel %vm121_vm5, %v1262_v49, %v1261_v44  ;;  %v1264_v53 = vld [vmem:[%s2707_s0 + $0x51] sm:$0x10]   ;;  %v1204_v57 = vld [vmem:[%s2707_s0 + $0x25] sm:$0x2]  }
  0x1b   :  { %v440_v56 = vsel %vm60_vm0, %v1263_v45, %v436_v52  ;;  %v1205_v58 = vld [vmem:[%s2707_s0 + $0x44] sm:$0x4]   ;;  %v1275_v62 = vld [vmem:[%s2707_s0 + $0x77] sm:$0x40]   ;;  %v1265_v63 = vld [vmem:[%s2707_s0 + $0x70] sm:$0x20]   ;;  %v210_v0 = vsel %vm52_vm7, %v1204_v57, %v1203_v54  ;;  %v482_v5 = vsel %vm68_vm2, %v1274_v51, %v478_v55 }
  0x1c   :  { %v1206_v59 = vld [vmem:[%s2707_s0 + $0x63] sm:$0x8]   ;;  %v214_v2 = vsel %vm56_vm6, %v1205_v58, %v210_v0  ;;  %v1294_v4 = vld [vmem:[%s2707_s0 + $0x2a] sm:$0x4]   ;;  %v444_v6 = vsel %vm64_vm1, %v1264_v53, %v440_v56  ;;  %v1285_v18 = vld [vmem:[%s2707_s0 + $0x4] sm:$0x1]   ;;  %v486_v21 = vsel %vm72_vm3, %v1275_v62, %v482_v5 }
  0x1d   :  { %v1207_v1 = vld [vmem:[%s2707_s0 + $0x82] sm:$0x10]   ;;  %v218_v7 = vsel %vm60_vm0, %v1206_v59, %v214_v2  ;;  %v1293_v9 = vld [vmem:[%s2707_s0 + $0x104] ss:$-248 sm:%s554_s25]   ;;  %v1276_v22 = vld [vmem:[%s2707_s0 + $0x96] sm:$0x80]   ;;  %v448_v23 = vsel %vm68_vm2, %v1265_v63, %v444_v6 }
  0x1e   :  { %266 = vrot.lane.b32.xlu0 %v265_v38, %s1457_s18  ;;  %v1208_v3 = vld [vmem:[%s2707_s0 + $0xa1] sm:$0x20]   ;;  %v1295_v10 = vld [vmem:[%s2707_s0 + $0x49] sm:$0x8]   ;;  %v222_v12 = vsel %vm64_vm1, %v1207_v1, %v218_v7  ;;  %v559_v14 = vsel %vm56_vm6, %v1294_v4, %v1293_v9  ;;  %v1286_v19 = vld [vmem:[%s2707_s0 + $0x23] sm:$0x2]   ;;  %v490_v38 = vsel %vm76_vm4, %v1276_v22, %v486_v21 }
  0x1f   :  { %v1209_v8 = vld [vmem:[%s2707_s0 + $0xc0] sm:$0x40]   ;;  %v1296_v15 = vld [vmem:[%s2707_s0 + $0x68] sm:$0x10]   ;;  %v226_v16 = vsel %vm68_vm2, %v1208_v3, %v222_v12  ;;  %v563_v17 = vsel %vm60_vm0, %v1295_v10, %v559_v14  ;;  %v1287_v20 = vld [vmem:[%s2707_s0 + $0x42] sm:$0x4]   ;;  %v524_v26 = vsel %vm52_vm7, %v1286_v19, %v1285_v18 }
  0x20   :  { %v1210_v13 = vld [vmem:[%s2707_s0 + $0xdf] sm:$0x80]   ;;  %v1266_v24 = vld [vmem:[%s2707_s0 + $0x8f] sm:$0x40]   ;;  %v230_v25 = vsel %vm72_vm3, %v1209_v8, %v226_v16  ;;  %v1288_v27 = vld [vmem:[%s2707_s0 + $0x61] sm:$0x8]   ;;  %v528_v31 = vsel %vm56_vm6, %v1287_v20, %v524_v26  ;;  %v567_v34 = vsel %vm64_vm1, %v1296_v15, %v563_v17 }
  0x21   :  { %392 = vrot.lane.b32.xlu1 %v391_v60, %s1458_s5  ;;  %v1267_v28 = vld [vmem:[%s2707_s0 + $0xae] sm:$0x80]   ;;  %v234_v29 = vsel %vm76_vm4, %v1210_v13, %v230_v25  ;;  %v1297_v30 = vld [vmem:[%s2707_s0 + $0x87] sm:$0x20]   ;;  %v1289_v32 = vld [vmem:[%s2707_s0 + $0x80] sm:$0x10]   ;;  %v532_v35 = vsel %vm60_vm0, %v1288_v27, %v528_v31  ;;  %v452_v39 = vsel %vm72_vm3, %v1266_v24, %v448_v23 }
  0x22   :  { %v1229_v33 = vld [vmem:[%s2707_s0 + $0x116] sm:$0x1]   ;;  %235 = vrot.lane.b32.xlu2 %v234_v29, %s1457_s18  ;;  %v1298_v40 = vld [vmem:[%s2707_s0 + $0xa6] sm:$0x40]   ;;  %v1232_v42 = vld [vmem:[%s2707_s0 + $0x3a] sm:$0x10]   ;;  %v571_v47 = vsel %vm68_vm2, %v1297_v30, %v567_v34  ;;  %v536_v48 = vsel %vm64_vm1, %v1289_v32, %v532_v35  ;;  %v456_v52 = vsel %vm76_vm4, %v1267_v28, %v452_v39 }
  0x23   :  { %v1230_v36 = vld [vmem:[%s2707_s0 + $0xd5] sm:$0x2]   ;;  %v1233_v43 = vld [vmem:[%s2707_s0 + $0x59] sm:$0x20]   ;;  %v1290_v44 = vld [vmem:[%s2707_s0 + $0x9f] sm:$0x20]   ;;  %v575_v60 = vsel %vm72_vm3, %v1298_v40, %v571_v47 }
  0x24   :  { %v1231_v37 = vld [vmem:[%s2707_s0 + $0x2a6] ss:$-216 sm:%s314_s10]   ;;  %v312_v41 = vsel %vm52_vm7, %v1230_v36, %v1229_v33  ;;  %v1311_v51 = vld [vmem:[%s2707_s0 + $0x114] sm:$0x1]   ;;  %s397_s24 = smov 3  ;;  %v540_v61 = vsel %vm68_vm2, %v1290_v44, %v536_v48  ;;  %s747_s13 = smov 6 }
  0x25   :  { %v317_v45 = vsel %vm159_vm8, %v1231_v37, %v312_v41  ;;  %v1234_v46 = vld [vmem:[%s2707_s0 + $0x78] sm:$0x40]   ;;  %v1312_v54 = vld [vmem:[%s2707_s0 + $0xd3] sm:$0x2]   ;;  %v1299_v55 = vld [vmem:[%s2707_s0 + $0xc5] sm:$0x80]  }
  0x26   :  { %355 = vrot.lane.b32.xlu0 %v354_v11, %s1457_s18  ;;  %v321_v49 = vsel %vm64_vm1, %v1232_v42, %v317_v45  ;;  %v1235_v50 = vld [vmem:[%s2707_s0 + $0x97] sm:$0x80]   ;;  %v1291_v56 = vld [vmem:[%s2707_s0 + $0xbe] sm:$0x40]   ;;  %v626_v58 = vsel %vm52_vm7, %v1312_v54, %v1311_v51  ;;  %v1320_v63 = vld [vmem:[%s2707_s0 + $0x11c] sm:$0x1]   ;;  %v579_v12 = vsel %vm76_vm4, %v1299_v55, %v575_v60 }
  0x27   :  { %v325_v53 = vsel %vm68_vm2, %v1233_v43, %v321_v49  ;;  %v1313_v59 = vld [vmem:[%s2707_s0 + $0x2a4] ss:$-216 sm:%s628_s20]   ;;  %v1252_v1 = vld [vmem:[%s2707_s0 + $0x105] ss:$-248 sm:%s397_s24]   ;;  %v544_v13 = vsel %vm72_vm3, %v1291_v56, %v540_v61  ;;  %s711_s10 = smov 3  ;;  %s590_s12 = smov 6 }
  0x28   :  { %v329_v57 = vsel %vm72_vm3, %v1234_v46, %v325_v53  ;;  %v1321_v0 = vld [vmem:[%s2707_s0 + $0xbb] sm:$0x2]   ;;  %v1253_v2 = vld [vmem:[%s2707_s0 + $0x2b] sm:$0x4]   ;;  %v631_v7 = vsel %vm159_vm8, %v1313_v59, %v626_v58  ;;  %v1343_v11 = vld [vmem:[%s2707_s0 + $0x10b] sm:$0x1]  }
  0x29   :  { %491 = vrot.lane.b32.xlu1 %v490_v38, %s1458_s5  ;;  %v333_v62 = vsel %vm76_vm4, %v1235_v50, %v329_v57  ;;  %v402_v3 = vsel %vm56_vm6, %v1253_v2, %v1252_v1  ;;  %v1254_v4 = vld [vmem:[%s2707_s0 + $0x4a] sm:$0x8]   ;;  %v1314_v8 = vld [vmem:[%s2707_s0 + $0x38] sm:$0x10]   ;;  %v1292_v14 = vld [vmem:[%s2707_s0 + $0xdd] sm:$0x80]   ;;  %v660_v22 = vsel %vm52_vm7, %v1321_v0, %v1320_v63 }
  0x2a   :  { %v1255_v5 = vld [vmem:[%s2707_s0 + $0x69] sm:$0x10]   ;;  %334 = vrot.lane.b32.xlu2 %v333_v62, %s1457_s18  ;;  %v406_v9 = vsel %vm60_vm0, %v1254_v4, %v402_v3  ;;  %v1344_v16 = vld [vmem:[%s2707_s0 + $0x1c3] ss:$-216 sm:%s747_s13]   ;;  %v635_v23 = vsel %vm64_vm1, %v1314_v8, %v631_v7  ;;  %s1459_s13 = smov 64   ;;  %v548_v27 = vsel %vm76_vm4, %v1292_v14, %v544_v13  ;;  %s904_s23 = smov 6 }
  0x2b   :  { %v1256_v6 = vld [vmem:[%s2707_s0 + $0x88] sm:$0x20]   ;;  %v410_v15 = vsel %vm64_vm1, %v1255_v5, %v406_v9  ;;  %v1322_v17 = vld [vmem:[%s2707_s0 + $0xda] sm:$0x4]   ;;  %v750_v20 = vsel %vm121_vm5, %v1344_v16, %v1343_v11  ;;  %v1345_v21 = vld [vmem:[%s2707_s0 + $0x30] sm:$0x8]  }
  0x2c   :  { %v1257_v10 = vld [vmem:[%s2707_s0 + $0xa7] sm:$0x40]   ;;  %v414_v18 = vsel %vm68_vm2, %v1256_v6, %v410_v15  ;;  %v1315_v24 = vld [vmem:[%s2707_s0 + $0x57] sm:$0x20]   ;;  %v1335_v26 = vld [vmem:[%s2707_s0 + $0x29] sm:$0x4]   ;;  %v754_v32 = vsel %vm60_vm0, %v1345_v21, %v750_v20  ;;  %v664_v36 = vsel %vm56_vm6, %v1322_v17, %v660_v22 }
  0x2d   :  { %v1258_v19 = vld [vmem:[%s2707_s0 + $0xc6] sm:$0x80]   ;;  %v418_v25 = vsel %vm72_vm3, %v1257_v10, %v414_v18  ;;  %v1323_v28 = vld [vmem:[%s2707_s0 + $0xf9] sm:$0x8]   ;;  %v1334_v29 = vld [vmem:[%s2707_s0 + $0x103] ss:$-248 sm:%s711_s10]   ;;  %v639_v37 = vsel %vm68_vm2, %v1315_v24, %v635_v23 }
  0x2e   :  { %457 = vrot.lane.b32.xlu0 %v456_v52, %s1458_s5  ;;  %v1316_v30 = vld [vmem:[%s2707_s0 + $0x76] sm:$0x40]   ;;  %v422_v31 = vsel %vm76_vm4, %v1258_v19, %v418_v25  ;;  %v1346_v33 = vld [vmem:[%s2707_s0 + $0x4f] sm:$0x10]   ;;  %v716_v34 = vsel %vm56_vm6, %v1335_v26, %v1334_v29  ;;  %v1336_v35 = vld [vmem:[%s2707_s0 + $0x48] sm:$0x8]   ;;  %v668_v50 = vsel %vm60_vm0, %v1323_v28, %v664_v36 }
  0x2f   :  { %v1347_v38 = vld [vmem:[%s2707_s0 + $0x6e] sm:$0x20]   ;;  %v1279_v39 = vld [vmem:[%s2707_s0 + $0x11d] sm:$0x1]   ;;  %v1367_v43 = vld [vmem:[%s2707_s0 + $0x2] sm:$0x1]   ;;  %v758_v45 = vsel %vm64_vm1, %v1346_v33, %v754_v32  ;;  %v720_v46 = vsel %vm60_vm0, %v1336_v35, %v716_v34  ;;  %v643_v51 = vsel %vm72_vm3, %v1316_v30, %v639_v37 }
  0x30   :  { %v1280_v40 = vld [vmem:[%s2707_s0 + $0xbc] sm:$0x2]   ;;  %v1368_v44 = vld [vmem:[%s2707_s0 + $0x21] sm:$0x2]   ;;  %v1337_v47 = vld [vmem:[%s2707_s0 + $0x67] sm:$0x10]   ;;  %v762_v58 = vsel %vm68_vm2, %v1347_v38, %v758_v45 }
  0x31   :  { %580 = vrot.lane.b32.xlu1 %v579_v12, %s1459_s13  ;;  %v503_v41 = vsel %vm52_vm7, %v1280_v40, %v1279_v39  ;;  %v1281_v42 = vld [vmem:[%s2707_s0 + $0xdb] sm:$0x4]   ;;  %v838_v48 = vsel %vm52_vm7, %v1368_v44, %v1367_v43  ;;  %v1369_v49 = vld [vmem:[%s2707_s0 + $0x40] sm:$0x4]   ;;  %v1317_v52 = vld [vmem:[%s2707_s0 + $0x95] sm:$0x80]   ;;  %v724_v59 = vsel %vm64_vm1, %v1337_v47, %v720_v46 }
  0x32   :  { %423 = vrot.lane.b32.xlu2 %v422_v31, %s1458_s5  ;;  %v1348_v53 = vld [vmem:[%s2707_s0 + $0x8d] sm:$0x40]   ;;  %v507_v54 = vsel %vm56_vm6, %v1281_v42, %v503_v41  ;;  %v1282_v55 = vld [vmem:[%s2707_s0 + $0xfa] sm:$0x8]   ;;  %v842_v56 = vsel %vm56_vm6, %v1369_v49, %v838_v48  ;;  %v1370_v57 = vld [vmem:[%s2707_s0 + $0x5f] sm:$0x8]   ;;  %v647_v63 = vsel %vm76_vm4, %v1317_v52, %v643_v51 }
  0x33   :  { %v1338_v60 = vld [vmem:[%s2707_s0 + $0x86] sm:$0x20]   ;;  %v1302_v61 = vld [vmem:[%s2707_s0 + $0x10c] sm:$0x1]   ;;  %v1304_v1 = vld [vmem:[%s2707_s0 + $0x31] sm:$0x8]   ;;  %v511_v4 = vsel %vm60_vm0, %v1282_v55, %v507_v54  ;;  %v846_v5 = vsel %vm60_vm0, %v1370_v57, %v842_v56  ;;  %v766_v8 = vsel %vm72_vm3, %v1348_v53, %v762_v58 }
  0x34   :  { %v1303_v62 = vld [vmem:[%s2707_s0 + $0x1c4] ss:$-216 sm:%s590_s12]   ;;  %v1371_v6 = vld [vmem:[%s2707_s0 + $0x7e] sm:$0x10]   ;;  %v1349_v9 = vld [vmem:[%s2707_s0 + $0xac] sm:$0x80]   ;;  %v728_v10 = vsel %vm68_vm2, %v1338_v60, %v724_v59 }
  0x35   :  { %v593_v0 = vsel %vm121_vm5, %v1303_v62, %v1302_v61  ;;  %v1305_v2 = vld [vmem:[%s2707_s0 + $0x50] sm:$0x10]   ;;  %v1339_v11 = vld [vmem:[%s2707_s0 + $0xa5] sm:$0x40]   ;;  %s942_s12 = smov 12  ;;  %v850_v18 = vsel %vm64_vm1, %v1371_v6, %v846_v5  ;;  %v770_v20 = vsel %vm76_vm4, %v1349_v9, %v766_v8  ;;  %s1460_s21 = smov 48  }
  0x36   :  { %549 = vrot.lane.b32.xlu0 %v548_v27, %s1459_s13  ;;  %v1306_v3 = vld [vmem:[%s2707_s0 + $0x6f] sm:$0x20]   ;;  %v597_v7 = vsel %vm60_vm0, %v1304_v1, %v593_v0  ;;  %v1393_v15 = vld [vmem:[%s2707_s0 + $0x112] sm:$0x1]   ;;  %v1340_v17 = vld [vmem:[%s2707_s0 + $0xc4] sm:$0x80]   ;;  %v732_v21 = vsel %vm72_vm3, %v1339_v11, %v728_v10 }
  0x37   :  { %v601_v12 = vsel %vm64_vm1, %v1305_v2, %v597_v7  ;;  %v1307_v14 = vld [vmem:[%s2707_s0 + $0x8e] sm:$0x40]   ;;  %v1394_v16 = vld [vmem:[%s2707_s0 + $0xd1] sm:$0x2]   ;;  %v1372_v19 = vld [vmem:[%s2707_s0 + $0x9d] sm:$0x20]   ;;  %v736_v36 = vsel %vm76_vm4, %v1340_v17, %v732_v21 }
  0x38   :  { %v605_v13 = vsel %vm68_vm2, %v1306_v3, %v601_v12  ;;  %v1373_v22 = vld [vmem:[%s2707_s0 + $0xbc] sm:$0x40]   ;;  %v1361_v23 = vld [vmem:[%s2707_s0 + $0x11b] sm:$0x1]   ;;  %v1308_v25 = vld [vmem:[%s2707_s0 + $0xad] sm:$0x80]   ;;  %v940_v28 = vsel %vm52_vm7, %v1394_v16, %v1393_v15  ;;  %v854_v32 = vsel %vm68_vm2, %v1372_v19, %v850_v18 }
  0x39   :  { %669 = vrot.lane.b32.xlu1 %v668_v50, %s1459_s13  ;;  %v1362_v24 = vld [vmem:[%s2707_s0 + $0xba] sm:$0x2]   ;;  %v1395_v26 = vld [vmem:[%s2707_s0 + $0x2a2] ss:$-216 sm:%s942_s12]   ;;  %v609_v27 = vsel %vm72_vm3, %v1307_v14, %v605_v13  ;;  %s1025_s2 = smov 3  ;;  %v858_v48 = vsel %vm72_vm3, %v1373_v22, %v854_v32  ;;  %s785_s22 = smov 12 }
  0x3a   :  { %512 = vrot.lane.b32.xlu2 %v511_v4, %s1458_s5  ;;  %v1384_v29 = vld [vmem:[%s2707_s0 + $0x10a] sm:$0x1]   ;;  %v1326_v31 = vld [vmem:[%s2707_s0 + $0x3] sm:$0x1]   ;;  %v1374_v37 = vld [vmem:[%s2707_s0 + $0xdb] sm:$0x80]   ;;  %v613_v42 = vsel %vm76_vm4, %v1308_v25, %v609_v27  ;;  %v945_v43 = vsel %vm159_vm8, %v1395_v26, %v940_v28  ;;  %v817_v49 = vsel %vm52_vm7, %v1362_v24, %v1361_v23 }
  0x3b   :  { %v1385_v30 = vld [vmem:[%s2707_s0 + $0x1c2] ss:$-216 sm:%s904_s23]   ;;  %v1327_v33 = vld [vmem:[%s2707_s0 + $0x22] sm:$0x2]   ;;  %v1363_v38 = vld [vmem:[%s2707_s0 + $0xd9] sm:$0x4]  }
  0x3c   :  { %v1328_v34 = vld [vmem:[%s2707_s0 + $0x41] sm:$0x4]   ;;  %v1396_v39 = vld [vmem:[%s2707_s0 + $0x36] sm:$0x10]   ;;  %v681_v40 = vsel %vm52_vm7, %v1327_v33, %v1326_v31  ;;  %v907_v44 = vsel %vm121_vm5, %v1385_v30, %v1384_v29  ;;  %v1386_v45 = vld [vmem:[%s2707_s0 + $0x2f] sm:$0x8]   ;;  %v821_v0 = vsel %vm56_vm6, %v1363_v38, %v817_v49 }
  0x3d   :  { %v1329_v35 = vld [vmem:[%s2707_s0 + $0x60] sm:$0x8]   ;;  %v685_v46 = vsel %vm56_vm6, %v1328_v34, %v681_v40  ;;  %v1397_v50 = vld [vmem:[%s2707_s0 + $0x55] sm:$0x20]   ;;  %v1387_v51 = vld [vmem:[%s2707_s0 + $0x4e] sm:$0x10]   ;;  %v949_v58 = vsel %vm64_vm1, %v1396_v39, %v945_v43  ;;  %v911_v59 = vsel %vm60_vm0, %v1386_v45, %v907_v44 }
  0x3e   :  { %648 = vrot.lane.b32.xlu0 %v647_v63, %s1459_s13  ;;  %v1330_v41 = vld [vmem:[%s2707_s0 + $0x7f] sm:$0x10]   ;;  %v689_v52 = vsel %vm60_vm0, %v1329_v35, %v685_v46  ;;  %v1364_v54 = vld [vmem:[%s2707_s0 + $0xf8] sm:$0x8]   ;;  %v1417_v57 = vld [vmem:[%s2707_s0 + $0x27] sm:$0x4]   ;;  %v862_v63 = vsel %vm76_vm4, %v1374_v37, %v858_v48  ;;  %v953_v10 = vsel %vm68_vm2, %v1397_v50, %v949_v58  ;;  %v915_v11 = vsel %vm64_vm1, %v1387_v51, %v911_v59 }
  0x3f   :  { %v1331_v47 = vld [vmem:[%s2707_s0 + $0x9e] sm:$0x20]   ;;  %v693_v55 = vsel %vm64_vm1, %v1330_v41, %v689_v52  ;;  %v1416_v56 = vld [vmem:[%s2707_s0 + $0x101] ss:$-248 sm:%s1025_s2]   ;;  %v1398_v1 = vld [vmem:[%s2707_s0 + $0x74] sm:$0x40]   ;;  %v825_v15 = vsel %vm60_vm0, %v1364_v54, %v821_v0 }
  0x40   :  { %v1332_v53 = vld [vmem:[%s2707_s0 + $0xbd] sm:$0x40]   ;;  %v697_v60 = vsel %vm68_vm2, %v1331_v47, %v693_v55  ;;  %v1408_v61 = vld [vmem:[%s2707_s0 + $0x1] sm:$0x1]   ;;  %v1388_v2 = vld [vmem:[%s2707_s0 + $0x6d] sm:$0x20]   ;;  %v1030_v5 = vsel %vm56_vm6, %v1417_v57, %v1416_v56  ;;  %v957_v24 = vsel %vm72_vm3, %v1398_v1, %v953_v10 }
  0x41   :  { %771 = vrot.lane.b32.xlu1 %v770_v20, %s1460_s21  ;;  %v1409_v62 = vld [vmem:[%s2707_s0 + $0x20] sm:$0x2]   ;;  %v1333_v3 = vld [vmem:[%s2707_s0 + $0xdc] sm:$0x80]   ;;  %v701_v4 = vsel %vm72_vm3, %v1332_v53, %v697_v60  ;;  %v1418_v6 = vld [vmem:[%s2707_s0 + $0x46] sm:$0x8]   ;;  %v919_v26 = vsel %vm68_vm2, %v1388_v2, %v915_v11 }
  0x42   :  { %614 = vrot.lane.b32.xlu2 %v613_v42, %s1459_s13  ;;  %v995_v7 = vsel %vm52_vm7, %v1409_v62, %v1408_v61  ;;  %v1410_v8 = vld [vmem:[%s2707_s0 + $0x3f] sm:$0x4]   ;;  %v1352_v9 = vld [vmem:[%s2707_s0 + $0x113] sm:$0x1]   ;;  %v1355_v14 = vld [vmem:[%s2707_s0 + $0x37] sm:$0x10]   ;;  %v705_v18 = vsel %vm76_vm4, %v1333_v3, %v701_v4  ;;  %v1034_v19 = vsel %vm60_vm0, %v1418_v6, %v1030_v5 }
  0x43   :  { %v1353_v12 = vld [vmem:[%s2707_s0 + $0xd2] sm:$0x2]   ;;  %s1461_s11 = smov 32   ;;  %v1356_v17 = vld [vmem:[%s2707_s0 + $0x56] sm:$0x20]   ;;  %v999_v21 = vsel %vm56_vm6, %v1410_v8, %v995_v7  ;;  %s868_s28 = smov 3 }
  0x44   :  { %v1354_v13 = vld [vmem:[%s2707_s0 + $0x2a3] ss:$-216 sm:%s785_s22]   ;;  %v783_v16 = vsel %vm52_vm7, %v1353_v12, %v1352_v9  ;;  %v1419_v20 = vld [vmem:[%s2707_s0 + $0x65] sm:$0x10]   ;;  %v1411_v22 = vld [vmem:[%s2707_s0 + $0x5e] sm:$0x8]  }
  0x45   :  { %v788_v23 = vsel %vm159_vm8, %v1354_v13, %v783_v16  ;;  %v1399_v25 = vld [vmem:[%s2707_s0 + $0x93] sm:$0x80]   ;;  %v1389_v27 = vld [vmem:[%s2707_s0 + $0x8c] sm:$0x40]   ;;  %v1420_v30 = vld [vmem:[%s2707_s0 + $0x84] sm:$0x20]   ;;  %v1038_v33 = vsel %vm64_vm1, %v1419_v20, %v1034_v19  ;;  %v1003_v34 = vsel %vm60_vm0, %v1411_v22, %v999_v21 }
  0x46   :  { %737 = vrot.lane.b32.xlu0 %v736_v36, %s1460_s21  ;;  %v792_v28 = vsel %vm64_vm1, %v1355_v14, %v788_v23  ;;  %v1390_v29 = vld [vmem:[%s2707_s0 + $0xab] sm:$0x80]   ;;  %v1357_v32 = vld [vmem:[%s2707_s0 + $0x75] sm:$0x40]   ;;  %v1412_v35 = vld [vmem:[%s2707_s0 + $0x7d] sm:$0x10]   ;;  %v961_v38 = vsel %vm76_vm4, %v1399_v25, %v957_v24  ;;  %v923_v39 = vsel %vm72_vm3, %v1389_v27, %v919_v26  ;;  %v1042_v47 = vsel %vm68_vm2, %v1420_v30, %v1038_v33 }
  0x47   :  { %v796_v31 = vsel %vm68_vm2, %v1356_v17, %v792_v28  ;;  %v1358_v36 = vld [vmem:[%s2707_s0 + $0x94] sm:$0x80]   ;;  %v1434_v37 = vld [vmem:[%s2707_s0 + $0x111] sm:$0x1]   ;;  %v1375_v41 = vld [vmem:[%s2707_s0 + $0x102] ss:$-248 sm:%s868_s28]   ;;  %v1007_v49 = vsel %vm64_vm1, %v1412_v35, %v1003_v34  ;;  %v927_v52 = vsel %vm76_vm4, %v1390_v29, %v923_v39 }
  0x48   :  { %v1435_v40 = vld [vmem:[%s2707_s0 + $0xd0] sm:$0x2]   ;;  %v1376_v42 = vld [vmem:[%s2707_s0 + $0x28] sm:$0x4]   ;;  %v800_v43 = vsel %vm72_vm3, %v1357_v32, %v796_v31  ;;  %s1099_s16 = smov 12  ;;  %s1061_s10 = smov 6 }
  0x49   :  { %863 = vrot.lane.b32.xlu1 %v862_v63, %s1461_s11  ;;  %v873_v44 = vsel %vm56_vm6, %v1376_v42, %v1375_v41  ;;  %v1377_v45 = vld [vmem:[%s2707_s0 + $0x47] sm:$0x8]   ;;  %v1421_v48 = vld [vmem:[%s2707_s0 + $0xa3] sm:$0x40]   ;;  %v1413_v50 = vld [vmem:[%s2707_s0 + $0x9c] sm:$0x20]   ;;  %v804_v55 = vsel %vm76_vm4, %v1358_v36, %v800_v43  ;;  %v1097_v56 = vsel %vm52_vm7, %v1435_v40, %v1434_v37 }
  0x4a   :  { %706 = vrot.lane.b32.xlu2 %v705_v18, %s1460_s21  ;;  %v1378_v46 = vld [vmem:[%s2707_s0 + $0x66] sm:$0x10]   ;;  %v877_v51 = vsel %vm60_vm0, %v1377_v45, %v873_v44  ;;  %v1436_v57 = vld [vmem:[%s2707_s0 + $0x2a1] ss:$-216 sm:%s1099_s16]   ;;  %v1046_v58 = vsel %vm72_vm3, %v1421_v48, %v1042_v47  ;;  %v1011_v60 = vsel %vm68_vm2, %v1413_v50, %v1007_v49  ;;  %s1462_s24 = smov 16   ;;  %vm4_vm9 = vcmask 1047556  }
  0x4b   :  { %v881_v53 = vsel %vm64_vm1, %v1378_v46, %v877_v51  ;;  %v1379_v54 = vld [vmem:[%s2707_s0 + $0x85] sm:$0x20]   ;;  %v1422_v59 = vld [vmem:[%s2707_s0 + $0xc2] sm:$0x80]   ;;  %v1414_v61 = vld [vmem:[%s2707_s0 + $0xbb] sm:$0x40]   ;;  %v1102_v2 = vsel %vm159_vm8, %v1436_v57, %v1097_v56 }
  0x4c   :  { %v1443_v62 = vld [vmem:[%s2707_s0 + $0x119] sm:$0x1]   ;;  %v885_v63 = vsel %vm68_vm2, %v1379_v54, %v881_v53  ;;  %v1380_v0 = vld [vmem:[%s2707_s0 + $0xa4] sm:$0x40]   ;;  %v1050_v4 = vsel %vm76_vm4, %v1422_v59, %v1046_v58  ;;  %v1015_v5 = vsel %vm72_vm3, %v1414_v61, %v1011_v60  ;;  %v1415_v6 = vld [vmem:[%s2707_s0 + $0xda] sm:$0x80]  }
  0x4d   :  { %v1444_v1 = vld [vmem:[%s2707_s0 + $0xb8] sm:$0x2]   ;;  %v889_v8 = vsel %vm72_vm3, %v1380_v0, %v885_v63  ;;  %v1381_v9 = vld [vmem:[%s2707_s0 + $0xc3] sm:$0x80]   ;;  %v1425_v13 = vld [vmem:[%s2707_s0 + $0x109] sm:$0x1]  }
  0x4e   :  { %826 = vrot.lane.b32.xlu0 %v825_v15, %s1460_s21  ;;  %v1437_v3 = vld [vmem:[%s2707_s0 + $0x35] sm:$0x10]   ;;  %v1131_v10 = vsel %vm52_vm7, %v1444_v1, %v1443_v62  ;;  %v1019_v15 = vsel %vm76_vm4, %v1415_v6, %v1015_v5  ;;  %v1402_v18 = vld [vmem:[%s2707_s0 + $0x11a] sm:$0x1]   ;;  %v893_v20 = vsel %vm76_vm4, %v1381_v9, %v889_v8  ;;  %v1427_v22 = vld [vmem:[%s2707_s0 + $0x2e] sm:$0x8]  }
  0x4f   :  { %v1445_v7 = vld [vmem:[%s2707_s0 + $0xd7] sm:$0x4]   ;;  %v1106_v11 = vsel %vm64_vm1, %v1437_v3, %v1102_v2  ;;  %v1403_v19 = vld [vmem:[%s2707_s0 + $0xb9] sm:$0x2]   ;;  %vm6_vm10 = vcmask 130048   ;;  %vm80_vm11 = vcmask 1048448  }
  0x50   :  { %v1438_v12 = vld [vmem:[%s2707_s0 + $0x54] sm:$0x20]   ;;  %v1404_v21 = vld [vmem:[%s2707_s0 + $0xd8] sm:$0x4]   ;;  %v1135_v23 = vsel %vm56_vm6, %v1445_v7, %v1131_v10  ;;  %v974_v29 = vsel %vm52_vm7, %v1403_v19, %v1402_v18  ;;  %v1428_v30 = vld [vmem:[%s2707_s0 + $0x4d] sm:$0x10]  }
  0x51   :  { %962 = vrot.lane.b32.xlu1 %v961_v38, %s1461_s11  ;;  %v1426_v14 = vld [vmem:[%s2707_s0 + $0x1c1] ss:$-216 sm:%s1061_s10]   ;;  %v1110_v24 = vsel %vm68_vm2, %v1438_v12, %v1106_v11  ;;  %v1156_v26 = vld [vmem:[%s2707_s0 + $0xc0] ss:$8 sm:$0xf]   ;;  %v978_v41 = vsel %vm56_vm6, %v1404_v21, %v974_v29  ;;  %vm237_vm12 = vcmask 917248  }
  0x52   :  { %805 = vrot.lane.b32.xlu2 %v804_v55, %s1460_s21  ;;  %v1446_v16 = vld [vmem:[%s2707_s0 + $0xf6] sm:$0x8]   ;;  %v1064_v25 = vsel %vm121_vm5, %v1426_v14, %v1425_v13  ;;  %v1157_v27 = vld [vmem:[%s2707_s0 + $0xc0] ss:$8 sm:$0xf0]   ;;  %vm394_vm13 = vcmask 786048  }
  0x53   :  { %v1439_v17 = vld [vmem:[%s2707_s0 + $0x73] sm:$0x40]   ;;  %v37_v31 = vsel %vm4_vm9, %v1157_v27, %v1156_v26  ;;  %v1160_v32 = vld [vmem:[%s2707_s0 + $0x100] ss:$8 sm:$0xf]   ;;  %v1139_v36 = vsel %vm60_vm0, %v1446_v16, %v1135_v23  ;;  %v1068_v38 = vsel %vm60_vm0, %v1427_v22, %v1064_v25  ;;  %vm551_vm14 = vcmask 654848  }
  0x54   :  { %v1440_v28 = vld [vmem:[%s2707_s0 + $0x92] sm:$0x80]   ;;  %v2_v33 = vld [vmem:[%s2707_s0] ss:$8 sm:$0xf]   ;;  %v1114_v37 = vsel %vm72_vm3, %v1439_v17, %v1110_v24  ;;  %v1072_v47 = vsel %vm64_vm1, %v1428_v30, %v1068_v38  ;;  %vm708_vm15 = vcmask 523648  }
  0x55   :  { %v1405_v34 = vld [vmem:[%s2707_s0 + $0xf7] sm:$0x8]   ;;  %1159 = vst.msk [vmem:[%s2708_s1 - $0x19] ss:$8 sm:$0xf0] %vm6_vm10, %v37_v31   ;;  %v1118_v46 = vsel %vm76_vm4, %v1440_v28, %v1114_v37  ;;  %vm1022_vm1 = vcmask 261248  }
  0x56   :  { %928 = vrot.lane.b32.xlu0 %v927_v52, %s1461_s11  ;;  %v3_v35 = vld [vmem:[%s2707_s0] ss:$8 sm:$0xf0]   ;;  %1161 = vst.msk [vmem:[%s2708_s1 + $0x20] ss:$8 sm:$0xf] %vm6_vm10, %v1160_v32   ;;  %v982_v49 = vsel %vm60_vm0, %v1405_v34, %v978_v41 }
  0x57   :  { %v5_v39 = vsel %vm4_vm9, %v3_v35, %v2_v33  ;;  %v1148_v40 = vld [vmem:[%s2707_s0 + $0x40] ss:$8 sm:$0xf]   ;;  %v1429_v42 = vld [vmem:[%s2707_s0 + $0x6c] sm:$0x20]   ;;  %vm865_vm0 = vcmask 392448  }
  0x58   :  { %1158 = vst.msk [vmem:[%s2708_s1 + $0x6] ss:$8 sm:$0xf] %vm6_vm10, %v37_v31   ;;  %v1149_v43 = vld [vmem:[%s2707_s0 + $0x40] ss:$8 sm:$0xf0]   ;;  %v1076_v51 = vsel %vm68_vm2, %v1429_v42, %v1072_v47 }
  0x59   :  { %1051 = vrot.lane.b32.xlu1 %v1050_v4, %s1462_s24  ;;  %7 = vst.msk [vmem:[%s2708_s1] ss:$8 sm:$0xf] %vm6_vm10, %v5_v39   ;;  %v15_v44 = vsel %vm4_vm9, %v1149_v43, %v1148_v40  ;;  %v1152_v45 = vld [vmem:[%s2707_s0 + $0x80] ss:$8 sm:$0xf]  }
  0x5a   :  { %894 = vrot.lane.b32.xlu2 %v893_v20, %s1461_s11  ;;  %1147 = vst.msk [vmem:[%s2708_s1 - $0x1f] ss:$8 sm:$0xf0] %vm6_vm10, %v5_v39   ;;  %v1153_v48 = vld [vmem:[%s2707_s0 + $0x80] ss:$8 sm:$0xf0]  }
  0x5b   :  { %1150 = vst.msk [vmem:[%s2708_s1 + $0x2] ss:$8 sm:$0xf] %vm6_vm10, %v15_v44   ;;  %v26_v50 = vsel %vm4_vm9, %v1153_v48, %v1152_v45  ;;  %v1430_v52 = vld [vmem:[%s2707_s0 + $0x8b] sm:$0x40]  }
  0x5c   :  { %1151 = vst.msk [vmem:[%s2708_s1 - $0x1d] ss:$8 sm:$0xf0] %vm6_vm10, %v15_v44   ;;  %v1080_v53 = vsel %vm72_vm3, %v1430_v52, %v1076_v51  ;;  %v1431_v54 = vld [vmem:[%s2707_s0 + $0xaa] sm:$0x80]  }
  0x5d   :  { %1154 = vst.msk [vmem:[%s2708_s1 + $0x4] ss:$8 sm:$0xf] %vm6_vm10, %v26_v50   ;;  %v1084_v55 = vsel %vm76_vm4, %v1431_v54, %v1080_v53 }
  0x5e   :  { %1020 = vrot.lane.b32.xlu0 %v1019_v15, %s1462_s24  ;;  %1155 = vst.msk [vmem:[%s2708_s1 - $0x1b] ss:$8 sm:$0xf0] %vm6_vm10, %v26_v50  }
  0x61   :  { %1140 = vrot.lane.b32.xlu1 %v1139_v36, %s1462_s24 }
  0x62   :  { %983 = vrot.lane.b32.xlu2 %v982_v49, %s1461_s11 }
  0x66   :  { %1119 = vrot.lane.b32.xlu0 %v1118_v46, %s1462_s24 }
  0x6a   :  { %1085 = vrot.lane.b32.xlu2 %v1084_v55, %s1462_s24 }
  0x71   :  { %v199_v56 = vpop.permute.xlu2 %198  }
  0x72   :  { %1201 = vst.msk [vmem:[%s2708_s1 + $0x38] ss:$-27 sm:$0x3] %vm80_vm11, %v199_v56  }
  0x73   :  { %1202 = vst.msk [vmem:[%s2708_s1 + $0x1c] sm:$0xc] %vm80_vm11, %v199_v56  }
  0x7b   :  { %v144_v57 = vpop.permute.xlu1 %143  }
  0x7c   :  { %1186 = vst.msk [vmem:[%s2708_s1 + $0x28] ss:$-25 sm:$0x3] %vm80_vm11, %v144_v57   ;;  %v236_v59 = vpop.permute.xlu2 %235  }
  0x7d   :  { %1187 = vst.msk [vmem:[%s2708_s1 + $0xe] sm:$0xfc] %vm80_vm11, %v144_v57  }
  0x80   :  { %v110_v58 = vpop.permute.xlu0 %109  }
  0x81   :  { %1177 = vst.msk [vmem:[%s2708_s1 + $0x20] ss:$-24 sm:$0x3] %vm80_vm11, %v110_v58  }
  0x82   :  { %1178 = vst.msk [vmem:[%s2708_s1 + $0x7] sm:$0xfc] %vm80_vm11, %v110_v58  }
  0x83   :  { %v178_v60 = vpop.permute.xlu1 %177  }
  0x84   :  { %1195 = vst.msk [vmem:[%s2708_s1 + $0x30] ss:$-26 sm:$0x3] %vm80_vm11, %v178_v60   ;;  %v335_v62 = vpop.permute.xlu2 %334  }
  0x85   :  { %1196 = vst.msk [vmem:[%s2708_s1 + $0x15] sm:$0xfc] %vm80_vm11, %v178_v60  }
  0x86   :  { %1236 = vst.msk [vmem:[%s2708_s1 + $0x30] ss:$-26 sm:$0x3] %vm237_vm12, %v335_v62  }
  0x87   :  { %1237 = vst.msk [vmem:[%s2708_s1 + $0x15] sm:$0xfc] %vm237_vm12, %v335_v62  }
  0x88   :  { %v79_v61 = vpop.permute.xlu0 %78  }
  0x89   :  { %81 = vst.msk [vmem:[%s2708_s1] sm:$0xff] %vm80_vm11, %v79_v61  }
  0x8a   :  { %238 = vst.msk [vmem:[%s2708_s1] sm:$0xff] %vm237_vm12, %v236_v59  }
  0x8b   :  { %v301_v63 = vpop.permute.xlu1 %300  }
  0x8c   :  { %1227 = vst.msk [vmem:[%s2708_s1 + $0x28] ss:$-25 sm:$0x3] %vm237_vm12, %v301_v63   ;;  %v424_v1 = vpop.permute.xlu2 %423  }
  0x8d   :  { %1228 = vst.msk [vmem:[%s2708_s1 + $0xe] sm:$0xfc] %vm237_vm12, %v301_v63  }
  0x90   :  { %v267_v0 = vpop.permute.xlu0 %266  }
  0x91   :  { %1218 = vst.msk [vmem:[%s2708_s1 + $0x20] ss:$-24 sm:$0x3] %vm237_vm12, %v267_v0  }
  0x92   :  { %1219 = vst.msk [vmem:[%s2708_s1 + $0x7] sm:$0xfc] %vm237_vm12, %v267_v0  }
  0x93   :  { %1259 = vst.msk [vmem:[%s2708_s1 + $0x20] ss:$-24 sm:$0x3] %vm394_vm13, %v424_v1   ;;  %v393_v2 = vpop.permute.xlu1 %392  }
  0x94   :  { %1260 = vst.msk [vmem:[%s2708_s1 + $0x7] sm:$0xfc] %vm394_vm13, %v424_v1   ;;  %v513_v4 = vpop.permute.xlu2 %512  }
  0x95   :  { %395 = vst.msk [vmem:[%s2708_s1] sm:$0xff] %vm394_vm13, %v393_v2  }
  0x98   :  { %v356_v3 = vpop.permute.xlu0 %355  }
  0x99   :  { %1242 = vst.msk [vmem:[%s2708_s1 + $0x38] ss:$-27 sm:$0x3] %vm237_vm12, %v356_v3  }
  0x9a   :  { %1243 = vst.msk [vmem:[%s2708_s1 + $0x1c] sm:$0xc] %vm237_vm12, %v356_v3  }
  0x9b   :  { %1283 = vst.msk [vmem:[%s2708_s1 + $0x38] ss:$-27 sm:$0x3] %vm394_vm13, %v513_v4   ;;  %v492_v5 = vpop.permute.xlu1 %491  }
  0x9c   :  { %1284 = vst.msk [vmem:[%s2708_s1 + $0x1c] sm:$0xc] %vm394_vm13, %v513_v4   ;;  %v615_v7 = vpop.permute.xlu2 %614  }
  0x9d   :  { %1277 = vst.msk [vmem:[%s2708_s1 + $0x30] ss:$-26 sm:$0x3] %vm394_vm13, %v492_v5  }
  0x9e   :  { %1278 = vst.msk [vmem:[%s2708_s1 + $0x15] sm:$0xfc] %vm394_vm13, %v492_v5  }
  0xa0   :  { %v458_v6 = vpop.permute.xlu0 %457  }
  0xa1   :  { %1268 = vst.msk [vmem:[%s2708_s1 + $0x28] ss:$-25 sm:$0x3] %vm394_vm13, %v458_v6  }
  0xa2   :  { %1269 = vst.msk [vmem:[%s2708_s1 + $0xe] sm:$0xfc] %vm394_vm13, %v458_v6  }
  0xa3   :  { %1309 = vst.msk [vmem:[%s2708_s1 + $0x28] ss:$-25 sm:$0x3] %vm551_vm14, %v615_v7   ;;  %v581_v8 = vpop.permute.xlu1 %580  }
  0xa4   :  { %1310 = vst.msk [vmem:[%s2708_s1 + $0xe] sm:$0xfc] %vm551_vm14, %v615_v7   ;;  %v707_v10 = vpop.permute.xlu2 %706  }
  0xa5   :  { %1300 = vst.msk [vmem:[%s2708_s1 + $0x20] ss:$-24 sm:$0x3] %vm551_vm14, %v581_v8  }
  0xa6   :  { %1301 = vst.msk [vmem:[%s2708_s1 + $0x7] sm:$0xfc] %vm551_vm14, %v581_v8  }
  0xa8   :  { %v550_v9 = vpop.permute.xlu0 %549  }
  0xa9   :  { %552 = vst.msk [vmem:[%s2708_s1] sm:$0xff] %vm551_vm14, %v550_v9  }
  0xaa   :  { %709 = vst.msk [vmem:[%s2708_s1] sm:$0xff] %vm708_vm15, %v707_v10  }
  0xab   :  { %v670_v11 = vpop.permute.xlu1 %669  }
  0xac   :  { %1324 = vst.msk [vmem:[%s2708_s1 + $0x38] ss:$-27 sm:$0x3] %vm551_vm14, %v670_v11   ;;  %v806_v13 = vpop.permute.xlu2 %805  }
  0xad   :  { %1325 = vst.msk [vmem:[%s2708_s1 + $0x1c] sm:$0xc] %vm551_vm14, %v670_v11  }
  0xb0   :  { %v649_v12 = vpop.permute.xlu0 %648  }
  0xb1   :  { %1318 = vst.msk [vmem:[%s2708_s1 + $0x30] ss:$-26 sm:$0x3] %vm551_vm14, %v649_v12  }
  0xb2   :  { %1319 = vst.msk [vmem:[%s2708_s1 + $0x15] sm:$0xfc] %vm551_vm14, %v649_v12  }
  0xb3   :  { %1359 = vst.msk [vmem:[%s2708_s1 + $0x30] ss:$-26 sm:$0x3] %vm708_vm15, %v806_v13   ;;  %v772_v14 = vpop.permute.xlu1 %771  }
  0xb4   :  { %1360 = vst.msk [vmem:[%s2708_s1 + $0x15] sm:$0xfc] %vm708_vm15, %v806_v13   ;;  %v895_v16 = vpop.permute.xlu2 %894  }
  0xb5   :  { %1350 = vst.msk [vmem:[%s2708_s1 + $0x28] ss:$-25 sm:$0x3] %vm708_vm15, %v772_v14  }
  0xb6   :  { %1351 = vst.msk [vmem:[%s2708_s1 + $0xe] sm:$0xfc] %vm708_vm15, %v772_v14  }
  0xb8   :  { %v738_v15 = vpop.permute.xlu0 %737  }
  0xb9   :  { %1341 = vst.msk [vmem:[%s2708_s1 + $0x20] ss:$-24 sm:$0x3] %vm708_vm15, %v738_v15  }
  0xba   :  { %1342 = vst.msk [vmem:[%s2708_s1 + $0x7] sm:$0xfc] %vm708_vm15, %v738_v15  }
  0xbb   :  { %1382 = vst.msk [vmem:[%s2708_s1 + $0x20] ss:$-24 sm:$0x3] %vm865_vm0, %v895_v16   ;;  %v864_v17 = vpop.permute.xlu1 %863  }
  0xbc   :  { %1383 = vst.msk [vmem:[%s2708_s1 + $0x7] sm:$0xfc] %vm865_vm0, %v895_v16   ;;  %v984_v19 = vpop.permute.xlu2 %983  }
  0xbd   :  { %866 = vst.msk [vmem:[%s2708_s1] sm:$0xff] %vm865_vm0, %v864_v17  }
  0xc0   :  { %v827_v18 = vpop.permute.xlu0 %826  }
  0xc1   :  { %1365 = vst.msk [vmem:[%s2708_s1 + $0x38] ss:$-27 sm:$0x3] %vm708_vm15, %v827_v18  }
  0xc2   :  { %1366 = vst.msk [vmem:[%s2708_s1 + $0x1c] sm:$0xc] %vm708_vm15, %v827_v18  }
  0xc3   :  { %1406 = vst.msk [vmem:[%s2708_s1 + $0x38] ss:$-27 sm:$0x3] %vm865_vm0, %v984_v19   ;;  %v963_v20 = vpop.permute.xlu1 %962  }
  0xc4   :  { %1407 = vst.msk [vmem:[%s2708_s1 + $0x1c] sm:$0xc] %vm865_vm0, %v984_v19   ;;  %v1086_v22 = vpop.permute.xlu2 %1085  }
  0xc5   :  { %1400 = vst.msk [vmem:[%s2708_s1 + $0x30] ss:$-26 sm:$0x3] %vm865_vm0, %v963_v20  }
  0xc6   :  { %1401 = vst.msk [vmem:[%s2708_s1 + $0x15] sm:$0xfc] %vm865_vm0, %v963_v20  }
  0xc8   :  { %v929_v21 = vpop.permute.xlu0 %928  }
  0xc9   :  { %1391 = vst.msk [vmem:[%s2708_s1 + $0x28] ss:$-25 sm:$0x3] %vm865_vm0, %v929_v21  }
  0xca   :  { %1392 = vst.msk [vmem:[%s2708_s1 + $0xe] sm:$0xfc] %vm865_vm0, %v929_v21  }
  0xcb   :  { %1432 = vst.msk [vmem:[%s2708_s1 + $0x28] ss:$-25 sm:$0x3] %vm1022_vm1, %v1086_v22   ;;  %v1052_v23 = vpop.permute.xlu1 %1051  }
  0xcc   :  { %1433 = vst.msk [vmem:[%s2708_s1 + $0xe] sm:$0xfc] %vm1022_vm1, %v1086_v22  }
  0xcd   :  { %1423 = vst.msk [vmem:[%s2708_s1 + $0x20] ss:$-24 sm:$0x3] %vm1022_vm1, %v1052_v23  }
  0xce   :  { %1424 = vst.msk [vmem:[%s2708_s1 + $0x7] sm:$0xfc] %vm1022_vm1, %v1052_v23  }
  0xd0   :  { %v1021_v24 = vpop.permute.xlu0 %1020  }
  0xd1   :  { %1023 = vst.msk [vmem:[%s2708_s1] sm:$0xff] %vm1022_vm1, %v1021_v24  }
  0xd3   :  { %v1141_v25 = vpop.permute.xlu1 %1140  }
  0xd4   :  { %1447 = vst.msk [vmem:[%s2708_s1 + $0x38] ss:$-27 sm:$0x3] %vm1022_vm1, %v1141_v25  }
  0xd5   :  { %1448 = vst.msk [vmem:[%s2708_s1 + $0x1c] sm:$0xc] %vm1022_vm1, %v1141_v25  }
  0xd8   :  { %v1120_v26 = vpop.permute.xlu0 %1119  }
  0xd9   :  { %1441 = vst.msk [vmem:[%s2708_s1 + $0x30] ss:$-26 sm:$0x3] %vm1022_vm1, %v1120_v26  }
  0xda   :  { %1442 = vst.msk [vmem:[%s2708_s1 + $0x15] sm:$0xfc] %vm1022_vm1, %v1120_v26  }

// kernel: shuffle_block_forward.4
= control target key start
LH: loop header
LB: loop body
LE: loop exit
PB: predicated region body
PF: predicated region fallthrough
CT: control target
= control target key end

     0   :  { %s2641_s15 = smov 0   ;;  %s4197_s0 = inlined_call_operand.vmem [shape: bf16[2048,16], index: 0, kind: input, shape index: {}]   ;;  %s4198_s1 = inlined_call_operand.vmem [shape: bf16[16,16], index: 1, kind: input, shape index: {}]   ;;  %s4199_s2 = inlined_call_operand.vmem [shape: f32[1,16], index: 2, kind: input, shape index: {}]   ;;  %s4200_s3 = inlined_call_operand.vmem [shape: bf16[2048,16], index: 3, kind: output, shape index: {0}]   ;;  %s4201_s4 = inlined_call_operand.vmem [shape: f32[2,2,16], index: 4, kind: output, shape index: {1}]  }
   0x1 LB: > { %s2647_s16 = sadd.s32 4294967295, %s2614_s15   ;;  %p2197_p0 = scmp.ge.s32.totalorder %s2614_s15, 1  ;;  %s2614_s15 = sphi %s2641_s15, %s15_s15  }
   0x2   : > { %p166_p1 = scmp.lt.s32.totalorder %s2614_s15, 3 }
   0x4   : > { %p167_p2 = pnand %p2197_p0, %p166_p1 }
   0x6   : > { %170 = sbr.rel (%p167_p2) target bundleno = 605 (0x25d), region = 32 }
   0xb   : > { %v2593_v0 = vld [vmem:[%s4198_s1] sm:$0xff]  ;;  %s2198_s19 = sshll.u32 %s2647_s16, 7  ;;  %vm673_vm0 = vcmask 130048   ;;  %vm1323_vm1 = vcmask 125952   ;;  %p208_p4 = scmp.lt.s32.totalorder %s2647_s16, 1  ;;  %vm2102_vm2 = vcmask 1040384  }
   0xc   : > { %p197_p3 = scmp.lt.s32.totalorder %s2198_s19, 255  ;;  %873 = vmatpush.bf16.msra.mxu0 %v2593_v0  ;;  %2594 = vmatpush.bf16.msra.mxu1 %v2593_v0  ;;  %v2704_v19 = vld [vmem:[%s4199_s2] ss:$0 sm:$0xff]  ;;  %vm2104_vm3 = vcmask 123904  }
   0xd   : > { %2595 = vmatpush.bf16.msra.mxu2 %v2593_v0  ;;  %2596 = vmatpush.bf16.msra.mxu3 %v2593_v0  ;;  %s4281_s16 = smov (!%p208_p4, %s2647_s16), 1 }
   0xe   : > { %s4279_s19 = smov (!%p197_p3, %s2198_s19), 255  ;;  %s2202_s7 = sshll.u32 %s4281_s16, 1 }
   0xf   : > { %s2199_s20 = sshll.u32 %s4279_s19, 2  ;;  %s211_s10 = scalar_lea.vmem %s4201_s4, %s2202_s7 }
  0x10   : > { %s2663_s23 = scalar_lea.vmem %s4197_s0, %s2199_s20  ;;  %s2713_s28 = scalar_lea.vmem %s4200_s3, %s2199_s20 }
  0x11   : > { %v2529_v1 = vld [vmem:[%s2663_s23] sm:$0xff]  ;;  %v2530_v2 = vld [vmem:[%s2663_s23 + $0x8] sm:$0xff]  ;;  %v2531_v4 = vld [vmem:[%s2663_s23 + $0x10] sm:$0xff] }
  0x12   : > { %2463 = vmatmul.msk.bf16.vlgmr.msra.gmra.mxu0 %vm673_vm0, %v2529_v1  ;;  %v2545_v3 = vld [vmem:[%s2663_s23 + $0x80] sm:$0xff]  ;;  %v2546_v5 = vld [vmem:[%s2663_s23 + $0x88] sm:$0xff]  ;;  %v2532_v6 = vld [vmem:[%s2663_s23 + $0x18] sm:$0xff] }
  0x13   : > { %2479 = vmatmul.msk.bf16.vlgmr.msra.gmra.mxu1 %vm673_vm0, %v2545_v3  ;;  %v2547_v7 = vld [vmem:[%s2663_s23 + $0x90] sm:$0xff]  ;;  %v2533_v8 = vld [vmem:[%s2663_s23 + $0x20] sm:$0xff]  ;;  %v2548_v9 = vld [vmem:[%s2663_s23 + $0x98] sm:$0xff] }
  0x14   : > { %v2534_v10 = vld [vmem:[%s2663_s23 + $0x28] sm:$0xff]  ;;  %v2561_v11 = vld [vmem:[%s2663_s23 + $0x100] sm:$0xff]  ;;  %v2535_v13 = vld [vmem:[%s2663_s23 + $0x30] sm:$0xff] }
  0x15   : > { %v2549_v12 = vld [vmem:[%s2663_s23 + $0xa0] sm:$0xff]  ;;  %2495 = vmatmul.msk.bf16.vlgmr.msra.gmra.mxu2 %vm673_vm0, %v2561_v11  ;;  %v2562_v14 = vld [vmem:[%s2663_s23 + $0x108] sm:$0xff]  ;;  %v2536_v16 = vld [vmem:[%s2663_s23 + $0x38] sm:$0xff] }
  0x16   : > { %v2550_v15 = vld [vmem:[%s2663_s23 + $0xa8] sm:$0xff]  ;;  %v2563_v17 = vld [vmem:[%s2663_s23 + $0x110] sm:$0xff]  ;;  %v2537_v20 = vld [vmem:[%s2663_s23 + $0x40] sm:$0xff] }
  0x17   : > { %v2551_v18 = vld [vmem:[%s2663_s23 + $0xb0] sm:$0xff]  ;;  %v2564_v24 = vld [vmem:[%s2663_s23 + $0x118] sm:$0xff]  ;;  %v2538_v37 = vld [vmem:[%s2663_s23 + $0x48] sm:$0xff] }
  0x18   : > { %v2552_v28 = vld [vmem:[%s2663_s23 + $0xb8] sm:$0xff]  ;;  %v2565_v43 = vld [vmem:[%s2663_s23 + $0x120] sm:$0xff]  ;;  %v2539_v59 = vld [vmem:[%s2663_s23 + $0x50] sm:$0xff] }
  0x19   : > { %v2577_v44 = vld [vmem:[%s2663_s23 + $0x180] sm:$0xff] }
  0x1a   : > { %2511 = vmatmul.msk.bf16.vlgmr.msra.gmra.mxu3 %vm673_vm0, %v2577_v44  ;;  %v2553_v51 = vld [vmem:[%s2663_s23 + $0xc0] sm:$0xff] }
  0x22   : > { %2464 = vmatmul.msk.bf16.gmra.mxu0 %vm673_vm0, %v2530_v2 }
  0x23   : > { %2480 = vmatmul.msk.bf16.gmra.mxu1 %vm673_vm0, %v2546_v5  ;;  %v2566_v5 = vld [vmem:[%s2663_s23 + $0x128] sm:$0xff] }
  0x25   : > { %2496 = vmatmul.msk.bf16.gmra.mxu2 %vm673_vm0, %v2562_v14 }
  0x32   : > { %2465 = vmatmul.msk.bf16.gmra.mxu0 %vm673_vm0, %v2531_v4 }
  0x33   : > { %2481 = vmatmul.msk.bf16.gmra.mxu1 %vm673_vm0, %v2547_v7 }
  0x35   : > { %2497 = vmatmul.msk.bf16.gmra.mxu2 %vm673_vm0, %v2563_v17 }
  0x42   : > { %2466 = vmatmul.msk.bf16.gmra.mxu0 %vm673_vm0, %v2532_v6  ;;  %v2578_v6 = vld [vmem:[%s2663_s23 + $0x188] sm:$0xff] }
  0x43   : > { %2482 = vmatmul.msk.bf16.gmra.mxu1 %vm673_vm0, %v2548_v9  ;;  %2512 = vmatmul.msk.bf16.gmra.mxu3 %vm673_vm0, %v2578_v6 }
  0x45   : > { %2498 = vmatmul.msk.bf16.gmra.mxu2 %vm673_vm0, %v2564_v24 }
  0x52   : > { %2467 = vmatmul.msk.bf16.gmra.mxu0 %vm673_vm0, %v2533_v8 }
  0x53   : > { %2483 = vmatmul.msk.bf16.gmra.mxu1 %vm673_vm0, %v2549_v12 }
  0x55   : > { %2499 = vmatmul.msk.bf16.gmra.mxu2 %vm673_vm0, %v2565_v43 }
  0x62   : > { %2468 = vmatmul.msk.bf16.gmra.mxu0 %vm673_vm0, %v2534_v10 }
  0x63   : > { %2484 = vmatmul.msk.bf16.gmra.mxu1 %vm673_vm0, %v2550_v15 }
  0x65   : > { %2500 = vmatmul.msk.bf16.gmra.mxu2 %vm673_vm0, %v2566_v5 }
  0x72   : > { %2469 = vmatmul.msk.bf16.gmra.mxu0 %vm673_vm0, %v2535_v13  ;;  %v2554_v13 = vld [vmem:[%s2663_s23 + $0xc8] sm:$0xff] }
  0x73   : > { %2485 = vmatmul.msk.bf16.gmra.mxu1 %vm673_vm0, %v2551_v18 }
  0x82   : > { %2470 = vmatmul.msk.bf16.gmra.mxu0 %vm673_vm0, %v2536_v16 }
  0x83   : > { %2486 = vmatmul.msk.bf16.gmra.mxu1 %vm673_vm0, %v2552_v28 }
  0x8f   : > { %v875_v21 = vpop.f32.mrf.mxu0 }
  0x90   : > { %v876_v22 = vadd.f32 %v2704_v19, %v875_v21  ;;  %v955_v49 = vpop.f32.mrf.mxu1 }
  0x91   : > { %v2748_v58 = vadd.f32 %v2704_v19, %v955_v49 }
  0x92   : > { %v1195_v23 = vpack.c.bf16 %v876_v22, %v876_v22  ;;  %2471 = vmatmul.msk.bf16.gmra.mxu0 %vm673_vm0, %v2537_v20  ;;  %v1713_v26 = vmul.f32 %v876_v22, %v876_v22  ;;  %v1452_v29 = vsel %vm673_vm0, %v876_v22, 0.0  ;;  %v2540_v22 = vld [vmem:[%s2663_s23 + $0x58] sm:$0xff] }
  0x93   : > { %2487 = vmatmul.msk.bf16.gmra.mxu1 %vm673_vm0, %v2553_v51  ;;  %v1227_v61 = vpack.c.bf16 %v2748_v58, %v2748_v58 }
  0x94   : > { %1324 = vst.msk [vmem:[%s2713_s28] sm:$0xf] %vm1323_vm1, %v1195_v23  ;;  %v1841_v34 = vsel %vm673_vm0, %v1713_v26, 0.0 }
  0x95   : > { %1356 = vst.msk [vmem:[%s2713_s28 + $0x80] sm:$0xf] %vm1323_vm1, %v1227_v61 }
  0x97   : > { %v877_v25 = vpop.f32.mrf.mxu0 }
  0x98   : > { %v878_v27 = vadd.f32 %v2704_v19, %v877_v25  ;;  %v957_v62 = vpop.f32.mrf.mxu1 }
  0x99   : > { %v2755_v0 = vadd.f32 %v2704_v19, %v957_v62 }
  0x9a   : > { %v1196_v30 = vpack.c.bf16 %v878_v27, %v878_v27  ;;  %v1453_v31 = vsel %vm673_vm0, %v878_v27, 0.0  ;;  %v1714_v32 = vmul.f32 %v878_v27, %v878_v27 }
  0x9b   : > { %v1454_v33 = vadd.f32 %v1453_v31, %v1452_v29  ;;  %v1228_v4 = vpack.c.bf16 %v2755_v0, %v2755_v0 }
  0x9c   : > { %1325 = vst.msk [vmem:[%s2713_s28 + $0x4] sm:$0xf] %vm1323_vm1, %v1196_v30  ;;  %v1842_v35 = vsel %vm673_vm0, %v1714_v32, 0.0  ;;  %v2567_v32 = vld [vmem:[%s2663_s23 + $0x130] sm:$0xff] }
  0x9d   : > { %v1843_v36 = vadd.f32 %v1842_v35, %v1841_v34  ;;  %1357 = vst.msk [vmem:[%s2713_s28 + $0x84] sm:$0xf] %vm1323_vm1, %v1228_v4  ;;  %2501 = vmatmul.msk.bf16.gmra.mxu2 %vm673_vm0, %v2567_v32  ;;  %v2556_v4 = vld [vmem:[%s2663_s23 + $0xd8] sm:$0xff] }
  0x9f   : > { %v880_v38 = vpop.f32.mrf.mxu0 }
  0xa0   : > { %v881_v39 = vadd.f32 %v2704_v19, %v880_v38  ;;  %v960_v11 = vpop.f32.mrf.mxu1 }
  0xa1   : > { %v2780_v21 = vadd.f32 %v2704_v19, %v960_v11 }
  0xa2   : > { %v1197_v40 = vpack.c.bf16 %v881_v39, %v881_v39  ;;  %v1455_v41 = vsel %vm673_vm0, %v881_v39, 0.0  ;;  %v1715_v42 = vmul.f32 %v881_v39, %v881_v39  ;;  %2472 = vmatmul.msk.bf16.gmra.mxu0 %vm673_vm0, %v2538_v37 }
  0xa3   : > { %v1456_v45 = vadd.f32 %v1455_v41, %v1454_v33  ;;  %2488 = vmatmul.msk.bf16.gmra.mxu1 %vm673_vm0, %v2554_v13  ;;  %v1229_v24 = vpack.c.bf16 %v2780_v21, %v2780_v21  ;;  %v2579_v33 = vld [vmem:[%s2663_s23 + $0x190] sm:$0xff] }
  0xa4   : > { %1326 = vst.msk [vmem:[%s2713_s28 + $0x8] sm:$0xf] %vm1323_vm1, %v1197_v40  ;;  %v1844_v46 = vsel %vm673_vm0, %v1715_v42, 0.0  ;;  %2513 = vmatmul.msk.bf16.gmra.mxu3 %vm673_vm0, %v2579_v33  ;;  %v2555_v40 = vld [vmem:[%s2663_s23 + $0xd0] sm:$0xff]  ;;  %v1035_v33 = vpop.f32.mrf.mxu2 }
  0xa5   : > { %v1845_v47 = vadd.f32 %v1844_v46, %v1843_v36  ;;  %1358 = vst.msk [vmem:[%s2713_s28 + $0x88] sm:$0xf] %vm1323_vm1, %v1229_v24  ;;  %v2569_v24 = vld [vmem:[%s2663_s23 + $0x140] sm:$0xff] }
  0xa7   : > { %v882_v48 = vpop.f32.mrf.mxu0 }
  0xa8   : > { %v883_v50 = vadd.f32 %v2704_v19, %v882_v48  ;;  %v962_v25 = vpop.f32.mrf.mxu1  ;;  %v2541_v48 = vld [vmem:[%s2663_s23 + $0x60] sm:$0xff] }
  0xa9   : > { %v2787_v27 = vadd.f32 %v2704_v19, %v962_v25  ;;  %v2581_v25 = vld [vmem:[%s2663_s23 + $0x1a0] sm:$0xff] }
  0xaa   : > { %v1198_v52 = vpack.c.bf16 %v883_v50, %v883_v50  ;;  %v1457_v53 = vsel %vm673_vm0, %v883_v50, 0.0  ;;  %v1716_v54 = vmul.f32 %v883_v50, %v883_v50 }
  0xab   : > { %v1458_v55 = vadd.f32 %v1457_v53, %v1456_v45  ;;  %v1230_v31 = vpack.c.bf16 %v2787_v27, %v2787_v27 }
  0xac   : > { %1327 = vst.msk [vmem:[%s2713_s28 + $0xc] sm:$0xf] %vm1323_vm1, %v1198_v52  ;;  %v1846_v56 = vsel %vm673_vm0, %v1716_v54, 0.0 }
  0xad   : > { %v1847_v57 = vadd.f32 %v1846_v56, %v1845_v47  ;;  %1359 = vst.msk [vmem:[%s2713_s28 + $0x8c] sm:$0xf] %vm1323_vm1, %v1230_v31 }
  0xaf   : > { %v885_v60 = vpop.f32.mrf.mxu0 }
  0xb0   : > { %v886_v63 = vadd.f32 %v2704_v19, %v885_v60  ;;  %v965_v38 = vpop.f32.mrf.mxu1  ;;  %v2580_v60 = vld [vmem:[%s2663_s23 + $0x198] sm:$0xff] }
  0xb1   : > { %v2812_v47 = vadd.f32 %v2704_v19, %v965_v38 }
  0xb2   : > { %v1199_v1 = vpack.c.bf16 %v886_v63, %v886_v63  ;;  %v1459_v2 = vsel %vm673_vm0, %v886_v63, 0.0  ;;  %v1717_v3 = vmul.f32 %v886_v63, %v886_v63  ;;  %2473 = vmatmul.msk.bf16.gmra.mxu0 %vm673_vm0, %v2539_v59  ;;  %v2568_v59 = vld [vmem:[%s2663_s23 + $0x138] sm:$0xff] }
  0xb3   : > { %v1460_v7 = vadd.f32 %v1459_v2, %v1458_v55  ;;  %2489 = vmatmul.msk.bf16.gmra.mxu1 %vm673_vm0, %v2555_v40  ;;  %v1231_v50 = vpack.c.bf16 %v2812_v47, %v2812_v47  ;;  %2502 = vmatmul.msk.bf16.gmra.mxu2 %vm673_vm0, %v2568_v59  ;;  %v2582_v59 = vld [vmem:[%s2663_s23 + $0x1a8] sm:$0xff] }
  0xb4   : > { %1328 = vst.msk [vmem:[%s2713_s28 + $0x10] sm:$0xf] %vm1323_vm1, %v1199_v1  ;;  %v1848_v8 = vsel %vm673_vm0, %v1717_v3, 0.0  ;;  %2514 = vmatmul.msk.bf16.gmra.mxu3 %vm673_vm0, %v2580_v60 }
  0xb5   : > { %v1849_v9 = vadd.f32 %v1848_v8, %v1847_v57  ;;  %1360 = vst.msk [vmem:[%s2713_s28 + $0x90] sm:$0xf] %vm1323_vm1, %v1231_v50 }
  0xb7   : > { %v887_v10 = vpop.f32.mrf.mxu0 }
  0xb8   : > { %v888_v12 = vadd.f32 %v2704_v19, %v887_v10  ;;  %v967_v51 = vpop.f32.mrf.mxu1 }
  0xb9   : > { %v2819_v53 = vadd.f32 %v2704_v19, %v967_v51  ;;  %v1037_v51 = vpop.f32.mrf.mxu2 }
  0xba   : > { %v1200_v14 = vpack.c.bf16 %v888_v12, %v888_v12  ;;  %v1461_v15 = vsel %vm673_vm0, %v888_v12, 0.0  ;;  %v1718_v16 = vmul.f32 %v888_v12, %v888_v12  ;;  %v2542_v12 = vld [vmem:[%s2663_s23 + $0x68] sm:$0xff] }
  0xbb   : > { %v1462_v17 = vadd.f32 %v1461_v15, %v1460_v7  ;;  %v1232_v57 = vpack.c.bf16 %v2819_v53, %v2819_v53 }
  0xbc   : > { %1329 = vst.msk [vmem:[%s2713_s28 + $0x14] sm:$0xf] %vm1323_vm1, %v1200_v14  ;;  %v1850_v18 = vsel %vm673_vm0, %v1718_v16, 0.0 }
  0xbd   : > { %v1851_v20 = vadd.f32 %v1850_v18, %v1849_v9  ;;  %1361 = vst.msk [vmem:[%s2713_s28 + $0x94] sm:$0xf] %vm1323_vm1, %v1232_v57  ;;  %v2570_v57 = vld [vmem:[%s2663_s23 + $0x148] sm:$0xff] }
  0xbf   : > { %v890_v23 = vpop.f32.mrf.mxu0 }
  0xc0   : > { %v891_v26 = vadd.f32 %v2704_v19, %v890_v23  ;;  %v970_v2 = vpop.f32.mrf.mxu1 }
  0xc1   : > { %v2844_v11 = vadd.f32 %v2704_v19, %v970_v2 }
  0xc2   : > { %v1201_v28 = vpack.c.bf16 %v891_v26, %v891_v26  ;;  %v1463_v29 = vsel %vm673_vm0, %v891_v26, 0.0  ;;  %v1719_v30 = vmul.f32 %v891_v26, %v891_v26  ;;  %2474 = vmatmul.msk.bf16.gmra.mxu0 %vm673_vm0, %v2540_v22 }
  0xc3   : > { %v1464_v34 = vadd.f32 %v1463_v29, %v1462_v17  ;;  %2490 = vmatmul.msk.bf16.gmra.mxu1 %vm673_vm0, %v2556_v4  ;;  %v1233_v14 = vpack.c.bf16 %v2844_v11, %v2844_v11  ;;  %2503 = vmatmul.msk.bf16.gmra.mxu2 %vm673_vm0, %v2569_v24 }
  0xc4   : > { %1330 = vst.msk [vmem:[%s2713_s28 + $0x18] sm:$0xf] %vm1323_vm1, %v1201_v28  ;;  %v1852_v35 = vsel %vm673_vm0, %v1719_v30, 0.0  ;;  %2515 = vmatmul.msk.bf16.gmra.mxu3 %vm673_vm0, %v2581_v25 }
  0xc5   : > { %v1853_v36 = vadd.f32 %v1852_v35, %v1851_v20  ;;  %1362 = vst.msk [vmem:[%s2713_s28 + $0x98] sm:$0xf] %vm1323_vm1, %v1233_v14 }
  0xc7   : > { %v892_v37 = vpop.f32.mrf.mxu0 }
  0xc8   : > { %v893_v39 = vadd.f32 %v2704_v19, %v892_v37  ;;  %v972_v15 = vpop.f32.mrf.mxu1 }
  0xc9   : > { %v2851_v17 = vadd.f32 %v2704_v19, %v972_v15 }
  0xca   : > { %v1202_v41 = vpack.c.bf16 %v893_v39, %v893_v39  ;;  %v1465_v42 = vsel %vm673_vm0, %v893_v39, 0.0  ;;  %v1720_v43 = vmul.f32 %v893_v39, %v893_v39 }
  0xcb   : > { %v1466_v44 = vadd.f32 %v1465_v42, %v1464_v34  ;;  %v1234_v23 = vpack.c.bf16 %v2851_v17, %v2851_v17  ;;  %v2557_v34 = vld [vmem:[%s2663_s23 + $0xe0] sm:$0xff]  ;;  %v2879_v42 = vadd.f32 %v2704_v19, %v1035_v33  ;;  %v2583_v33 = vld [vmem:[%s2663_s23 + $0x1b0] sm:$0xff] }
  0xcc   : > { %1331 = vst.msk [vmem:[%s2713_s28 + $0x1c] sm:$0xf] %vm1323_vm1, %v1202_v41  ;;  %v1854_v45 = vsel %vm673_vm0, %v1720_v43, 0.0  ;;  %v2543_v43 = vld [vmem:[%s2663_s23 + $0x70] sm:$0xff] }
  0xcd   : > { %v1855_v46 = vadd.f32 %v1854_v45, %v1853_v36  ;;  %1363 = vst.msk [vmem:[%s2713_s28 + $0x9c] sm:$0xf] %vm1323_vm1, %v1234_v23 }
  0xcf   : > { %v895_v49 = vpop.f32.mrf.mxu0 }
  0xd0   : > { %v896_v52 = vadd.f32 %v2704_v19, %v895_v49  ;;  %v975_v31 = vpop.f32.mrf.mxu1 }
  0xd1   : > { %v2876_v41 = vadd.f32 %v2704_v19, %v975_v31 }
  0xd2   : > { %v1203_v54 = vpack.c.bf16 %v896_v52, %v896_v52  ;;  %v1467_v55 = vsel %vm673_vm0, %v896_v52, 0.0  ;;  %v1721_v56 = vmul.f32 %v896_v52, %v896_v52  ;;  %2475 = vmatmul.msk.bf16.gmra.mxu0 %vm673_vm0, %v2541_v48  ;;  %v2893_v52 = vadd.f32 %v2704_v19, %v1037_v51 }
  0xd3   : > { %v1468_v61 = vadd.f32 %v1467_v55, %v1466_v44  ;;  %2491 = vmatmul.msk.bf16.gmra.mxu1 %vm673_vm0, %v2557_v34  ;;  %v1235_v45 = vpack.c.bf16 %v2876_v41, %v2876_v41  ;;  %2504 = vmatmul.msk.bf16.gmra.mxu2 %vm673_vm0, %v2570_v57 }
  0xd4   : > { %1332 = vst.msk [vmem:[%s2713_s28 + $0x20] sm:$0xf] %vm1323_vm1, %v1203_v54  ;;  %v1856_v62 = vsel %vm673_vm0, %v1721_v56, 0.0  ;;  %2516 = vmatmul.msk.bf16.gmra.mxu3 %vm673_vm0, %v2582_v59 }
  0xd5   : > { %v1857_v63 = vadd.f32 %v1856_v62, %v1855_v46  ;;  %v1259_v46 = vpack.c.bf16 %v2879_v42, %v2879_v42  ;;  %1364 = vst.msk [vmem:[%s2713_s28 + $0xa0] sm:$0xf] %vm1323_vm1, %v1235_v45  ;;  %v2559_v45 = vld [vmem:[%s2663_s23 + $0xf0] sm:$0xff] }
  0xd7   : > { %v897_v1 = vpop.f32.mrf.mxu0  ;;  %1388 = vst.msk [vmem:[%s2713_s28 + $0x100] sm:$0xf] %vm1323_vm1, %v1259_v46 }
  0xd8   : > { %v898_v3 = vadd.f32 %v2704_v19, %v897_v1  ;;  %v977_v48 = vpop.f32.mrf.mxu1 }
  0xd9   : > { %v2888_v50 = vadd.f32 %v2704_v19, %v977_v48 }
  0xda   : > { %v1204_v5 = vpack.c.bf16 %v898_v3, %v898_v3  ;;  %v1469_v6 = vsel %vm673_vm0, %v898_v3, 0.0  ;;  %v1722_v7 = vmul.f32 %v898_v3, %v898_v3 }
  0xdb   : > { %v1470_v8 = vadd.f32 %v1469_v6, %v1468_v61  ;;  %v1236_v61 = vpack.c.bf16 %v2888_v50, %v2888_v50  ;;  %v2558_v6 = vld [vmem:[%s2663_s23 + $0xe8] sm:$0xff] }
  0xdc   : > { %1333 = vst.msk [vmem:[%s2713_s28 + $0x24] sm:$0xf] %vm1323_vm1, %v1204_v5  ;;  %v1858_v9 = vsel %vm673_vm0, %v1722_v7, 0.0  ;;  %v1040_v5 = vpop.f32.mrf.mxu2 }
  0xdd   : > { %v1859_v10 = vadd.f32 %v1858_v9, %v1857_v63  ;;  %v1260_v63 = vpack.c.bf16 %v2893_v52, %v2893_v52  ;;  %1365 = vst.msk [vmem:[%s2713_s28 + $0xa4] sm:$0xf] %vm1323_vm1, %v1236_v61  ;;  %v2925_v15 = vadd.f32 %v2704_v19, %v1040_v5 }
  0xdf   : > { %v900_v13 = vpop.f32.mrf.mxu0  ;;  %1389 = vst.msk [vmem:[%s2713_s28 + $0x104] sm:$0xf] %vm1323_vm1, %v1260_v63 }
  0xe0   : > { %v901_v16 = vadd.f32 %v2704_v19, %v900_v13  ;;  %v980_v3 = vpop.f32.mrf.mxu1 }
  0xe1   : > { %v2922_v14 = vadd.f32 %v2704_v19, %v980_v3 }
  0xe2   : > { %v1205_v18 = vpack.c.bf16 %v901_v16, %v901_v16  ;;  %v1471_v20 = vsel %vm673_vm0, %v901_v16, 0.0  ;;  %v1723_v22 = vmul.f32 %v901_v16, %v901_v16  ;;  %2476 = vmatmul.msk.bf16.gmra.mxu0 %vm673_vm0, %v2542_v12  ;;  %v2544_v16 = vld [vmem:[%s2663_s23 + $0x78] sm:$0xff] }
  0xe3   : > { %v1472_v26 = vadd.f32 %v1471_v20, %v1470_v8  ;;  %2492 = vmatmul.msk.bf16.gmra.mxu1 %vm673_vm0, %v2558_v6  ;;  %v1237_v20 = vpack.c.bf16 %v2922_v14, %v2922_v14 }
  0xe4   : > { %1334 = vst.msk [vmem:[%s2713_s28 + $0x28] sm:$0xf] %vm1323_vm1, %v1205_v18  ;;  %v1860_v28 = vsel %vm673_vm0, %v1723_v22, 0.0  ;;  %v1261_v22 = vpack.c.bf16 %v2925_v15, %v2925_v15  ;;  %2517 = vmatmul.msk.bf16.gmra.mxu3 %vm673_vm0, %v2583_v33 }
  0xe5   : > { %v1861_v29 = vadd.f32 %v1860_v28, %v1859_v10  ;;  %1366 = vst.msk [vmem:[%s2713_s28 + $0xa8] sm:$0xf] %vm1323_vm1, %v1237_v20 }
  0xe6   : > { %1390 = vst.msk [vmem:[%s2713_s28 + $0x108] sm:$0xf] %vm1323_vm1, %v1261_v22 }
  0xe7   : > { %v902_v30 = vpop.f32.mrf.mxu0 }
  0xe8   : > { %v903_v32 = vadd.f32 %v2704_v19, %v902_v30  ;;  %v982_v23 = vpop.f32.mrf.mxu1 }
  0xe9   : > { %v2934_v25 = vadd.f32 %v2704_v19, %v982_v23 }
  0xea   : > { %v1206_v35 = vpack.c.bf16 %v903_v32, %v903_v32  ;;  %v1473_v36 = vsel %vm673_vm0, %v903_v32, 0.0  ;;  %v1724_v37 = vmul.f32 %v903_v32, %v903_v32  ;;  %v2571_v32 = vld [vmem:[%s2663_s23 + $0x150] sm:$0xff] }
  0xeb   : > { %v1474_v38 = vadd.f32 %v1473_v36, %v1472_v26  ;;  %v1042_v26 = vpop.f32.mrf.mxu2  ;;  %2505 = vmatmul.msk.bf16.gmra.mxu2 %vm673_vm0, %v2571_v32 }
  0xec   : > { %1335 = vst.msk [vmem:[%s2713_s28 + $0x2c] sm:$0xf] %vm1323_vm1, %v1206_v35  ;;  %v1862_v39 = vsel %vm673_vm0, %v1724_v37, 0.0  ;;  %v2939_v28 = vadd.f32 %v2704_v19, %v1042_v26  ;;  %v1238_v35 = vpack.c.bf16 %v2934_v25, %v2934_v25 }
  0xed   : > { %v1863_v40 = vadd.f32 %v1862_v39, %v1861_v29 }
  0xee   : > { %v1262_v37 = vpack.c.bf16 %v2939_v28, %v2939_v28  ;;  %1367 = vst.msk [vmem:[%s2713_s28 + $0xac] sm:$0xf] %vm1323_vm1, %v1238_v35 }
  0xef   : > { %v905_v44 = vpop.f32.mrf.mxu0 }
  0xf0   : > { %v906_v49 = vadd.f32 %v2704_v19, %v905_v44  ;;  %1391 = vst.msk [vmem:[%s2713_s28 + $0x10c] sm:$0xf] %vm1323_vm1, %v1262_v37 }
  0xf2   : > { %v1207_v54 = vpack.c.bf16 %v906_v49, %v906_v49  ;;  %v1475_v55 = vsel %vm673_vm0, %v906_v49, 0.0  ;;  %v1725_v56 = vmul.f32 %v906_v49, %v906_v49  ;;  %2477 = vmatmul.msk.bf16.gmra.mxu0 %vm673_vm0, %v2543_v43 }
  0xf3   : > { %v1476_v60 = vadd.f32 %v1475_v55, %v1474_v38  ;;  %v1045_v44 = vpop.f32.mrf.mxu2  ;;  %2493 = vmatmul.msk.bf16.gmra.mxu1 %vm673_vm0, %v2559_v45 }
  0xf4   : > { %1336 = vst.msk [vmem:[%s2713_s28 + $0x30] sm:$0xf] %vm1323_vm1, %v1207_v54  ;;  %v1864_v62 = vsel %vm673_vm0, %v1725_v56, 0.0  ;;  %v2971_v57 = vadd.f32 %v2704_v19, %v1045_v44 }
  0xf5   : > { %v1865_v1 = vadd.f32 %v1864_v62, %v1863_v40  ;;  %v985_v40 = vpop.f32.mrf.mxu1 }
  0xf6   : > { %v2968_v56 = vadd.f32 %v2704_v19, %v985_v40  ;;  %v1263_v61 = vpack.c.bf16 %v2971_v57, %v2971_v57 }
  0xf7   : > { %v907_v2 = vpop.f32.mrf.mxu0 }
  0xf8   : > { %v908_v4 = vadd.f32 %v2704_v19, %v907_v2  ;;  %1392 = vst.msk [vmem:[%s2713_s28 + $0x110] sm:$0xf] %vm1323_vm1, %v1263_v61 }
  0xfa   : > { %v1208_v7 = vpack.c.bf16 %v908_v4, %v908_v4  ;;  %v1477_v8 = vsel %vm673_vm0, %v908_v4, 0.0  ;;  %v1726_v9 = vmul.f32 %v908_v4, %v908_v4 }
  0xfb   : > { %v1478_v10 = vadd.f32 %v1477_v8, %v1476_v60  ;;  %v1239_v60 = vpack.c.bf16 %v2968_v56, %v2968_v56  ;;  %v1047_v2 = vpop.f32.mrf.mxu2  ;;  %v2584_v8 = vld [vmem:[%s2663_s23 + $0x1b8] sm:$0xff] }
  0xfc   : > { %1337 = vst.msk [vmem:[%s2713_s28 + $0x34] sm:$0xf] %vm1323_vm1, %v1208_v7  ;;  %v1866_v12 = vsel %vm673_vm0, %v1726_v9, 0.0  ;;  %v2984_v3 = vadd.f32 %v2704_v19, %v1047_v2  ;;  %v2572_v7 = vld [vmem:[%s2663_s23 + $0x158] sm:$0xff]  ;;  %2518 = vmatmul.msk.bf16.gmra.mxu3 %vm673_vm0, %v2584_v8 }
  0xfd   : > { %v1867_v13 = vadd.f32 %v1866_v12, %v1865_v1  ;;  %v987_v62 = vpop.f32.mrf.mxu1  ;;  %1368 = vst.msk [vmem:[%s2713_s28 + $0xb0] sm:$0xf] %vm1323_vm1, %v1239_v60  ;;  %2506 = vmatmul.msk.bf16.gmra.mxu2 %vm673_vm0, %v2572_v7 }
  0xfe   : > { %v2979_v1 = vadd.f32 %v2704_v19, %v987_v62 }
  0xff   : > { %v910_v18 = vpop.f32.mrf.mxu0 }
 0x100   : > { %v911_v24 = vadd.f32 %v2704_v19, %v910_v18 }
 0x102   : > { %v1209_v29 = vpack.c.bf16 %v911_v24, %v911_v24  ;;  %v1479_v30 = vsel %vm673_vm0, %v911_v24, 0.0  ;;  %v1727_v31 = vmul.f32 %v911_v24, %v911_v24  ;;  %2478 = vmatmul.msk.bf16.gmra.mxu0 %vm673_vm0, %v2544_v16  ;;  %v2560_v24 = vld [vmem:[%s2663_s23 + $0xf8] sm:$0xff] }
 0x103   : > { %v1480_v34 = vadd.f32 %v1479_v30, %v1478_v10  ;;  %v1240_v10 = vpack.c.bf16 %v2979_v1, %v2979_v1  ;;  %v1050_v23 = vpop.f32.mrf.mxu2  ;;  %2494 = vmatmul.msk.bf16.gmra.mxu1 %vm673_vm0, %v2560_v24 }
 0x104   : > { %1338 = vst.msk [vmem:[%s2713_s28 + $0x38] sm:$0xf] %vm1323_vm1, %v1209_v29  ;;  %v1868_v36 = vsel %vm673_vm0, %v1727_v31, 0.0  ;;  %v3015_v35 = vadd.f32 %v2704_v19, %v1050_v23 }
 0x105   : > { %v1869_v38 = vadd.f32 %v1868_v36, %v1867_v13  ;;  %v1264_v13 = vpack.c.bf16 %v2984_v3, %v2984_v3  ;;  %1369 = vst.msk [vmem:[%s2713_s28 + $0xb4] sm:$0xf] %vm1323_vm1, %v1240_v10  ;;  %v990_v20 = vpop.f32.mrf.mxu1 }
 0x107   : > { %v912_v39 = vpop.f32.mrf.mxu0  ;;  %1393 = vst.msk [vmem:[%s2713_s28 + $0x114] sm:$0xf] %vm1323_vm1, %v1264_v13 }
 0x108   : > { %v913_v43 = vadd.f32 %v2704_v19, %v912_v39 }
 0x10a   : > { %v1210_v46 = vpack.c.bf16 %v913_v43, %v913_v43  ;;  %v1481_v48 = vsel %vm673_vm0, %v913_v43, 0.0  ;;  %v1728_v49 = vmul.f32 %v913_v43, %v913_v43 }
 0x10b   : > { %v1482_v51 = vadd.f32 %v1481_v48, %v1480_v34  ;;  %v3012_v34 = vadd.f32 %v2704_v19, %v990_v20  ;;  %v1052_v44 = vpop.f32.mrf.mxu2 }
 0x10c   : > { %1339 = vst.msk [vmem:[%s2713_s28 + $0x3c] sm:$0xf] %vm1323_vm1, %v1210_v46  ;;  %v1870_v54 = vsel %vm673_vm0, %v1728_v49, 0.0  ;;  %v3028_v45 = vadd.f32 %v2704_v19, %v1052_v44 }
 0x10d   : > { %v1871_v55 = vadd.f32 %v1870_v54, %v1869_v38  ;;  %v1241_v37 = vpack.c.bf16 %v3012_v34, %v3012_v34  ;;  %v1265_v38 = vpack.c.bf16 %v3015_v35, %v3015_v35  ;;  %v992_v39 = vpop.f32.mrf.mxu1  ;;  %v2585_v54 = vld [vmem:[%s2663_s23 + $0x1c0] sm:$0xff] }
 0x10e   : > { %v3023_v43 = vadd.f32 %v2704_v19, %v992_v39  ;;  %v1266_v61 = vpack.c.bf16 %v3028_v45, %v3028_v45  ;;  %2519 = vmatmul.msk.bf16.gmra.mxu3 %vm673_vm0, %v2585_v54  ;;  %v2574_v39 = vld [vmem:[%s2663_s23 + $0x168] sm:$0xff] }
 0x10f   : > { %v915_v59 = vpop.f32.mrf.mxu0  ;;  %1370 = vst.msk [vmem:[%s2713_s28 + $0xb8] sm:$0xf] %vm1323_vm1, %v1241_v37 }
 0x110   : > { %v916_v63 = vadd.f32 %v2704_v19, %v915_v59  ;;  %1394 = vst.msk [vmem:[%s2713_s28 + $0x118] sm:$0xf] %vm1323_vm1, %v1265_v38  ;;  %v1242_v59 = vpack.c.bf16 %v3023_v43, %v3023_v43 }
 0x111   : > { %1395 = vst.msk [vmem:[%s2713_s28 + $0x11c] sm:$0xf] %vm1323_vm1, %v1266_v61 }
 0x112   : > { %v1211_v4 = vpack.c.bf16 %v916_v63, %v916_v63  ;;  %v1483_v5 = vsel %vm673_vm0, %v916_v63, 0.0  ;;  %v1729_v6 = vmul.f32 %v916_v63, %v916_v63  ;;  %1371 = vst.msk [vmem:[%s2713_s28 + $0xbc] sm:$0xf] %vm1323_vm1, %v1242_v59 }
 0x113   : > { %v1484_v9 = vadd.f32 %v1483_v5, %v1482_v51  ;;  %v2573_v51 = vld [vmem:[%s2663_s23 + $0x160] sm:$0xff]  ;;  %v1055_v5 = vpop.f32.mrf.mxu2 }
 0x114   : > { %1340 = vst.msk [vmem:[%s2713_s28 + $0x40] sm:$0xf] %vm1323_vm1, %v1211_v4  ;;  %v1872_v12 = vsel %vm673_vm0, %v1729_v6, 0.0  ;;  %2507 = vmatmul.msk.bf16.gmra.mxu2 %vm673_vm0, %v2573_v51  ;;  %v1115_v6 = vpop.f32.mrf.mxu3 }
 0x115   : > { %v1873_v16 = vadd.f32 %v1872_v12, %v1871_v55  ;;  %v995_v2 = vpop.f32.mrf.mxu1  ;;  %v3060_v20 = vadd.f32 %v2704_v19, %v1115_v6 }
 0x117   : > { %v917_v18 = vpop.f32.mrf.mxu0  ;;  %4240 = vst [vmem:[#allocation2_spill] sm:$0xff] %v3060_v20 }
 0x118   : > { %v918_v22 = vadd.f32 %v2704_v19, %v917_v18  ;;  %v3057_v18 = vadd.f32 %v2704_v19, %v1055_v5 }
 0x11a   : > { %v1212_v26 = vpack.c.bf16 %v918_v22, %v918_v22  ;;  %v1485_v29 = vsel %vm673_vm0, %v918_v22, 0.0  ;;  %v1730_v30 = vmul.f32 %v918_v22, %v918_v22  ;;  %v1267_v24 = vpack.c.bf16 %v3057_v18, %v3057_v18 }
 0x11b   : > { %v1486_v31 = vadd.f32 %v1485_v29, %v1484_v9 }
 0x11c   : > { %1341 = vst.msk [vmem:[%s2713_s28 + $0x44] sm:$0xf] %vm1323_vm1, %v1212_v26  ;;  %v1874_v32 = vsel %vm673_vm0, %v1730_v30, 0.0  ;;  %v1291_v30 = vpack.c.bf16 %v3060_v20, %v3060_v20 }
 0x11d   : > { %v1875_v33 = vadd.f32 %v1874_v32, %v1873_v16  ;;  %v3054_v16 = vadd.f32 %v2704_v19, %v995_v2  ;;  %v997_v26 = vpop.f32.mrf.mxu1  ;;  %v1117_v32 = vpop.f32.mrf.mxu3  ;;  %1396 = vst.msk [vmem:[%s2713_s28 + $0x120] sm:$0xf] %vm1323_vm1, %v1267_v24 }
 0x11e   : > { %1420 = vst.msk [vmem:[%s2713_s28 + $0x180] sm:$0xf] %vm1323_vm1, %v1291_v30  ;;  %v3092_v51 = vadd.f32 %v2704_v19, %v1117_v32  ;;  %v2575_v30 = vld [vmem:[%s2663_s23 + $0x170] sm:$0xff] }
 0x11f   : > { %v920_v36 = vpop.f32.mrf.mxu0  ;;  %v1243_v23 = vpack.c.bf16 %v3054_v16, %v3054_v16 }
 0x120   : > { %v921_v40 = vadd.f32 %v2704_v19, %v920_v36  ;;  %4242 = vst [vmem:[#allocation4_spill] sm:$0xff] %v3092_v51 }
 0x121   : > { %1372 = vst.msk [vmem:[%s2713_s28 + $0xc0] sm:$0xf] %vm1323_vm1, %v1243_v23 }
 0x122   : > { %v1213_v46 = vpack.c.bf16 %v921_v40, %v921_v40  ;;  %v1487_v48 = vsel %vm673_vm0, %v921_v40, 0.0  ;;  %v1731_v49 = vmul.f32 %v921_v40, %v921_v40  ;;  %v2586_v40 = vld [vmem:[%s2663_s23 + $0x1c8] sm:$0xff] }
 0x123   : > { %v1488_v55 = vadd.f32 %v1487_v48, %v1486_v31  ;;  %v1057_v31 = vpop.f32.mrf.mxu2  ;;  %2520 = vmatmul.msk.bf16.gmra.mxu3 %vm673_vm0, %v2586_v40 }
 0x124   : > { %1342 = vst.msk [vmem:[%s2713_s28 + $0x48] sm:$0xf] %vm1323_vm1, %v1213_v46  ;;  %v1876_v60 = vsel %vm673_vm0, %v1731_v49, 0.0  ;;  %v3089_v49 = vadd.f32 %v2704_v19, %v1057_v31  ;;  %2508 = vmatmul.msk.bf16.gmra.mxu2 %vm673_vm0, %v2574_v39  ;;  %v2587_v31 = vld [vmem:[%s2663_s23 + $0x1d0] sm:$0xff] }
 0x125   : > { %v1877_v62 = vadd.f32 %v1876_v60, %v1875_v33  ;;  %v3072_v33 = vadd.f32 %v2704_v19, %v997_v26  ;;  %v1292_v60 = vpack.c.bf16 %v3092_v51, %v3092_v51  ;;  %v1000_v61 = vpop.f32.mrf.mxu1  ;;  %v1120_v2 = vpop.f32.mrf.mxu3 }
 0x126   : > { %4241 = vst [vmem:[#allocation3_spill] sm:$0xff] %v3089_v49  ;;  %v3116_v5 = vadd.f32 %v2704_v19, %v1000_v61 }
 0x127   : > { %v922_v63 = vpop.f32.mrf.mxu0  ;;  %v1244_v46 = vpack.c.bf16 %v3072_v33, %v3072_v33  ;;  %1421 = vst.msk [vmem:[%s2713_s28 + $0x184] sm:$0xf] %vm1323_vm1, %v1292_v60 }
 0x128   : > { %v923_v4 = vadd.f32 %v2704_v19, %v922_v63 }
 0x129   : > { %1373 = vst.msk [vmem:[%s2713_s28 + $0xc4] sm:$0xf] %vm1323_vm1, %v1244_v46 }
 0x12a   : > { %v1214_v7 = vpack.c.bf16 %v923_v4, %v923_v4  ;;  %v1489_v8 = vsel %vm673_vm0, %v923_v4, 0.0  ;;  %v1732_v9 = vmul.f32 %v923_v4, %v923_v4 }
 0x12b   : > { %v1490_v10 = vadd.f32 %v1489_v8, %v1488_v55  ;;  %v1268_v55 = vpack.c.bf16 %v3089_v49, %v3089_v49  ;;  %v1060_v63 = vpop.f32.mrf.mxu2 }
 0x12c   : > { %1343 = vst.msk [vmem:[%s2713_s28 + $0x4c] sm:$0xf] %vm1323_vm1, %v1214_v7  ;;  %v1878_v12 = vsel %vm673_vm0, %v1732_v9, 0.0  ;;  %v3119_v6 = vadd.f32 %v2704_v19, %v1060_v63  ;;  %v3122_v7 = vadd.f32 %v2704_v19, %v1120_v2  ;;  %v1245_v9 = vpack.c.bf16 %v3116_v5, %v3116_v5 }
 0x12d   : > { %v1879_v13 = vadd.f32 %v1878_v12, %v1877_v62  ;;  %1397 = vst.msk [vmem:[%s2713_s28 + $0x124] sm:$0xf] %vm1323_vm1, %v1268_v55  ;;  %v1002_v12 = vpop.f32.mrf.mxu1  ;;  %v1122_v24 = vpop.f32.mrf.mxu3 }
 0x12e   : > { %4243 = vst [vmem:[#allocation5_spill] sm:$0xff] %v3119_v6  ;;  %v3136_v26 = vadd.f32 %v2704_v19, %v1002_v12 }
 0x12f   : > { %v925_v22 = vpop.f32.mrf.mxu0  ;;  %4244 = vst [vmem:[#allocation6_spill] sm:$0xff] %v3122_v7 }
 0x130   : > { %v926_v29 = vadd.f32 %v2704_v19, %v925_v22  ;;  %v1293_v22 = vpack.c.bf16 %v3122_v7, %v3122_v7  ;;  %1374 = vst.msk [vmem:[%s2713_s28 + $0xc8] sm:$0xf] %vm1323_vm1, %v1245_v9  ;;  %v1246_v32 = vpack.c.bf16 %v3136_v26, %v3136_v26 }
 0x132   : > { %v1215_v36 = vpack.c.bf16 %v926_v29, %v926_v29  ;;  %v1491_v37 = vsel %vm673_vm0, %v926_v29, 0.0  ;;  %v1733_v38 = vmul.f32 %v926_v29, %v926_v29  ;;  %1422 = vst.msk [vmem:[%s2713_s28 + $0x188] sm:$0xf] %vm1323_vm1, %v1293_v22 }
 0x133   : > { %v3079_v44 = vadd.f32 %v1491_v37, %v1490_v10  ;;  %v1269_v10 = vpack.c.bf16 %v3119_v6, %v3119_v6  ;;  %v1062_v23 = vpop.f32.mrf.mxu2  ;;  %v3154_v37 = vadd.f32 %v2704_v19, %v1122_v24  ;;  %1375 = vst.msk [vmem:[%s2713_s28 + $0xcc] sm:$0xf] %vm1323_vm1, %v1246_v32  ;;  %2521 = vmatmul.msk.bf16.gmra.mxu3 %vm673_vm0, %v2587_v31  ;;  %v2576_v31 = vld [vmem:[%s2663_s23 + $0x178] sm:$0xff] }
 0x134   : > { %1344 = vst.msk [vmem:[%s2713_s28 + $0x50] sm:$0xf] %vm1323_vm1, %v1215_v36  ;;  %v1880_v48 = vsel %vm673_vm0, %v1733_v38, 0.0  ;;  %v3151_v36 = vadd.f32 %v2704_v19, %v1062_v23  ;;  %2509 = vmatmul.msk.bf16.gmra.mxu2 %vm673_vm0, %v2575_v30  ;;  %v2588_v32 = vld [vmem:[%s2663_s23 + $0x1d8] sm:$0xff] }
 0x135   : > { %v3095_v54 = vadd.f32 %v1880_v48, %v1879_v13  ;;  %1398 = vst.msk [vmem:[%s2713_s28 + $0x128] sm:$0xf] %vm1323_vm1, %v1269_v10  ;;  %v1294_v40 = vpack.c.bf16 %v3154_v37, %v3154_v37  ;;  %v1005_v46 = vpop.f32.mrf.mxu1 }
 0x136   : > { %4245 = vst [vmem:[#allocation7_spill] sm:$0xff] %v3151_v36  ;;  %v1270_v38 = vpack.c.bf16 %v3151_v36, %v3151_v36  ;;  %v3176_v61 = vadd.f32 %v2704_v19, %v1005_v46 }
 0x137   : > { %v927_v59 = vpop.f32.mrf.mxu0  ;;  %4246 = vst [vmem:[#allocation8_spill] sm:$0xff] %v3154_v37 }
 0x138   : > { %v3105_v62 = vadd.f32 %v2704_v19, %v927_v59  ;;  %1399 = vst.msk [vmem:[%s2713_s28 + $0x12c] sm:$0xf] %vm1323_vm1, %v1270_v38  ;;  %v1125_v59 = vpop.f32.mrf.mxu3 }
 0x139   : > { %1423 = vst.msk [vmem:[%s2713_s28 + $0x18c] sm:$0xf] %vm1323_vm1, %v1294_v40  ;;  %v3182_v2 = vadd.f32 %v2704_v19, %v1125_v59 }
 0x13a   : > { %v1216_v4 = vpack.c.bf16 %v3105_v62, %v3105_v62 }
 0x13b   : > { %v1065_v55 = vpop.f32.mrf.mxu2  ;;  %4248 = vst [vmem:[#allocation10_spill] sm:$0xff] %v3182_v2  ;;  %v1295_v22 = vpack.c.bf16 %v3182_v2, %v3182_v2 }
 0x13c   : > { %1345 = vst.msk [vmem:[%s2713_s28 + $0x54] sm:$0xf] %vm1323_vm1, %v1216_v4  ;;  %v3179_v63 = vadd.f32 %v2704_v19, %v1065_v55 }
 0x13d   : > { %v1007_v10 = vpop.f32.mrf.mxu1  ;;  %1424 = vst.msk [vmem:[%s2713_s28 + $0x190] sm:$0xf] %vm1323_vm1, %v1295_v22 }
 0x13e   : > { %4247 = vst [vmem:[#allocation9_spill] sm:$0xff] %v3179_v63  ;;  %v1271_v9 = vpack.c.bf16 %v3179_v63, %v3179_v63 }
 0x13f   : > { %v930_v8 = vpop.f32.mrf.mxu0 }
 0x140   : > { %v3129_v13 = vadd.f32 %v2704_v19, %v930_v8  ;;  %v1247_v8 = vpack.c.bf16 %v3176_v61, %v3176_v61  ;;  %v1127_v24 = vpop.f32.mrf.mxu3  ;;  %1400 = vst.msk [vmem:[%s2713_s28 + $0x130] sm:$0xf] %vm1323_vm1, %v1271_v9 }
 0x141   : > { %v3214_v40 = vadd.f32 %v2704_v19, %v1127_v24 }
 0x142   : > { %v1217_v29 = vpack.c.bf16 %v3129_v13, %v3129_v13  ;;  %1376 = vst.msk [vmem:[%s2713_s28 + $0xd0] sm:$0xf] %vm1323_vm1, %v1247_v8  ;;  %v1735_v51 = vmul.f32 %v3129_v13, %v3129_v13 }
 0x143   : > { %v1067_v23 = vpop.f32.mrf.mxu2  ;;  %4250 = vst [vmem:[#allocation12_spill] sm:$0xff] %v3214_v40  ;;  %2522 = vmatmul.msk.bf16.gmra.mxu3 %vm673_vm0, %v2588_v32  ;;  %v1296_v59 = vpack.c.bf16 %v3214_v40, %v3214_v40 }
 0x144   : > { %1346 = vst.msk [vmem:[%s2713_s28 + $0x58] sm:$0xf] %vm1323_vm1, %v1217_v29  ;;  %v3196_v29 = vadd.f32 %v2704_v19, %v1007_v10  ;;  %2510 = vmatmul.msk.bf16.gmra.mxu2 %vm673_vm0, %v2576_v31 }
 0x145   : > { %1425 = vst.msk [vmem:[%s2713_s28 + $0x194] sm:$0xf] %vm1323_vm1, %v1296_v59 }
 0x146   : > { %v1248_v38 = vpack.c.bf16 %v3196_v29, %v3196_v29 }
 0x147   : > { %v932_v39 = vpop.f32.mrf.mxu0 }
 0x148   : > { %v3165_v48 = vadd.f32 %v2704_v19, %v932_v39  ;;  %v3211_v39 = vadd.f32 %v2704_v19, %v1067_v23  ;;  %1377 = vst.msk [vmem:[%s2713_s28 + $0xd4] sm:$0xf] %vm1323_vm1, %v1248_v38  ;;  %v1130_v9 = vpop.f32.mrf.mxu3 }
 0x149   : > { %v3242_v24 = vadd.f32 %v2704_v19, %v1130_v9 }
 0x14a   : > { %v1218_v60 = vpack.c.bf16 %v3165_v48, %v3165_v48  ;;  %4249 = vst [vmem:[#allocation11_spill] sm:$0xff] %v3211_v39  ;;  %v1272_v46 = vpack.c.bf16 %v3211_v39, %v3211_v39 }
 0x14b   : > { %v1070_v8 = vpop.f32.mrf.mxu2  ;;  %4252 = vst [vmem:[#allocation14_spill] sm:$0xff] %v3242_v24 }
 0x14c   : > { %1347 = vst.msk [vmem:[%s2713_s28 + $0x5c] sm:$0xf] %vm1323_vm1, %v1218_v60  ;;  %v1010_v60 = vpop.f32.mrf.mxu1  ;;  %v3239_v23 = vadd.f32 %v2704_v19, %v1070_v8 }
 0x14d   : > { %1401 = vst.msk [vmem:[%s2713_s28 + $0x134] sm:$0xf] %vm1323_vm1, %v1272_v46  ;;  %v3236_v22 = vadd.f32 %v2704_v19, %v1010_v60 }
 0x14e   : > { %4251 = vst [vmem:[#allocation13_spill] sm:$0xff] %v3239_v23  ;;  %v1273_v32 = vpack.c.bf16 %v3239_v23, %v3239_v23  ;;  %v3324_v23 = vld [vmem:[%s4199_s2] ss:$0 sm:$0xff] }
 0x14f   : > { %v935_v4 = vpop.f32.mrf.mxu0  ;;  %v1249_v31 = vpack.c.bf16 %v3236_v22, %v3236_v22 }
 0x150   : > { %v3189_v12 = vadd.f32 %v2704_v19, %v935_v4  ;;  %v1132_v60 = vpop.f32.mrf.mxu3  ;;  %1402 = vst.msk [vmem:[%s2713_s28 + $0x138] sm:$0xf] %vm1323_vm1, %v1273_v32 }
 0x151   : > { %1378 = vst.msk [vmem:[%s2713_s28 + $0xd8] sm:$0xf] %vm1323_vm1, %v1249_v31 }
 0x152   : > { %v1219_v30 = vpack.c.bf16 %v3189_v12, %v3189_v12 }
 0x153   : > { %v1072_v59 = vpop.f32.mrf.mxu2 }
 0x154   : > { %1348 = vst.msk [vmem:[%s2713_s28 + $0x60] sm:$0xf] %vm1323_vm1, %v1219_v30  ;;  %v1012_v38 = vpop.f32.mrf.mxu1  ;;  %v3270_v31 = vadd.f32 %v2704_v19, %v1072_v59 }
 0x155   : > { %v3256_v8 = vadd.f32 %v2704_v19, %v1012_v38  ;;  %v3273_v38 = vadd.f32 %v2704_v19, %v1132_v60 }
 0x156   : > { %4253 = vst [vmem:[#allocation15_spill] sm:$0xff] %v3270_v31  ;;  %v1274_v32 = vpack.c.bf16 %v3270_v31, %v3270_v31 }
 0x157   : > { %v937_v55 = vpop.f32.mrf.mxu0  ;;  %4254 = vst [vmem:[#allocation16_spill] sm:$0xff] %v3273_v38 }
 0x158   : > { %v3225_v4 = vadd.f32 %v2704_v19, %v937_v55  ;;  %v1297_v55 = vpack.c.bf16 %v3242_v24, %v3242_v24  ;;  %v1298_v24 = vpack.c.bf16 %v3273_v38, %v3273_v38  ;;  %1403 = vst.msk [vmem:[%s2713_s28 + $0x13c] sm:$0xf] %vm1323_vm1, %v1274_v32  ;;  %v1135_v60 = vpop.f32.mrf.mxu3 }
 0x159   : > { %v3305_v37 = vadd.f32 %v2704_v19, %v1135_v60  ;;  %v1493_v60 = vsel %vm673_vm0, %v3105_v62, 0.0 }
 0x15a   : > { %v1220_v10 = vpack.c.bf16 %v3225_v4, %v3225_v4  ;;  %1426 = vst.msk [vmem:[%s2713_s28 + $0x198] sm:$0xf] %vm1323_vm1, %v1297_v55  ;;  %v1738_v36 = vmul.f32 %v3225_v4, %v3225_v4 }
 0x15b   : > { %v1075_v59 = vpop.f32.mrf.mxu2  ;;  %1427 = vst.msk [vmem:[%s2713_s28 + $0x19c] sm:$0xf] %vm1323_vm1, %v1298_v24 }
 0x15c   : > { %1349 = vst.msk [vmem:[%s2713_s28 + $0x64] sm:$0xf] %vm1323_vm1, %v1220_v10  ;;  %v2589_v10 = vld [vmem:[%s2663_s23 + $0x1e0] sm:$0xff]  ;;  %v1015_v40 = vpop.f32.mrf.mxu1  ;;  %v3302_v24 = vadd.f32 %v2704_v19, %v1075_v59  ;;  %v2590_v59 = vld [vmem:[%s2663_s23 + $0x1e8] sm:$0xff] }
 0x15d   : > { %2523 = vmatmul.msk.bf16.gmra.mxu3 %vm673_vm0, %v2589_v10  ;;  %v3299_v32 = vadd.f32 %v2704_v19, %v1015_v40  ;;  %4256 = vst [vmem:[#allocation18_spill] sm:$0xff] %v3305_v37 }
 0x15e   : > { %4255 = vst [vmem:[#allocation17_spill] sm:$0xff] %v3302_v24  ;;  %v1275_v31 = vpack.c.bf16 %v3302_v24, %v3302_v24  ;;  %v1737_v24 = vmul.f32 %v3189_v12, %v3189_v12 }
 0x15f   : > { %v940_v30 = vpop.f32.mrf.mxu0  ;;  %v1251_v40 = vpack.c.bf16 %v3299_v32, %v3299_v32 }
 0x160   : > { %v3249_v46 = vadd.f32 %v2704_v19, %v940_v30  ;;  %v1250_v30 = vpack.c.bf16 %v3256_v8, %v3256_v8  ;;  %1404 = vst.msk [vmem:[%s2713_s28 + $0x140] sm:$0xf] %vm1323_vm1, %v1275_v31 }
 0x161   : > { %1380 = vst.msk [vmem:[%s2713_s28 + $0xe0] sm:$0xf] %vm1323_vm1, %v1251_v40 }
 0x162   : > { %v1221_v9 = vpack.c.bf16 %v3249_v46, %v3249_v46  ;;  %1379 = vst.msk [vmem:[%s2713_s28 + $0xdc] sm:$0xf] %vm1323_vm1, %v1250_v30  ;;  %v1734_v30 = vmul.f32 %v3105_v62, %v3105_v62  ;;  %v1299_v62 = vpack.c.bf16 %v3305_v37, %v3305_v37 }
 0x163   : > { %v1077_v7 = vpop.f32.mrf.mxu2 }
 0x164   : > { %1350 = vst.msk [vmem:[%s2713_s28 + $0x68] sm:$0xf] %vm1323_vm1, %v1221_v9  ;;  %v1017_v2 = vpop.f32.mrf.mxu1  ;;  %v3327_v39 = vadd.f32 %v3324_v23, %v1077_v7  ;;  %v1882_v63 = vsel %vm673_vm0, %v1734_v30, 0.0  ;;  %v1495_v7 = vsel %vm673_vm0, %v3129_v13, 0.0  ;;  %v1884_v30 = vsel %vm673_vm0, %v1735_v51, 0.0 }
 0x165   : > { %v3314_v20 = vadd.f32 %v2704_v19, %v1017_v2  ;;  %v1883_v40 = vadd.f32 %v1882_v63, %v3095_v54  ;;  %1428 = vst.msk [vmem:[%s2713_s28 + $0x1a0] sm:$0xf] %vm1323_vm1, %v1299_v62 }
 0x166   : > { %4257 = vst [vmem:[#allocation19_spill] sm:$0xff] %v3327_v39  ;;  %v1276_v51 = vpack.c.bf16 %v3327_v39, %v3327_v39  ;;  %v1888_v39 = vsel %vm673_vm0, %v1737_v24, 0.0  ;;  %v1503_v24 = vsel %vm673_vm0, %v3249_v46, 0.0 }
 0x167   : > { %v942_v55 = vpop.f32.mrf.mxu0  ;;  %v1885_v62 = vadd.f32 %v1884_v30, %v1883_v40 }
 0x168   : > { %v3283_v9 = vadd.f32 %v2704_v19, %v942_v55  ;;  %1405 = vst.msk [vmem:[%s2713_s28 + $0x144] sm:$0xf] %vm1323_vm1, %v1276_v51 }
 0x16a   : > { %v1222_v10 = vpack.c.bf16 %v3283_v9, %v3283_v9 }
 0x16c   : > { %1351 = vst.msk [vmem:[%s2713_s28 + $0x6c] sm:$0xf] %vm1323_vm1, %v1222_v10  ;;  %v1137_v10 = vpop.f32.mrf.mxu3  ;;  %v1020_v13 = vpop.f32.mrf.mxu1 }
 0x16d   : > { %v3337_v2 = vadd.f32 %v3324_v23, %v1137_v10  ;;  %2524 = vmatmul.msk.bf16.gmra.mxu3 %vm673_vm0, %v2590_v59  ;;  %v1494_v10 = vadd.f32 %v1493_v60, %v3079_v44  ;;  %v1497_v59 = vsel %vm673_vm0, %v3165_v48, 0.0 }
 0x16f   : > { %v945_v38 = vpop.f32.mrf.mxu0  ;;  %4258 = vst [vmem:[#allocation20_spill] sm:$0xff] %v3337_v2  ;;  %v1300_v54 = vpack.c.bf16 %v3337_v2, %v3337_v2  ;;  %v1496_v60 = vadd.f32 %v1495_v7, %v1494_v10  ;;  %v1501_v2 = vsel %vm673_vm0, %v3225_v4, 0.0  ;;  %v1890_v7 = vsel %vm673_vm0, %v1738_v36, 0.0 }
 0x170   : > { %v3296_v55 = vadd.f32 %v2704_v19, %v945_v38  ;;  %v1736_v19 = vmul.f32 %v3165_v48, %v3165_v48  ;;  %v1080_v48 = vpop.f32.mrf.mxu2 }
 0x171   : > { %1429 = vst.msk [vmem:[%s2713_s28 + $0x1a4] sm:$0xf] %vm1323_vm1, %v1300_v54 }
 0x172   : > { %v1223_v38 = vpack.c.bf16 %v3296_v55, %v3296_v55  ;;  %v1886_v31 = vsel %vm673_vm0, %v1736_v19, 0.0  ;;  %v1499_v19 = vsel %vm673_vm0, %v3189_v12, 0.0  ;;  %v1740_v12 = vmul.f32 %v3283_v9, %v3283_v9 }
 0x173   : > { %v1887_v49 = vadd.f32 %v1886_v31, %v1885_v62  ;;  %v1505_v31 = vsel %vm673_vm0, %v3283_v9, 0.0  ;;  %v1741_v36 = vmul.f32 %v3296_v55, %v3296_v55 }
 0x174   : > { %1352 = vst.msk [vmem:[%s2713_s28 + $0x70] sm:$0xf] %vm1323_vm1, %v1223_v38  ;;  %v1252_v38 = vpack.c.bf16 %v3314_v20, %v3314_v20  ;;  %v1140_v63 = vpop.f32.mrf.mxu3 }
 0x175   : > { %v1889_v10 = vadd.f32 %v1888_v39, %v1887_v49  ;;  %v3392_v39 = vadd.f32 %v3324_v23, %v1020_v13 }
 0x176   : > { %1381 = vst.msk [vmem:[%s2713_s28 + $0xe4] sm:$0xf] %vm1323_vm1, %v1252_v38  ;;  %v1498_v38 = vadd.f32 %v1497_v59, %v1496_v60 }
 0x177   : > { %v947_v37 = vpop.f32.mrf.mxu0  ;;  %v1891_v59 = vadd.f32 %v1890_v7, %v1889_v10  ;;  %v1896_v10 = vsel %vm673_vm0, %v1741_v36, 0.0 }
 0x178   : > { %v948_v44 = vadd.f32 %v3324_v23, %v947_v37  ;;  %v1739_v37 = vmul.f32 %v3249_v46, %v3249_v46  ;;  %v1500_v30 = vadd.f32 %v1499_v19, %v1498_v38  ;;  %v3395_v46 = vadd.f32 %v3324_v23, %v1080_v48  ;;  %v1082_v54 = vpop.f32.mrf.mxu2 }
 0x179   : > { %v1894_v19 = vsel %vm673_vm0, %v1740_v12, 0.0  ;;  %v1253_v48 = vpack.c.bf16 %v3392_v39, %v3392_v39 }
 0x17a   : > { %v1224_v6 = vpack.c.bf16 %v948_v44, %v948_v44  ;;  %v1892_v40 = vsel %vm673_vm0, %v1739_v37, 0.0  ;;  %v1502_v51 = vadd.f32 %v1501_v2, %v1500_v30  ;;  %v3398_v2 = vadd.f32 %v3324_v23, %v1140_v63  ;;  %v2591_v63 = vld [vmem:[%s2663_s23 + $0x1f0] sm:$0xff] }
 0x17b   : > { %v1893_v62 = vadd.f32 %v1892_v40, %v1891_v59  ;;  %v1507_v37 = vsel %vm673_vm0, %v3296_v55, 0.0  ;;  %v1742_v38 = vmul.f32 %v948_v44, %v948_v44  ;;  %v1277_v12 = vpack.c.bf16 %v3395_v46, %v3395_v46  ;;  %1382 = vst.msk [vmem:[%s2713_s28 + $0xe8] sm:$0xf] %vm1323_vm1, %v1253_v48 }
 0x17c   : > { %1353 = vst.msk [vmem:[%s2713_s28 + $0x74] sm:$0xf] %vm1323_vm1, %v1224_v6  ;;  %v1022_v6 = vpop.f32.mrf.mxu1  ;;  %v1142_v9 = vpop.f32.mrf.mxu3  ;;  %v1504_v60 = vadd.f32 %v1503_v24, %v1502_v51  ;;  %v3413_v24 = vadd.f32 %v3324_v23, %v1082_v54  ;;  %v1509_v55 = vsel %vm673_vm0, %v948_v44, 0.0  ;;  %v1301_v51 = vpack.c.bf16 %v3398_v2, %v3398_v2 }
 0x17d   : > { %v3406_v7 = vadd.f32 %v3324_v23, %v1022_v6  ;;  %v3421_v59 = vadd.f32 %v3324_v23, %v1142_v9  ;;  %2525 = vmatmul.msk.bf16.gmra.mxu3 %vm673_vm0, %v2591_v63  ;;  %1406 = vst.msk [vmem:[%s2713_s28 + $0x148] sm:$0xf] %vm1323_vm1, %v1277_v12  ;;  %v1745_v63 = vmul.f32 %v2748_v58, %v2748_v58 }
 0x17e   : > { %v1506_v30 = vadd.f32 %v1505_v31, %v1504_v60  ;;  %v1895_v31 = vadd.f32 %v1894_v19, %v1893_v62  ;;  %1430 = vst.msk [vmem:[%s2713_s28 + $0x1a8] sm:$0xf] %vm1323_vm1, %v1301_v51  ;;  %v1278_v62 = vpack.c.bf16 %v3413_v24, %v3413_v24  ;;  %v1746_v12 = vmul.f32 %v2755_v0, %v2755_v0 }
 0x17f   : > { %v950_v4 = vpop.f32.mrf.mxu0  ;;  %v1254_v6 = vpack.c.bf16 %v3406_v7, %v3406_v7 }
 0x180   : > { %v951_v49 = vadd.f32 %v3324_v23, %v950_v4  ;;  %v1508_v36 = vadd.f32 %v1507_v37, %v1506_v30  ;;  %v1898_v4 = vsel %vm673_vm0, %v1742_v38, 0.0  ;;  %v1897_v54 = vadd.f32 %v1896_v10, %v1895_v31  ;;  %1407 = vst.msk [vmem:[%s2713_s28 + $0x14c] sm:$0xf] %vm1323_vm1, %v1278_v62 }
 0x181   : > { %1383 = vst.msk [vmem:[%s2713_s28 + $0xec] sm:$0xf] %vm1323_vm1, %v1254_v6  ;;  %v1302_v38 = vpack.c.bf16 %v3421_v59, %v3421_v59  ;;  %v1515_v6 = vsel %vm673_vm0, %v2748_v58, 0.0  ;;  %v1517_v62 = vsel %vm673_vm0, %v2755_v0, 0.0  ;;  %v1748_v58 = vmul.f32 %v2787_v27, %v2787_v27 }
 0x182   : > { %v1225_v13 = vpack.c.bf16 %v951_v49, %v951_v49  ;;  %v1743_v40 = vmul.f32 %v951_v49, %v951_v49  ;;  %v1511_v44 = vsel %vm673_vm0, %v951_v49, 0.0  ;;  %v1510_v9 = vadd.f32 %v1509_v55, %v1508_v36 }
 0x183   : > { %v1899_v30 = vadd.f32 %v1898_v4, %v1897_v54  ;;  %1431 = vst.msk [vmem:[%s2713_s28 + $0x1ac] sm:$0xf] %vm1323_vm1, %v1302_v38  ;;  %v1747_v4 = vmul.f32 %v2780_v21, %v2780_v21 }
 0x184   : > { %1354 = vst.msk [vmem:[%s2713_s28 + $0x78] sm:$0xf] %vm1323_vm1, %v1225_v13  ;;  %v1025_v19 = vpop.f32.mrf.mxu1  ;;  %v1900_v37 = vsel %vm673_vm0, %v1743_v40, 0.0  ;;  %v1085_v13 = vpop.f32.mrf.mxu2  ;;  %v1512_v10 = vadd.f32 %v1511_v44, %v1510_v9 }
 0x185   : > { %v1145_v48 = vpop.f32.mrf.mxu3  ;;  %v1901_v31 = vadd.f32 %v1900_v37, %v1899_v30  ;;  %v1906_v37 = vsel %vm673_vm0, %v1746_v12, 0.0 }
 0x186   : > { %v3474_v0 = vadd.f32 %v3324_v23, %v1145_v48 }
 0x187   : > { %v952_v60 = vpop.f32.mrf.mxu0 }
 0x188   : > { %v953_v49 = vadd.f32 %v3324_v23, %v952_v60  ;;  %v1904_v60 = vsel %vm673_vm0, %v1745_v63, 0.0  ;;  %v3471_v63 = vadd.f32 %v3324_v23, %v1085_v13 }
 0x18a   : > { %v1226_v55 = vpack.c.bf16 %v953_v49, %v953_v49  ;;  %v1513_v40 = vsel %vm673_vm0, %v953_v49, 0.0  ;;  %v1744_v51 = vmul.f32 %v953_v49, %v953_v49  ;;  %v1519_v49 = vsel %vm673_vm0, %v2780_v21, 0.0 }
 0x18b   : > { %v1514_v36 = vadd.f32 %v1513_v40, %v1512_v10  ;;  %v3468_v40 = vadd.f32 %v3324_v23, %v1025_v19  ;;  %v1749_v19 = vmul.f32 %v2812_v47, %v2812_v47  ;;  %v1279_v48 = vpack.c.bf16 %v3471_v63, %v3471_v63 }
 0x18c   : > { %1355 = vst.msk [vmem:[%s2713_s28 + $0x7c] sm:$0xf] %vm1323_vm1, %v1226_v55  ;;  %v1902_v44 = vsel %vm673_vm0, %v1744_v51, 0.0  ;;  %v1027_v10 = vpop.f32.mrf.mxu1  ;;  %v1908_v55 = vsel %vm673_vm0, %v1747_v4, 0.0  ;;  %v1087_v12 = vpop.f32.mrf.mxu2  ;;  %v1521_v51 = vsel %vm673_vm0, %v2787_v27, 0.0  ;;  %v1910_v27 = vsel %vm673_vm0, %v1748_v58, 0.0 }
 0x18d   : > { %v1516_v54 = vadd.f32 %v1515_v6, %v1514_v36  ;;  %v1903_v9 = vadd.f32 %v1902_v44, %v1901_v31  ;;  %v1147_v21 = vpop.f32.mrf.mxu3  ;;  %v3479_v6 = vadd.f32 %v3324_v23, %v1027_v10  ;;  %v1255_v13 = vpack.c.bf16 %v3468_v40, %v3468_v40  ;;  %v2592_v44 = vld [vmem:[%s2663_s23 + $0x1f8] sm:$0xff]  ;;  %1408 = vst.msk [vmem:[%s2713_s28 + $0x150] sm:$0xf] %vm1323_vm1, %v1279_v48 }
 0x18e   : > { %v3488_v4 = vadd.f32 %v3324_v23, %v1087_v12  ;;  %2526 = vmatmul.msk.bf16.gmra.mxu3 %vm673_vm0, %v2592_v44  ;;  %v1525_v10 = vsel %vm673_vm0, %v2819_v53, 0.0 }
 0x18f   : > { %v1518_v38 = vadd.f32 %v1517_v62, %v1516_v54  ;;  %v1905_v30 = vadd.f32 %v1904_v60, %v1903_v9  ;;  %v1523_v60 = vsel %vm673_vm0, %v2812_v47, 0.0  ;;  %v1750_v62 = vmul.f32 %v2819_v53, %v2819_v53  ;;  %1384 = vst.msk [vmem:[%s2713_s28 + $0xf0] sm:$0xf] %vm1323_vm1, %v1255_v13 }
 0x190   : > { %v1256_v47 = vpack.c.bf16 %v3479_v6, %v3479_v6  ;;  %v1280_v12 = vpack.c.bf16 %v3488_v4, %v3488_v4  ;;  %v1752_v53 = vmul.f32 %v2851_v17, %v2851_v17 }
 0x191   : > { %v1520_v31 = vadd.f32 %v1519_v49, %v1518_v38  ;;  %v1907_v36 = vadd.f32 %v1906_v37, %v1905_v30  ;;  %v1303_v37 = vpack.c.bf16 %v3474_v0, %v3474_v0  ;;  %v3501_v49 = vadd.f32 %v3324_v23, %v1147_v21 }
 0x192   : > { %v1912_v30 = vsel %vm673_vm0, %v1749_v19, 0.0  ;;  %1385 = vst.msk [vmem:[%s2713_s28 + $0xf4] sm:$0xf] %vm1323_vm1, %v1256_v47  ;;  %v1527_v19 = vsel %vm673_vm0, %v2844_v11, 0.0  ;;  %v1531_v47 = vsel %vm673_vm0, %v2876_v41, 0.0 }
 0x193   : > { %v1522_v54 = vadd.f32 %v1521_v51, %v1520_v31  ;;  %v1909_v9 = vadd.f32 %v1908_v55, %v1907_v36  ;;  %v1751_v55 = vmul.f32 %v2844_v11, %v2844_v11  ;;  %1432 = vst.msk [vmem:[%s2713_s28 + $0x1b0] sm:$0xf] %vm1323_vm1, %v1303_v37  ;;  %v1914_v36 = vsel %vm673_vm0, %v1750_v62, 0.0 }
 0x194   : > { %v1030_v31 = vpop.f32.mrf.mxu1  ;;  %1409 = vst.msk [vmem:[%s2713_s28 + $0x154] sm:$0xf] %vm1323_vm1, %v1280_v12  ;;  %v1304_v13 = vpack.c.bf16 %v3501_v49, %v3501_v49  ;;  %v1090_v48 = vpop.f32.mrf.mxu2  ;;  %v1753_v11 = vmul.f32 %v2876_v41, %v2876_v41  ;;  %v1754_v62 = vmul.f32 %v2888_v50, %v2888_v50  ;;  %v1533_v12 = vsel %vm673_vm0, %v2888_v50, 0.0 }
 0x195   : > { %v1524_v38 = vadd.f32 %v1523_v60, %v1522_v54  ;;  %v1911_v58 = vadd.f32 %v1910_v27, %v1909_v9  ;;  %v1150_v44 = vpop.f32.mrf.mxu3  ;;  %v1916_v9 = vsel %vm673_vm0, %v1751_v55, 0.0  ;;  %v1529_v60 = vsel %vm673_vm0, %v2851_v17, 0.0 }
 0x196   : > { %1433 = vst.msk [vmem:[%s2713_s28 + $0x1b4] sm:$0xf] %vm1323_vm1, %v1304_v13  ;;  %v1920_v55 = vsel %vm673_vm0, %v1753_v11, 0.0  ;;  %v3558_v50 = vadd.f32 %v3324_v23, %v1150_v44 }
 0x197   : > { %v1526_v21 = vadd.f32 %v1525_v10, %v1524_v38  ;;  %v1913_v51 = vadd.f32 %v1912_v30, %v1911_v58  ;;  %v1918_v58 = vsel %vm673_vm0, %v1752_v53, 0.0  ;;  %v1755_v30 = vmul.f32 %v2922_v14, %v2922_v14 }
 0x199   : > { %v1528_v27 = vadd.f32 %v1527_v19, %v1526_v21  ;;  %v1915_v54 = vadd.f32 %v1914_v36, %v1913_v51  ;;  %v1922_v21 = vsel %vm673_vm0, %v1754_v62, 0.0  ;;  %v1535_v51 = vsel %vm673_vm0, %v2922_v14, 0.0 }
 0x19a   : > { %v1756_v36 = vmul.f32 %v2934_v25, %v2934_v25  ;;  %v1924_v13 = vsel %vm673_vm0, %v1755_v30, 0.0  ;;  %v1539_v30 = vsel %vm673_vm0, %v2968_v56, 0.0 }
 0x19b   : > { %v1530_v37 = vadd.f32 %v1529_v60, %v1528_v27  ;;  %v1917_v38 = vadd.f32 %v1916_v9, %v1915_v54  ;;  %v3552_v27 = vadd.f32 %v3324_v23, %v1030_v31  ;;  %v3555_v54 = vadd.f32 %v3324_v23, %v1090_v48 }
 0x19c   : > { %v1032_v53 = vpop.f32.mrf.mxu1  ;;  %v1092_v9 = vpop.f32.mrf.mxu2  ;;  %v1537_v60 = vsel %vm673_vm0, %v2934_v25, 0.0  ;;  %v1757_v31 = vmul.f32 %v2968_v56, %v2968_v56  ;;  %v1926_v25 = vsel %vm673_vm0, %v1756_v36, 0.0  ;;  %v1541_v36 = vsel %vm673_vm0, %v2979_v1, 0.0 }
 0x19d   : > { %v1532_v10 = vadd.f32 %v1531_v47, %v1530_v37  ;;  %v1919_v17 = vadd.f32 %v1918_v58, %v1917_v38  ;;  %v1152_v14 = vpop.f32.mrf.mxu3  ;;  %v3563_v37 = vadd.f32 %v3324_v23, %v1032_v53  ;;  %v1257_v48 = vpack.c.bf16 %v3552_v27, %v3552_v27 }
 0x19e   : > { %v1281_v44 = vpack.c.bf16 %v3555_v54, %v3555_v54  ;;  %v3572_v38 = vadd.f32 %v3324_v23, %v1092_v9 }
 0x19f   : > { %v1534_v19 = vadd.f32 %v1533_v12, %v1532_v10  ;;  %v1921_v41 = vadd.f32 %v1920_v55, %v1919_v17  ;;  %v1758_v10 = vmul.f32 %v2979_v1, %v2979_v1  ;;  %1386 = vst.msk [vmem:[%s2713_s28 + $0xf8] sm:$0xf] %vm1323_vm1, %v1257_v48  ;;  %v1305_v17 = vpack.c.bf16 %v3558_v50, %v3558_v50 }
 0x1a0   : > { %v3584_v55 = vadd.f32 %v3324_v23, %v1152_v14  ;;  %1410 = vst.msk [vmem:[%s2713_s28 + $0x158] sm:$0xf] %vm1323_vm1, %v1281_v44  ;;  %v1258_v56 = vpack.c.bf16 %v3563_v37, %v3563_v37  ;;  %v1543_v14 = vsel %vm673_vm0, %v3012_v34, 0.0  ;;  %v1760_v1 = vmul.f32 %v3023_v43, %v3023_v43 }
 0x1a1   : > { %v1536_v11 = vadd.f32 %v1535_v51, %v1534_v19  ;;  %v1923_v62 = vadd.f32 %v1922_v21, %v1921_v41  ;;  %v1928_v51 = vsel %vm673_vm0, %v1757_v31, 0.0  ;;  %v1759_v19 = vmul.f32 %v3012_v34, %v3012_v34  ;;  %1434 = vst.msk [vmem:[%s2713_s28 + $0x1b8] sm:$0xf] %vm1323_vm1, %v1305_v17 }
 0x1a2   : > { %v1282_v41 = vpack.c.bf16 %v3572_v38, %v3572_v38  ;;  %1387 = vst.msk [vmem:[%s2713_s28 + $0xfc] sm:$0xf] %vm1323_vm1, %v1258_v56  ;;  %v1930_v9 = vsel %vm673_vm0, %v1758_v10, 0.0  ;;  %v1761_v34 = vmul.f32 %v3054_v16, %v3054_v16  ;;  %v1934_v10 = vsel %vm673_vm0, %v1760_v1, 0.0 }
 0x1a3   : > { %v1538_v58 = vadd.f32 %v1537_v60, %v1536_v11  ;;  %v1925_v47 = vadd.f32 %v1924_v13, %v1923_v62  ;;  %v1306_v60 = vpack.c.bf16 %v3584_v55, %v3584_v55  ;;  %v1932_v44 = vsel %vm673_vm0, %v1759_v19, 0.0 }
 0x1a4   : > { %1411 = vst.msk [vmem:[%s2713_s28 + $0x15c] sm:$0xf] %vm1323_vm1, %v1282_v41  ;;  %v1095_v11 = vpop.f32.mrf.mxu2  ;;  %v1547_v17 = vsel %vm673_vm0, %v3054_v16, 0.0  ;;  %v1936_v56 = vsel %vm673_vm0, %v1761_v34, 0.0  ;;  %v1551_v19 = vsel %vm673_vm0, %v3116_v5, 0.0  ;;  %v1764_v16 = vmul.f32 %v3136_v26, %v3136_v26 }
 0x1a5   : > { %v1927_v12 = vadd.f32 %v1926_v25, %v1925_v47  ;;  %v1540_v21 = vadd.f32 %v1539_v30, %v1538_v58  ;;  %v1155_v62 = vpop.f32.mrf.mxu3  ;;  %v1545_v25 = vsel %vm673_vm0, %v3023_v43, 0.0  ;;  %1435 = vst.msk [vmem:[%s2713_s28 + $0x1bc] sm:$0xf] %vm1323_vm1, %v1306_v60  ;;  %v1762_v58 = vmul.f32 %v3072_v33, %v3072_v33 }
 0x1a7   : > { %v1542_v53 = vadd.f32 %v1541_v36, %v1540_v21  ;;  %v1929_v13 = vadd.f32 %v1928_v51, %v1927_v12  ;;  %v1763_v12 = vmul.f32 %v3116_v5, %v3116_v5  ;;  %v1549_v51 = vsel %vm673_vm0, %v3072_v33, 0.0 }
 0x1a8   : > { %v1938_v36 = vsel %vm673_vm0, %v1762_v58, 0.0 }
 0x1a9   : > { %v1544_v31 = vadd.f32 %v1543_v14, %v1542_v53  ;;  %v1931_v48 = vadd.f32 %v1930_v9, %v1929_v13  ;;  %v1940_v13 = vsel %vm673_vm0, %v1763_v12, 0.0  ;;  %v3634_v9 = vadd.f32 %v3324_v23, %v1095_v11 }
 0x1aa   : > { %v3637_v14 = vadd.f32 %v3324_v23, %v1155_v62  ;;  %v1765_v11 = vmul.f32 %v3176_v61, %v3176_v61 }
 0x1ab   : > { %v1546_v47 = vadd.f32 %v1545_v25, %v1544_v31  ;;  %v1933_v30 = vadd.f32 %v1932_v44, %v1931_v48  ;;  %v1553_v44 = vsel %vm673_vm0, %v3136_v26, 0.0  ;;  %v1283_v62 = vpack.c.bf16 %v3634_v9, %v3634_v9 }
 0x1ac   : > { %v1097_v33 = vpop.f32.mrf.mxu2  ;;  %v1307_v25 = vpack.c.bf16 %v3637_v14, %v3637_v14  ;;  %v1766_v26 = vmul.f32 %v3196_v29, %v3196_v29 }
 0x1ad   : > { %v1548_v21 = vadd.f32 %v1547_v17, %v1546_v47  ;;  %v1935_v43 = vadd.f32 %v1934_v10, %v1933_v30  ;;  %v1157_v1 = vpop.f32.mrf.mxu3  ;;  %v3640_v5 = vadd.f32 %v3324_v23, %v1097_v33  ;;  %v1942_v47 = vsel %vm673_vm0, %v1764_v16, 0.0  ;;  %1412 = vst.msk [vmem:[%s2713_s28 + $0x160] sm:$0xf] %vm1323_vm1, %v1283_v62 }
 0x1ae   : > { %v3643_v48 = vadd.f32 %v3324_v23, %v1157_v1  ;;  %v1555_v30 = vsel %vm673_vm0, %v3176_v61, 0.0  ;;  %1436 = vst.msk [vmem:[%s2713_s28 + $0x1c0] sm:$0xf] %vm1323_vm1, %v1307_v25  ;;  %v1557_v61 = vsel %vm673_vm0, %v3196_v29, 0.0  ;;  %v1563_v25 = vsel %vm673_vm0, %v3299_v32, 0.0 }
 0x1af   : > { %v1550_v41 = vadd.f32 %v1549_v51, %v1548_v21  ;;  %v1937_v53 = vadd.f32 %v1936_v56, %v1935_v43  ;;  %v1284_v10 = vpack.c.bf16 %v3640_v5, %v3640_v5  ;;  %v1944_v43 = vsel %vm673_vm0, %v1765_v11, 0.0 }
 0x1b0   : > { %v1308_v21 = vpack.c.bf16 %v3643_v48, %v3643_v48  ;;  %v1767_v56 = vmul.f32 %v3236_v22, %v3236_v22 }
 0x1b1   : > { %v1552_v60 = vadd.f32 %v1551_v19, %v1550_v41  ;;  %v1939_v31 = vadd.f32 %v1938_v36, %v1937_v53  ;;  %1413 = vst.msk [vmem:[%s2713_s28 + $0x164] sm:$0xf] %vm1323_vm1, %v1284_v10  ;;  %v1946_v19 = vsel %vm673_vm0, %v1766_v26, 0.0  ;;  %v1559_v41 = vsel %vm673_vm0, %v3236_v22, 0.0 }
 0x1b2   : > { %1437 = vst.msk [vmem:[%s2713_s28 + $0x1c4] sm:$0xf] %vm1323_vm1, %v1308_v21  ;;  %v1768_v53 = vmul.f32 %v3256_v8, %v3256_v8  ;;  %v1948_v1 = vsel %vm673_vm0, %v1767_v56, 0.0  ;;  %v1770_v22 = vmul.f32 %v3314_v20, %v3314_v20 }
 0x1b3   : > { %v1554_v34 = vadd.f32 %v1553_v44, %v1552_v60  ;;  %v1941_v58 = vadd.f32 %v1940_v13, %v1939_v31  ;;  %v1561_v60 = vsel %vm673_vm0, %v3256_v8, 0.0  ;;  %v1769_v31 = vmul.f32 %v3299_v32, %v3299_v32 }
 0x1b4   : > { %v1100_v13 = vpop.f32.mrf.mxu2  ;;  %v1950_v62 = vsel %vm673_vm0, %v1768_v53, 0.0  ;;  %v1772_v32 = vmul.f32 %v3406_v7, %v3406_v7  ;;  %v1773_v53 = vmul.f32 %v3468_v40, %v3468_v40 }
 0x1b5   : > { %v1556_v17 = vadd.f32 %v1555_v30, %v1554_v34  ;;  %v1943_v12 = vadd.f32 %v1942_v47, %v1941_v58  ;;  %v1160_v16 = vpop.f32.mrf.mxu3  ;;  %v1771_v34 = vmul.f32 %v3392_v39, %v3392_v39  ;;  %v1952_v8 = vsel %vm673_vm0, %v1769_v31, 0.0 }
 0x1b6   : > { %v1565_v30 = vsel %vm673_vm0, %v3314_v20, 0.0 }
 0x1b7   : > { %v1558_v51 = vadd.f32 %v1557_v61, %v1556_v17  ;;  %v1945_v36 = vadd.f32 %v1944_v43, %v1943_v12  ;;  %v1954_v17 = vsel %vm673_vm0, %v1770_v22, 0.0  ;;  %v1567_v12 = vsel %vm673_vm0, %v3392_v39, 0.0 }
 0x1b8   : > { %v1956_v21 = vsel %vm673_vm0, %v1771_v34, 0.0  ;;  %v3702_v43 = vadd.f32 %v3324_v23, %v1100_v13  ;;  %v3705_v61 = vadd.f32 %v3324_v23, %v1160_v16 }
 0x1b9   : > { %v1560_v29 = vadd.f32 %v1559_v41, %v1558_v51  ;;  %v1947_v33 = vadd.f32 %v1946_v19, %v1945_v36  ;;  %v1569_v41 = vsel %vm673_vm0, %v3406_v7, 0.0  ;;  %v1774_v7 = vmul.f32 %v3479_v6, %v3479_v6 }
 0x1ba   : > { %v1285_v13 = vpack.c.bf16 %v3702_v43, %v3702_v43  ;;  %v1309_v16 = vpack.c.bf16 %v3705_v61, %v3705_v61 }
 0x1bb   : > { %v1562_v44 = vadd.f32 %v1561_v60, %v1560_v29  ;;  %v1949_v11 = vadd.f32 %v1948_v1, %v1947_v33  ;;  %v1958_v1 = vsel %vm673_vm0, %v1772_v32, 0.0  ;;  %v1571_v60 = vsel %vm673_vm0, %v3468_v40, 0.0 }
 0x1bc   : > { %v1102_v20 = vpop.f32.mrf.mxu2  ;;  %1414 = vst.msk [vmem:[%s2713_s28 + $0x168] sm:$0xf] %vm1323_vm1, %v1285_v13  ;;  %v1573_v40 = vsel %vm673_vm0, %v3479_v6, 0.0  ;;  %v1577_v32 = vsel %vm673_vm0, %v3563_v37, 0.0 }
 0x1bd   : > { %v1564_v58 = vadd.f32 %v1563_v25, %v1562_v44  ;;  %v1951_v47 = vadd.f32 %v1950_v62, %v1949_v11  ;;  %v1162_v56 = vpop.f32.mrf.mxu3  ;;  %v3708_v19 = vadd.f32 %v3324_v23, %v1102_v20  ;;  %1438 = vst.msk [vmem:[%s2713_s28 + $0x1c8] sm:$0xf] %vm1323_vm1, %v1309_v16  ;;  %v1960_v62 = vsel %vm673_vm0, %v1773_v53, 0.0 }
 0x1be   : > { %v3711_v39 = vadd.f32 %v3324_v23, %v1162_v56  ;;  %v1775_v25 = vmul.f32 %v3552_v27, %v3552_v27  ;;  %v1778_v20 = vmul.f32 %v2893_v52, %v2893_v52 }
 0x1bf   : > { %v1953_v26 = vadd.f32 %v1952_v8, %v1951_v47  ;;  %v1566_v10 = vadd.f32 %v1565_v30, %v1564_v58  ;;  %v1286_v31 = vpack.c.bf16 %v3708_v19, %v3708_v19  ;;  %v1962_v47 = vsel %vm673_vm0, %v1774_v7, 0.0 }
 0x1c0   : > { %v1310_v22 = vpack.c.bf16 %v3711_v39, %v3711_v39  ;;  %v1575_v8 = vsel %vm673_vm0, %v3552_v27, 0.0  ;;  %v1776_v30 = vmul.f32 %v3563_v37, %v3563_v37  ;;  %v1581_v37 = vsel %vm673_vm0, %v2893_v52, 0.0 }
 0x1c1   : > { %v1955_v51 = vadd.f32 %v1954_v17, %v1953_v26  ;;  %v1568_v36 = vadd.f32 %v1567_v12, %v1566_v10  ;;  %1415 = vst.msk [vmem:[%s2713_s28 + $0x16c] sm:$0xf] %vm1323_vm1, %v1286_v31  ;;  %v1777_v12 = vmul.f32 %v2879_v42, %v2879_v42  ;;  %v1780_v7 = vmul.f32 %v2939_v28, %v2939_v28 }
 0x1c2   : > { %1439 = vst.msk [vmem:[%s2713_s28 + $0x1cc] sm:$0xf] %vm1323_vm1, %v1310_v22 }
 0x1c3   : > { %v1957_v29 = vadd.f32 %v1956_v21, %v1955_v51  ;;  %v1570_v33 = vadd.f32 %v1569_v41, %v1568_v36  ;;  %v1964_v21 = vsel %vm673_vm0, %v1775_v25, 0.0  ;;  %v1579_v51 = vsel %vm673_vm0, %v2879_v42, 0.0 }
 0x1c4   : > { %v1105_v26 = vpop.f32.mrf.mxu2  ;;  %v1779_v36 = vmul.f32 %v2925_v15, %v2925_v15  ;;  %v1966_v41 = vsel %vm673_vm0, %v1776_v30, 0.0  ;;  %v1968_v16 = vsel %vm673_vm0, %v1777_v12, 0.0  ;;  %v1585_v25 = vsel %vm673_vm0, %v2939_v28, 0.0 }
 0x1c5   : > { %v1959_v44 = vadd.f32 %v1958_v1, %v1957_v29  ;;  %v1572_v11 = vadd.f32 %v1571_v60, %v1570_v33  ;;  %v1165_v10 = vpop.f32.mrf.mxu3  ;;  %v1970_v29 = vsel %vm673_vm0, %v1778_v20, 0.0  ;;  %v1583_v33 = vsel %vm673_vm0, %v2925_v15, 0.0 }
 0x1c6   : > { %v1972_v42 = vsel %vm673_vm0, %v1779_v36, 0.0  ;;  %v3770_v31 = vadd.f32 %v3324_v23, %v1105_v26  ;;  %v1974_v26 = vsel %vm673_vm0, %v1780_v7, 0.0  ;;  %v1782_v28 = vmul.f32 %v2984_v3, %v2984_v3 }
 0x1c7   : > { %v1961_v34 = vadd.f32 %v1960_v62, %v1959_v44  ;;  %v1574_v58 = vadd.f32 %v1573_v40, %v1572_v11  ;;  %v3773_v44 = vadd.f32 %v3324_v23, %v1165_v10  ;;  %v1587_v10 = vsel %vm673_vm0, %v2971_v57, 0.0 }
 0x1c8   : > { %v1783_v20 = vmul.f32 %v3015_v35, %v3015_v35  ;;  %v1591_v36 = vsel %vm673_vm0, %v3015_v35, 0.0 }
 0x1c9   : > { %v1963_v6 = vadd.f32 %v1962_v47, %v1961_v34  ;;  %v1576_v17 = vadd.f32 %v1575_v8, %v1574_v58  ;;  %v1781_v34 = vmul.f32 %v2971_v57, %v2971_v57  ;;  %v1287_v58 = vpack.c.bf16 %v3770_v31, %v3770_v31 }
 0x1ca   : > { %v1311_v47 = vpack.c.bf16 %v3773_v44, %v3773_v44  ;;  %v1589_v57 = vsel %vm673_vm0, %v2984_v3, 0.0 }
 0x1cb   : > { %v1965_v56 = vadd.f32 %v1964_v21, %v1963_v6  ;;  %v1578_v27 = vadd.f32 %v1577_v32, %v1576_v17  ;;  %1416 = vst.msk [vmem:[%s2713_s28 + $0x170] sm:$0xf] %vm1323_vm1, %v1287_v58  ;;  %v1976_v32 = vsel %vm673_vm0, %v1781_v34, 0.0 }
 0x1cc   : > { %v1107_v52 = vpop.f32.mrf.mxu2  ;;  %1440 = vst.msk [vmem:[%s2713_s28 + $0x1d0] sm:$0xf] %vm1323_vm1, %v1311_v47 }
 0x1cd   : > { %v1580_v53 = vadd.f32 %v1579_v51, %v1578_v27  ;;  %v1967_v13 = vadd.f32 %v1966_v41, %v1965_v56  ;;  %v1167_v11 = vpop.f32.mrf.mxu3  ;;  %v3776_v15 = vadd.f32 %v3324_v23, %v1107_v52  ;;  %v1978_v51 = vsel %vm673_vm0, %v1782_v28, 0.0 }
 0x1ce   : > { %v3779_v40 = vadd.f32 %v3324_v23, %v1167_v11  ;;  %v1784_v41 = vmul.f32 %v3028_v45, %v3028_v45  ;;  %v1595_v52 = vsel %vm673_vm0, %v3057_v18, 0.0  ;;  %v4260_v11 = vld [vmem:[#allocation5_spill] sm:$0xff] }
 0x1cf   : > { %v1582_v1 = vadd.f32 %v1581_v37, %v1580_v53  ;;  %v1969_v60 = vadd.f32 %v1968_v16, %v1967_v13  ;;  %v1288_v6 = vpack.c.bf16 %v3776_v15, %v3776_v15  ;;  %v1980_v37 = vsel %vm673_vm0, %v1783_v20, 0.0 }
 0x1d0   : > { %v1312_v21 = vpack.c.bf16 %v3779_v40, %v3779_v40  ;;  %v1982_v7 = vsel %vm673_vm0, %v1784_v41, 0.0  ;;  %v1599_v47 = vsel %vm673_vm0, %v4260_v11, 0.0 }
 0x1d1   : > { %v1584_v22 = vadd.f32 %v1583_v33, %v1582_v1  ;;  %v1971_v62 = vadd.f32 %v1970_v29, %v1969_v60  ;;  %1417 = vst.msk [vmem:[%s2713_s28 + $0x174] sm:$0xf] %vm1323_vm1, %v1288_v6  ;;  %v1593_v29 = vsel %vm673_vm0, %v3028_v45, 0.0  ;;  %v1785_v33 = vmul.f32 %v3057_v18, %v3057_v18  ;;  %v4259_v1 = vld [vmem:[#allocation3_spill] sm:$0xff] }
 0x1d2   : > { %1441 = vst.msk [vmem:[%s2713_s28 + $0x1d4] sm:$0xf] %vm1323_vm1, %v1312_v21  ;;  %v1786_v60 = vmul.f32 %v4259_v1, %v4259_v1  ;;  %v1597_v34 = vsel %vm673_vm0, %v4259_v1, 0.0  ;;  %v4261_v18 = vld [vmem:[#allocation7_spill] sm:$0xff] }
 0x1d3   : > { %v1586_v8 = vadd.f32 %v1585_v25, %v1584_v22  ;;  %v1973_v30 = vadd.f32 %v1972_v42, %v1971_v62  ;;  %v1787_v22 = vmul.f32 %v4260_v11, %v4260_v11  ;;  %v1984_v45 = vsel %vm673_vm0, %v1785_v33, 0.0 }
 0x1d4   : > { %v1110_v53 = vpop.f32.mrf.mxu2  ;;  %v1986_v58 = vsel %vm673_vm0, %v1786_v60, 0.0 }
 0x1d5   : > { %v1588_v17 = vadd.f32 %v1587_v10, %v1586_v8  ;;  %v1975_v12 = vadd.f32 %v1974_v26, %v1973_v30  ;;  %v1170_v13 = vpop.f32.mrf.mxu3  ;;  %v1988_v26 = vsel %vm673_vm0, %v1787_v22, 0.0  ;;  %v1788_v10 = vmul.f32 %v4261_v18, %v4261_v18 }
 0x1d6   : > { %v3838_v28 = vadd.f32 %v3324_v23, %v1110_v53  ;;  %v3841_v6 = vadd.f32 %v3324_v23, %v1170_v13 }
 0x1d7   : > { %v1590_v56 = vadd.f32 %v1589_v57, %v1588_v17  ;;  %v1977_v27 = vadd.f32 %v1976_v32, %v1975_v12 }
 0x1d8   : > { %v1313_v41 = vpack.c.bf16 %v3841_v6, %v3841_v6 }
 0x1d9   : > { %v1592_v3 = vadd.f32 %v1591_v36, %v1590_v56  ;;  %v1979_v16 = vadd.f32 %v1978_v51, %v1977_v27  ;;  %v1601_v56 = vsel %vm673_vm0, %v4261_v18, 0.0  ;;  %v4262_v27 = vld [vmem:[#allocation9_spill] sm:$0xff]  ;;  %v1289_v36 = vpack.c.bf16 %v3838_v28, %v3838_v28 }
 0x1da   : > { %v1789_v51 = vmul.f32 %v4262_v27, %v4262_v27  ;;  %1442 = vst.msk [vmem:[%s2713_s28 + $0x1d8] sm:$0xf] %vm1323_vm1, %v1313_v41 }
 0x1db   : > { %v1594_v42 = vadd.f32 %v1593_v29, %v1592_v3  ;;  %v1981_v35 = vadd.f32 %v1980_v37, %v1979_v16  ;;  %v1990_v3 = vsel %vm673_vm0, %v1788_v10, 0.0  ;;  %v1603_v16 = vsel %vm673_vm0, %v4262_v27, 0.0  ;;  %v4263_v37 = vld [vmem:[#allocation11_spill] sm:$0xff]  ;;  %1418 = vst.msk [vmem:[%s2713_s28 + $0x178] sm:$0xf] %vm1323_vm1, %v1289_v36  ;;  %v4266_v10 = vld [vmem:[#allocation17_spill] sm:$0xff] }
 0x1dc   : > { %v1112_v17 = vpop.f32.mrf.mxu2  ;;  %v1790_v29 = vmul.f32 %v4263_v37, %v4263_v37  ;;  %v4267_v27 = vld [vmem:[#allocation19_spill] sm:$0xff] }
 0x1dd   : > { %v1596_v62 = vadd.f32 %v1595_v52, %v1594_v42  ;;  %v1983_v25 = vadd.f32 %v1982_v7, %v1981_v35  ;;  %v1172_v12 = vpop.f32.mrf.mxu3  ;;  %v3844_v57 = vadd.f32 %v3324_v23, %v1112_v17  ;;  %v1992_v35 = vsel %vm673_vm0, %v1789_v51, 0.0  ;;  %v4264_v52 = vld [vmem:[#allocation13_spill] sm:$0xff] }
 0x1de   : > { %v3847_v20 = vadd.f32 %v3324_v23, %v1172_v12  ;;  %v1605_v7 = vsel %vm673_vm0, %v4263_v37, 0.0  ;;  %v1791_v11 = vmul.f32 %v4264_v52, %v4264_v52  ;;  %v1793_v17 = vmul.f32 %v4266_v10, %v4266_v10 }
 0x1df   : > { %v1598_v8 = vadd.f32 %v1597_v34, %v1596_v62  ;;  %v1985_v30 = vadd.f32 %v1984_v45, %v1983_v25  ;;  %v1290_v33 = vpack.c.bf16 %v3844_v57, %v3844_v57  ;;  %v1994_v25 = vsel %vm673_vm0, %v1790_v29, 0.0  ;;  %v4265_v34 = vld [vmem:[#allocation15_spill] sm:$0xff] }
 0x1e0   : > { %v1314_v42 = vpack.c.bf16 %v3847_v20, %v3847_v20  ;;  %v1607_v45 = vsel %vm673_vm0, %v4264_v52, 0.0  ;;  %v1609_v18 = vsel %vm673_vm0, %v4265_v34, 0.0  ;;  %v1794_v51 = vmul.f32 %v4267_v27, %v4267_v27 }
 0x1e1   : > { %v1600_v21 = vadd.f32 %v1599_v47, %v1598_v8  ;;  %v1987_v32 = vadd.f32 %v1986_v58, %v1985_v30  ;;  %1419 = vst.msk [vmem:[%s2713_s28 + $0x17c] sm:$0xf] %vm1323_vm1, %v1290_v33  ;;  %v1792_v58 = vmul.f32 %v4265_v34, %v4265_v34  ;;  %v1615_v33 = vsel %vm673_vm0, %v3395_v46, 0.0 }
 0x1e2   : > { %1443 = vst.msk [vmem:[%s2713_s28 + $0x1dc] sm:$0xf] %vm1323_vm1, %v1314_v42  ;;  %v2002_v29 = vsel %vm673_vm0, %v1794_v51, 0.0 }
 0x1e3   : > { %v1989_v53 = vadd.f32 %v1988_v26, %v1987_v32  ;;  %v1602_v13 = vadd.f32 %v1601_v56, %v1600_v21  ;;  %v1996_v26 = vsel %vm673_vm0, %v1791_v11, 0.0  ;;  %v1998_v32 = vsel %vm673_vm0, %v1792_v58, 0.0 }
 0x1e4   : > { %v1611_v56 = vsel %vm673_vm0, %v4266_v10, 0.0 }
 0x1e5   : > { %v1604_v1 = vadd.f32 %v1603_v16, %v1602_v13  ;;  %v1991_v60 = vadd.f32 %v1990_v3, %v1989_v53  ;;  %v1175_v47 = vpop.f32.mrf.mxu3  ;;  %v2000_v53 = vsel %vm673_vm0, %v1793_v17, 0.0  ;;  %v1613_v13 = vsel %vm673_vm0, %v4267_v27, 0.0 }
 0x1e6   : > { %v1795_v3 = vmul.f32 %v3395_v46, %v3395_v46  ;;  %v1797_v46 = vmul.f32 %v3471_v63, %v3471_v63 }
 0x1e7   : > { %v1606_v22 = vadd.f32 %v1605_v7, %v1604_v1  ;;  %v1993_v62 = vadd.f32 %v1992_v35, %v1991_v60  ;;  %v1796_v1 = vmul.f32 %v3413_v24, %v3413_v24  ;;  %v3905_v60 = vadd.f32 %v3324_v23, %v1175_v47 }
 0x1e8   : > { %v2004_v11 = vsel %vm673_vm0, %v1795_v3, 0.0  ;;  %v1798_v47 = vmul.f32 %v3488_v4, %v3488_v4  ;;  %v1802_v3 = vmul.f32 %v3640_v5, %v3640_v5 }
 0x1e9   : > { %v1608_v8 = vadd.f32 %v1607_v45, %v1606_v22  ;;  %v1995_v30 = vadd.f32 %v1994_v25, %v1993_v62  ;;  %v1617_v22 = vsel %vm673_vm0, %v3413_v24, 0.0  ;;  %v1315_v62 = vpack.c.bf16 %v3905_v60, %v3905_v60 }
 0x1ea   : > { %v2006_v58 = vsel %vm673_vm0, %v1796_v1, 0.0 }
 0x1eb   : > { %v1610_v12 = vadd.f32 %v1609_v18, %v1608_v8  ;;  %v1997_v21 = vadd.f32 %v1996_v26, %v1995_v30  ;;  %1444 = vst.msk [vmem:[%s2713_s28 + $0x1e0] sm:$0xf] %vm1323_vm1, %v1315_v62  ;;  %v2008_v30 = vsel %vm673_vm0, %v1797_v46, 0.0  ;;  %v1621_v26 = vsel %vm673_vm0, %v3488_v4, 0.0 }
 0x1ec   : > { %v1799_v18 = vmul.f32 %v3555_v54, %v3555_v54  ;;  %v1625_v4 = vsel %vm673_vm0, %v3572_v38, 0.0 }
 0x1ed   : > { %v1612_v36 = vadd.f32 %v1611_v56, %v1610_v12  ;;  %v1999_v41 = vadd.f32 %v1998_v32, %v1997_v21  ;;  %v1177_v42 = vpop.f32.mrf.mxu3  ;;  %v1623_v12 = vsel %vm673_vm0, %v3555_v54, 0.0  ;;  %v1800_v21 = vmul.f32 %v3572_v38, %v3572_v38 }
 0x1ee   : > { %v3908_v52 = vadd.f32 %v3324_v23, %v1177_v42  ;;  %v1619_v23 = vsel %vm673_vm0, %v3471_v63, 0.0  ;;  %v2010_v63 = vsel %vm673_vm0, %v1798_v47, 0.0  ;;  %v2012_v51 = vsel %vm673_vm0, %v1799_v18, 0.0 }
 0x1ef   : > { %v1614_v16 = vadd.f32 %v1613_v13, %v1612_v36  ;;  %v2001_v37 = vadd.f32 %v2000_v53, %v1999_v41  ;;  %v1801_v36 = vmul.f32 %v3634_v9, %v3634_v9  ;;  %v2014_v13 = vsel %vm673_vm0, %v1800_v21, 0.0 }
 0x1f0   : > { %v1316_v34 = vpack.c.bf16 %v3908_v52, %v3908_v52  ;;  %v1627_v54 = vsel %vm673_vm0, %v3634_v9, 0.0  ;;  %v1629_v38 = vsel %vm673_vm0, %v3640_v5, 0.0  ;;  %v1631_v9 = vsel %vm673_vm0, %v3702_v43, 0.0 }
 0x1f1   : > { %v1616_v35 = vadd.f32 %v1615_v33, %v1614_v16  ;;  %v2003_v7 = vadd.f32 %v2002_v29, %v2001_v37  ;;  %v2016_v29 = vsel %vm673_vm0, %v1801_v36, 0.0  ;;  %v1803_v33 = vmul.f32 %v3702_v43, %v3702_v43  ;;  %v4268_v36 = vld [vmem:[#allocation2_spill] sm:$0xff] }
 0x1f2   : > { %1445 = vst.msk [vmem:[%s2713_s28 + $0x1e4] sm:$0xf] %vm1323_vm1, %v1316_v34  ;;  %v1805_v34 = vmul.f32 %v3770_v31, %v3770_v31 }
 0x1f3   : > { %v1618_v25 = vadd.f32 %v1617_v22, %v1616_v35  ;;  %v2005_v45 = vadd.f32 %v2004_v11, %v2003_v7  ;;  %v2018_v35 = vsel %vm673_vm0, %v1802_v3, 0.0  ;;  %v1804_v7 = vmul.f32 %v3708_v19, %v3708_v19  ;;  %v3961_v11 = vld [vmem:[%s4199_s2] ss:$0 sm:$0xff] }
 0x1f4   : > { %v2020_v43 = vsel %vm673_vm0, %v1803_v33, 0.0  ;;  %v1643_v3 = vsel %vm673_vm0, %v4268_v36, 0.0 }
 0x1f5   : > { %v1620_v24 = vadd.f32 %v1619_v23, %v1618_v25  ;;  %v2007_v8 = vadd.f32 %v2006_v58, %v2005_v45  ;;  %v1180_v32 = vpop.f32.mrf.mxu3  ;;  %v1633_v45 = vsel %vm673_vm0, %v3708_v19, 0.0 }
 0x1f6   : > { %v3964_v5 = vadd.f32 %v3961_v11, %v1180_v32  ;;  %v1639_v32 = vsel %vm673_vm0, %v3838_v28, 0.0 }
 0x1f7   : > { %v1622_v10 = vadd.f32 %v1621_v26, %v1620_v24  ;;  %v2009_v17 = vadd.f32 %v2008_v30, %v2007_v8  ;;  %v2022_v8 = vsel %vm673_vm0, %v1804_v7, 0.0  ;;  %v1635_v30 = vsel %vm673_vm0, %v3770_v31, 0.0 }
 0x1f8   : > { %v1317_v58 = vpack.c.bf16 %v3964_v5, %v3964_v5  ;;  %v1806_v26 = vmul.f32 %v3776_v15, %v3776_v15 }
 0x1f9   : > { %v1624_v56 = vadd.f32 %v1623_v12, %v1622_v10  ;;  %v2011_v27 = vadd.f32 %v2010_v63, %v2009_v17  ;;  %v2024_v10 = vsel %vm673_vm0, %v1805_v34, 0.0  ;;  %v1637_v17 = vsel %vm673_vm0, %v3776_v15, 0.0 }
 0x1fa   : > { %1446 = vst.msk [vmem:[%s2713_s28 + $0x1e8] sm:$0xf] %vm1323_vm1, %v1317_v58  ;;  %v1807_v63 = vmul.f32 %v3838_v28, %v3838_v28  ;;  %v2026_v31 = vsel %vm673_vm0, %v1806_v26, 0.0  ;;  %v4269_v28 = vld [vmem:[#allocation4_spill] sm:$0xff] }
 0x1fb   : > { %v1626_v41 = vadd.f32 %v1625_v4, %v1624_v56  ;;  %v2013_v53 = vadd.f32 %v2012_v51, %v2011_v27  ;;  %v1808_v56 = vmul.f32 %v3844_v57, %v3844_v57 }
 0x1fc   : > { %v2028_v15 = vsel %vm673_vm0, %v1807_v63, 0.0 }
 0x1fd   : > { %v2015_v16 = vadd.f32 %v2014_v13, %v2013_v53  ;;  %v1628_v37 = vadd.f32 %v1627_v54, %v1626_v41  ;;  %v1182_v22 = vpop.f32.mrf.mxu3  ;;  %v1809_v41 = vmul.f32 %v4268_v36, %v4268_v36  ;;  %v1641_v53 = vsel %vm673_vm0, %v3844_v57, 0.0 }
 0x1fe   : > { %v3967_v25 = vadd.f32 %v3961_v11, %v1182_v22 }
 0x1ff   : > { %v2017_v1 = vadd.f32 %v2016_v29, %v2015_v16  ;;  %v1630_v42 = vadd.f32 %v1629_v38, %v1628_v37  ;;  %v1810_v16 = vmul.f32 %v4269_v28, %v4269_v28  ;;  %v2030_v37 = vsel %vm673_vm0, %v1808_v56, 0.0 }
 0x200   : > { %v1318_v24 = vpack.c.bf16 %v3967_v25, %v3967_v25  ;;  %v2032_v33 = vsel %vm673_vm0, %v1809_v41, 0.0 }
 0x201   : > { %v2019_v46 = vadd.f32 %v2018_v35, %v2017_v1  ;;  %v1632_v62 = vadd.f32 %v1631_v9, %v1630_v42  ;;  %v1645_v1 = vsel %vm673_vm0, %v4269_v28, 0.0  ;;  %v4270_v42 = vld [vmem:[#allocation6_spill] sm:$0xff]  ;;  %v2034_v7 = vsel %vm673_vm0, %v1810_v16, 0.0 }
 0x202   : > { %1447 = vst.msk [vmem:[%s2713_s28 + $0x1ec] sm:$0xf] %vm1323_vm1, %v1318_v24  ;;  %v1811_v57 = vmul.f32 %v4270_v42, %v4270_v42  ;;  %v1647_v22 = vsel %vm673_vm0, %v4270_v42, 0.0 }
 0x203   : > { %v2021_v23 = vadd.f32 %v2020_v43, %v2019_v46  ;;  %v1634_v47 = vadd.f32 %v1633_v45, %v1632_v62  ;;  %v4271_v46 = vld [vmem:[#allocation8_spill] sm:$0xff] }
 0x204   : > { %v1812_v62 = vmul.f32 %v4271_v46, %v4271_v46  ;;  %v1649_v24 = vsel %vm673_vm0, %v4271_v46, 0.0 }
 0x205   : > { %v2023_v19 = vadd.f32 %v2022_v8, %v2021_v23  ;;  %v1636_v18 = vadd.f32 %v1635_v30, %v1634_v47  ;;  %v1185_v27 = vpop.f32.mrf.mxu3  ;;  %v2036_v47 = vsel %vm673_vm0, %v1811_v57, 0.0  ;;  %v4272_v8 = vld [vmem:[#allocation10_spill] sm:$0xff] }
 0x206   : > { %v4018_v43 = vadd.f32 %v3961_v11, %v1185_v27  ;;  %v1813_v30 = vmul.f32 %v4272_v8, %v4272_v8  ;;  %v1651_v63 = vsel %vm673_vm0, %v4272_v8, 0.0  ;;  %v1663_v8 = vsel %vm673_vm0, %v3398_v2, 0.0 }
 0x207   : > { %v2025_v12 = vadd.f32 %v2024_v10, %v2023_v19  ;;  %v1638_v21 = vadd.f32 %v1637_v17, %v1636_v18  ;;  %v2038_v17 = vsel %vm673_vm0, %v1812_v62, 0.0 }
 0x208   : > { %v1319_v26 = vpack.c.bf16 %v4018_v43, %v4018_v43  ;;  %v2040_v56 = vsel %vm673_vm0, %v1813_v30, 0.0  ;;  %v1820_v30 = vmul.f32 %v3421_v59, %v3421_v59 }
 0x209   : > { %v2027_v51 = vadd.f32 %v2026_v31, %v2025_v12  ;;  %v1640_v4 = vadd.f32 %v1639_v32, %v1638_v21  ;;  %v4273_v12 = vld [vmem:[#allocation12_spill] sm:$0xff] }
 0x20a   : > { %v1814_v21 = vmul.f32 %v4273_v12, %v4273_v12  ;;  %1448 = vst.msk [vmem:[%s2713_s28 + $0x1f0] sm:$0xf] %vm1323_vm1, %v1319_v26  ;;  %v1653_v27 = vsel %vm673_vm0, %v4273_v12, 0.0  ;;  %v1665_v12 = vsel %vm673_vm0, %v3421_v59, 0.0 }
 0x20b   : > { %v2029_v13 = vadd.f32 %v2028_v15, %v2027_v51  ;;  %v1642_v54 = vadd.f32 %v1641_v53, %v1640_v4  ;;  %v4274_v51 = vld [vmem:[#allocation14_spill] sm:$0xff] }
 0x20c   : > { %v1815_v4 = vmul.f32 %v4274_v51, %v4274_v51  ;;  %v2042_v15 = vsel %vm673_vm0, %v1814_v21, 0.0  ;;  %v1655_v53 = vsel %vm673_vm0, %v4274_v51, 0.0  ;;  %v1822_v51 = vmul.f32 %v3501_v49, %v3501_v49 }
 0x20d   : > { %v1644_v29 = vadd.f32 %v1643_v3, %v1642_v54  ;;  %v2031_v38 = vadd.f32 %v2030_v37, %v2029_v13  ;;  %v1187_v45 = vpop.f32.mrf.mxu3  ;;  %v4275_v13 = vld [vmem:[#allocation16_spill] sm:$0xff] }
 0x20e   : > { %v4021_v23 = vadd.f32 %v3961_v11, %v1187_v45  ;;  %v1816_v54 = vmul.f32 %v4275_v13, %v4275_v13  ;;  %v2044_v37 = vsel %vm673_vm0, %v1815_v4, 0.0 }
 0x20f   : > { %v1646_v35 = vadd.f32 %v1645_v1, %v1644_v29  ;;  %v2033_v9 = vadd.f32 %v2032_v33, %v2031_v38  ;;  %v1657_v29 = vsel %vm673_vm0, %v4275_v13, 0.0  ;;  %v4276_v38 = vld [vmem:[#allocation18_spill] sm:$0xff] }
 0x210   : > { %v1320_v10 = vpack.c.bf16 %v4021_v23, %v4021_v23  ;;  %v1817_v33 = vmul.f32 %v4276_v38, %v4276_v38  ;;  %v2046_v57 = vsel %vm673_vm0, %v1816_v54, 0.0  ;;  %v1671_v54 = vsel %vm673_vm0, %v3558_v50, 0.0 }
 0x211   : > { %v1648_v34 = vadd.f32 %v1647_v22, %v1646_v35  ;;  %v2035_v58 = vadd.f32 %v2034_v7, %v2033_v9  ;;  %v1659_v35 = vsel %vm673_vm0, %v4276_v38, 0.0  ;;  %v4277_v9 = vld [vmem:[#allocation20_spill] sm:$0xff] }
 0x212   : > { %1449 = vst.msk [vmem:[%s2713_s28 + $0x1f4] sm:$0xf] %vm1323_vm1, %v1320_v10  ;;  %v1818_v7 = vmul.f32 %v4277_v9, %v4277_v9  ;;  %v2048_v62 = vsel %vm673_vm0, %v1817_v33, 0.0  ;;  %v1661_v45 = vsel %vm673_vm0, %v4277_v9, 0.0 }
 0x213   : > { %v1650_v19 = vadd.f32 %v1649_v24, %v1648_v34  ;;  %v2037_v18 = vadd.f32 %v2036_v47, %v2035_v58  ;;  %v1819_v34 = vmul.f32 %v3398_v2, %v3398_v2  ;;  %v1821_v2 = vmul.f32 %v3474_v0, %v3474_v0 }
 0x214   : > { %v2050_v24 = vsel %vm673_vm0, %v1818_v7, 0.0  ;;  %v1827_v7 = vmul.f32 %v3705_v61, %v3705_v61 }
 0x215   : > { %v1652_v31 = vadd.f32 %v1651_v63, %v1650_v19  ;;  %v2039_v32 = vadd.f32 %v2038_v17, %v2037_v18  ;;  %v1190_v3 = vpop.f32.mrf.mxu3  ;;  %v2052_v63 = vsel %vm673_vm0, %v1819_v34, 0.0 }
 0x216   : > { %v4072_v26 = vadd.f32 %v3961_v11, %v1190_v3  ;;  %v1824_v3 = vmul.f32 %v3584_v55, %v3584_v55 }
 0x217   : > { %v1654_v36 = vadd.f32 %v1653_v27, %v1652_v31  ;;  %v2041_v41 = vadd.f32 %v2040_v56, %v2039_v32  ;;  %v2054_v27 = vsel %vm673_vm0, %v1820_v30, 0.0 }
 0x218   : > { %v1321_v21 = vpack.c.bf16 %v4072_v26, %v4072_v26 }
 0x219   : > { %v1656_v28 = vadd.f32 %v1655_v53, %v1654_v36  ;;  %v2043_v16 = vadd.f32 %v2042_v15, %v2041_v41  ;;  %v2056_v36 = vsel %vm673_vm0, %v1821_v2, 0.0  ;;  %v1669_v41 = vsel %vm673_vm0, %v3501_v49, 0.0 }
 0x21a   : > { %1450 = vst.msk [vmem:[%s2713_s28 + $0x1f8] sm:$0xf] %vm1323_vm1, %v1321_v21  ;;  %v1823_v15 = vmul.f32 %v3558_v50, %v3558_v50  ;;  %v1673_v49 = vsel %vm673_vm0, %v3584_v55, 0.0  ;;  %v1675_v50 = vsel %vm673_vm0, %v3637_v14, 0.0  ;;  %v1677_v55 = vsel %vm673_vm0, %v3643_v48, 0.0 }
 0x21b   : > { %v1658_v1 = vadd.f32 %v1657_v29, %v1656_v28  ;;  %v2045_v42 = vadd.f32 %v2044_v37, %v2043_v16  ;;  %v1825_v29 = vmul.f32 %v3637_v14, %v3637_v14  ;;  %v1679_v14 = vsel %vm673_vm0, %v3705_v61, 0.0 }
 0x21c   : > { %v2060_v37 = vsel %vm673_vm0, %v1823_v15, 0.0  ;;  %v1683_v61 = vsel %vm673_vm0, %v3773_v44, 0.0  ;;  %v1831_v2 = vmul.f32 %v3841_v6, %v3841_v6  ;;  %v1834_v15 = vmul.f32 %v3908_v52, %v3908_v52 }
 0x21d   : > { %v1660_v22 = vadd.f32 %v1659_v35, %v1658_v1  ;;  %v2047_v46 = vadd.f32 %v2046_v57, %v2045_v42  ;;  %v1192_v19 = vpop.f32.mrf.mxu3  ;;  %v2062_v1 = vsel %vm673_vm0, %v1824_v3, 0.0  ;;  %v1826_v42 = vmul.f32 %v3643_v48, %v3643_v48 }
 0x21e   : > { %v4075_v17 = vadd.f32 %v3961_v11, %v1192_v19  ;;  %v1667_v11 = vsel %vm673_vm0, %v3474_v0, 0.0  ;;  %v2058_v0 = vsel %vm673_vm0, %v1822_v51, 0.0  ;;  %v2064_v9 = vsel %vm673_vm0, %v1825_v29, 0.0 }
 0x21f   : > { %v1662_v58 = vadd.f32 %v1661_v45, %v1660_v22  ;;  %v2049_v47 = vadd.f32 %v2048_v62, %v2047_v46  ;;  %v2066_v62 = vsel %vm673_vm0, %v1826_v42, 0.0  ;;  %v1828_v45 = vmul.f32 %v3711_v39, %v3711_v39 }
 0x220   : > { %v1322_v56 = vpack.c.bf16 %v4075_v17, %v4075_v17  ;;  %v1681_v48 = vsel %vm673_vm0, %v3711_v39, 0.0  ;;  %v1685_v39 = vsel %vm673_vm0, %v3779_v40, 0.0  ;;  %v2076_v51 = vsel %vm673_vm0, %v1831_v2, 0.0 }
 0x221   : > { %v1664_v18 = vadd.f32 %v1663_v8, %v1662_v58  ;;  %v2051_v10 = vadd.f32 %v2050_v24, %v2049_v47  ;;  %v2068_v47 = vsel %vm673_vm0, %v1827_v7, 0.0  ;;  %v1829_v24 = vmul.f32 %v3773_v44, %v3773_v44 }
 0x222   : > { %1451 = vst.msk [vmem:[%s2713_s28 + $0x1fc] sm:$0xf] %vm1323_vm1, %v1322_v56  ;;  %v2070_v19 = vsel %vm673_vm0, %v1828_v45, 0.0  ;;  %v1687_v44 = vsel %vm673_vm0, %v3841_v6, 0.0  ;;  %v1832_v56 = vmul.f32 %v3847_v20, %v3847_v20  ;;  %v1691_v6 = vsel %vm673_vm0, %v3905_v60, 0.0 }
 0x223   : > { %v2053_v31 = vadd.f32 %v2052_v63, %v2051_v10  ;;  %v1666_v32 = vadd.f32 %v1665_v12, %v1664_v18  ;;  %v1830_v18 = vmul.f32 %v3779_v40, %v3779_v40  ;;  %v2072_v12 = vsel %vm673_vm0, %v1829_v24, 0.0 }
 0x224   : > { %v1689_v40 = vsel %vm673_vm0, %v3847_v20, 0.0  ;;  %v1693_v20 = vsel %vm673_vm0, %v3908_v52, 0.0  ;;  %v1697_v52 = vsel %vm673_vm0, %v3967_v25, 0.0  ;;  %v1839_v7 = vmul.f32 %v4072_v26, %v4072_v26 }
 0x225   : > { %v1668_v59 = vadd.f32 %v1667_v11, %v1666_v32  ;;  %v2055_v4 = vadd.f32 %v2054_v27, %v2053_v31  ;;  %v2074_v32 = vsel %vm673_vm0, %v1830_v18, 0.0 }
 0x227   : > { %v1670_v53 = vadd.f32 %v1669_v41, %v1668_v59  ;;  %v2057_v13 = vadd.f32 %v2056_v36, %v2055_v4  ;;  %v1833_v59 = vmul.f32 %v3905_v60, %v3905_v60  ;;  %v2078_v41 = vsel %vm673_vm0, %v1832_v56, 0.0 }
 0x228   : > { %v1695_v60 = vsel %vm673_vm0, %v3964_v5, 0.0 }
 0x229   : > { %v1672_v28 = vadd.f32 %v1671_v54, %v1670_v53  ;;  %v2059_v16 = vadd.f32 %v2058_v0, %v2057_v13  ;;  %v2080_v0 = vsel %vm673_vm0, %v1833_v59, 0.0  ;;  %v1835_v54 = vmul.f32 %v3964_v5, %v3964_v5 }
 0x22a   : > { %v1699_v5 = vsel %vm673_vm0, %v4018_v43, 0.0 }
 0x22b   : > { %v1674_v38 = vadd.f32 %v1673_v49, %v1672_v28  ;;  %v2061_v33 = vadd.f32 %v2060_v37, %v2059_v16  ;;  %v2082_v16 = vsel %vm673_vm0, %v1834_v15, 0.0  ;;  %v1836_v37 = vmul.f32 %v3967_v25, %v3967_v25 }
 0x22c   : > { %v1701_v25 = vsel %vm673_vm0, %v4021_v23, 0.0 }
 0x22d   : > { %v1676_v57 = vadd.f32 %v1675_v50, %v1674_v38  ;;  %v2063_v35 = vadd.f32 %v2062_v1, %v2061_v33  ;;  %v2084_v38 = vsel %vm673_vm0, %v1835_v54, 0.0  ;;  %v1837_v33 = vmul.f32 %v4018_v43, %v4018_v43 }
 0x22e   : > { %v2086_v42 = vsel %vm673_vm0, %v1836_v37, 0.0  ;;  %v1703_v43 = vsel %vm673_vm0, %v4072_v26, 0.0 }
 0x22f   : > { %v1678_v22 = vadd.f32 %v1677_v55, %v1676_v57  ;;  %v2065_v46 = vadd.f32 %v2064_v9, %v2063_v35  ;;  %v1838_v57 = vmul.f32 %v4021_v23, %v4021_v23  ;;  %v2088_v55 = vsel %vm673_vm0, %v1837_v33, 0.0 }
 0x230   : > { %v1705_v23 = vsel %vm673_vm0, %v4075_v17, 0.0 }
 0x231   : > { %v1680_v34 = vadd.f32 %v1679_v14, %v1678_v22  ;;  %v2067_v58 = vadd.f32 %v2066_v62, %v2065_v46  ;;  %v2090_v62 = vsel %vm673_vm0, %v1838_v57, 0.0  ;;  %v1840_v14 = vmul.f32 %v4075_v17, %v4075_v17 }
 0x233   : > { %v1682_v8 = vadd.f32 %v1681_v48, %v1680_v34  ;;  %v2069_v30 = vadd.f32 %v2068_v47, %v2067_v58  ;;  %v2092_v58 = vsel %vm673_vm0, %v1839_v7, 0.0  ;;  %v2094_v24 = vsel %vm673_vm0, %v1840_v14, 0.0 }
 0x235   : > { %v1684_v10 = vadd.f32 %v1683_v61, %v1682_v8  ;;  %v2071_v63 = vadd.f32 %v2070_v19, %v2069_v30 }
 0x237   : > { %v1686_v21 = vadd.f32 %v1685_v39, %v1684_v10  ;;  %v2073_v31 = vadd.f32 %v2072_v12, %v2071_v63 }
 0x239   : > { %v1688_v27 = vadd.f32 %v1687_v44, %v1686_v21  ;;  %v2075_v11 = vadd.f32 %v2074_v32, %v2073_v31 }
 0x23b   : > { %v1690_v4 = vadd.f32 %v1689_v40, %v1688_v27  ;;  %v2077_v36 = vadd.f32 %v2076_v51, %v2075_v11 }
 0x23d   : > { %v2079_v53 = vadd.f32 %v2078_v41, %v2077_v36  ;;  %v1692_v13 = vadd.f32 %v1691_v6, %v1690_v4 }
 0x23f   : > { %v2081_v3 = vadd.f32 %v2080_v0, %v2079_v53  ;;  %v1694_v28 = vadd.f32 %v1693_v20, %v1692_v13 }
 0x241   : > { %v2083_v49 = vadd.f32 %v2082_v16, %v2081_v3  ;;  %v1696_v29 = vadd.f32 %v1695_v60, %v1694_v28 }
 0x243   : > { %v2085_v1 = vadd.f32 %v2084_v38, %v2083_v49  ;;  %v1698_v50 = vadd.f32 %v1697_v52, %v1696_v29 }
 0x245   : > { %v2087_v35 = vadd.f32 %v2086_v42, %v2085_v1  ;;  %v1700_v9 = vadd.f32 %v1699_v5, %v1698_v50 }
 0x247   : > { %v2089_v22 = vadd.f32 %v2088_v55, %v2087_v35  ;;  %v1702_v46 = vadd.f32 %v1701_v25, %v1700_v9 }
 0x249   : > { %v2091_v45 = vadd.f32 %v2090_v62, %v2089_v22  ;;  %v1704_v34 = vadd.f32 %v1703_v43, %v1702_v46 }
 0x24b   : > { %v2093_v47 = vadd.f32 %v2092_v58, %v2091_v45  ;;  %v1706_v48 = vadd.f32 %v1705_v23, %v1704_v34 }
 0x24d   : > { %v1707_v8 = vrot.slane %v1706_v48, 4  ;;  %v2095_v30 = vadd.f32 %v2094_v24, %v2093_v47 }
 0x24f   : > { %v1708_v19 = vadd.f32 %v1707_v8, %v1706_v48  ;;  %v2096_v26 = vrot.slane %v2095_v30, 4 }
 0x251   : > { %v1709_v61 = vrot.slane %v1708_v19, 2  ;;  %v2097_v18 = vadd.f32 %v2096_v26, %v2095_v30 }
 0x253   : > { %v1710_v10 = vadd.f32 %v1709_v61, %v1708_v19  ;;  %v2098_v63 = vrot.slane %v2097_v18, 2 }
 0x255   : > { %v1711_v12 = vrot.slane %v1710_v10, 1  ;;  %v2099_v39 = vadd.f32 %v2098_v63, %v2097_v18 }
 0x257   : > { %v2100_v2 = vrot.slane %v2099_v39, 1  ;;  %v1712_v17 = vadd.f32 %v1711_v12, %v1710_v10 }
 0x259   : > { %v2101_v21 = vadd.f32 %v2100_v2, %v2099_v39 }
 0x25b   : > { %v2103_v31 = vsel %vm2102_vm2, %v1712_v17, %v2101_v21 }
 0x25c   : > { %2105 = vst.msk [vmem:[%s211_s10] sm:$0x3] %vm2104_vm3, %v2103_v31 }
 0x25d PF: > { %s15_s15 = sadd.s32 1, %s2614_s15  }
 0x25e   : > { %p12_p5 = scmp.ge.s32.totalorder %s15_s15, 4  }
 0x260   :  { %14 = sbr.rel (!%p12_p5) target bundleno = 1 (0x1), region = 74 }

// kernel: shuffle_block_forward.5
= control target key start
LH: loop header
LB: loop body
LE: loop exit
PB: predicated region body
PF: predicated region fallthrough
CT: control target
= control target key end

     0   :  { %s2130_s18 = smov 0   ;;  %s3670_s0 = inlined_call_operand.vmem [shape: bf16[2,1,34,544], index: 0, kind: input, shape index: {}]   ;;  %s3671_s1 = inlined_call_operand.vmem [shape: f32[2,544], index: 1, kind: input, shape index: {}]   ;;  %s3672_s2 = inlined_call_operand.vmem [shape: f32[1,34,544], index: 2, kind: input, shape index: {}]   ;;  %s3673_s3 = inlined_call_operand.vmem [shape: f32[9,512], index: 3, kind: input, shape index: {}]   ;;  %s3674_s4 = inlined_call_operand.vmem [shape: bf16[2,32,512], index: 4, kind: output, shape index: {0}]   ;;  %s3675_s5 = inlined_call_operand.vmem [shape: f32[2,2,512], index: 5, kind: output, shape index: {1}]  }
   0x1 LB: > { %s2052_s19 = sadd.s32 4294967295, %s2094_s18   ;;  %p2056_p0 = scmp.ge.s32.totalorder %s2094_s18, 1  ;;  %s2094_s18 = sphi %s2130_s18, %s16_s18  }
   0x2   : > { %p190_p1 = scmp.lt.s32.totalorder %s2094_s18, 3 }
   0x4   : > { %p191_p2 = pnand %p2056_p0, %p190_p1 }
   0x6   : > { %194 = sbr.rel (%p191_p2) target bundleno = 1038 (0x40e), region = 36 }
   0xb   : > { %v2063_v0 = vld [vmem:[%s3673_s3 + $0x1] ss:$8 sm:$0xf]  ;;  %v2064_v3 = vld [vmem:[%s3673_s3 + $0x2] ss:$8 sm:$0xf] }
   0xc   : > { %v475_v1 = vperm.slane %v2063_v0, 2  ;;  %v473_v2 = vperm.slane %v2063_v0, 0  ;;  %s2096_s24 = smov 16   ;;  %v628_v4 = vperm.slane %v2064_v3, 2  ;;  %s2097_s25 = smov 32   ;;  %v476_v5 = vperm.slane %v2063_v0, 3 }
   0xd   : > { %v474_v6 = vperm.slane %v2063_v0, 1  ;;  %v626_v7 = vperm.slane %v2064_v3, 0  ;;  %v627_v8 = vperm.slane %v2064_v3, 1  ;;  %v629_v9 = vperm.slane %v2064_v3, 3  ;;  %p223_p3 = scmp.lt.s32.totalorder %s2052_s19, 1  ;;  %v383_v35 = vld [vmem:[%s3672_s2 + $0x28] sm:$0xff] }
   0xe   : > { %481 = vrot.lane.b32.xlu1 %v475_v1, %s2096_s24  ;;  %477 = vrot.lane.b32.xlu0 %v473_v2, %s2096_s24  ;;  %v2166_v11 = vld [vmem:[%s3671_s1] ss:$2 sm:$0x1f]  ;;  %v2178_v15 = vld [vmem:[%s3671_s1 + $0x1] ss:$2 sm:$0x1f] }
   0xf   : > { %634 = vrot.lane.b32.xlu2 %v628_v4, %s2097_s25  ;;  %s3765_s19 = smov (!%p223_p3, %s2052_s19), 1  ;;  %v2173_v14 = vperm.slane %v2166_v11, 0  ;;  %v2183_v18 = vperm.slane %v2178_v15, 0  ;;  %v2192_v26 = vperm.slane %v2166_v11, 4  ;;  %v2196_v32 = vperm.slane %v2178_v15, 4  ;;  %v378_v36 = vld [vmem:[%s3672_s2] sm:$0xff] }
  0x10   : > { %s2075_s26 = smul.u32 100, %s3765_s19  ;;  %v387_v53 = vld [vmem:[%s3672_s2 + $0x48] sm:$0xff]  ;;  %v392_v54 = vld [vmem:[%s3672_s2 + $0x70] sm:$0xff]  ;;  %s2098_s17 = smov 112   ;;  %v382_v57 = vld [vmem:[%s3672_s2 + $0x20] sm:$0xff]  ;;  %vm485_vm0 = vcmask 130048  }
  0x11   : > { %3698 = vst [vmem:[#allocation2_spill] sm:$0xff] %v2192_v26  ;;  %s2099_s28 = smov 96   ;;  %vm638_vm1 = vcmask 261120   ;;  %vm574_vm2 = vcmask 916480   ;;  %vm727_vm3 = vcmask 785408   ;;  %vm827_vm4 = vcmask 1046528  }
  0x12   : > { %s2158_s29 = scalar_lea.vmem %s3670_s0, %s2075_s26  ;;  %3699 = vst [vmem:[#allocation3_spill] sm:$0xff] %v2196_v32  ;;  %vm1359_vm5 = vcmask 1045504   ;;  %vm1944_vm6 = vcmask 1040384   ;;  %vm1956_vm7 = vcmask 1041408   ;;  %s2074_s21 = sshll.u32 %s3765_s19, 3  ;;  %vm1958_vm8 = vcmask 1045508  }
  0x13   : > { %v2161_v10 = vld [vmem:[%s2158_s29 + $0x14] sm:$0xff]  ;;  %v2169_v12 = vld [vmem:[%s2158_s29] sm:$0xff]  ;;  %v240_v22 = vld [vmem:[%s2158_s29 + $0x10] sm:$0xf]  ;;  %vm1960_vm9 = vcmask 1043456  }
  0x14   : > { %v258_v13 = vunpack.c.l.bf16 %v2161_v10  ;;  %v253_v16 = vunpack.c.l.bf16 %v2169_v12  ;;  %v243_v20 = vld [vmem:[%s2158_s29 + $0x24] sm:$0xf]  ;;  %v246_v21 = vld [vmem:[%s2158_s29 + $0x38] sm:$0xf]  ;;  %v257_v28 = vunpack.c.l.bf16 %v240_v22  ;;  %v2200_v34 = vld [vmem:[%s2158_s29 + $0x3c] sm:$0xff] }
  0x15   : > { %v262_v25 = vunpack.c.l.bf16 %v243_v20  ;;  %v267_v27 = vunpack.c.l.bf16 %v246_v21  ;;  %v2210_v38 = vld [vmem:[%s2158_s29 + $0x28] sm:$0xff]  ;;  %v268_v39 = vunpack.c.l.bf16 %v2200_v34  ;;  %v2275_v20 = vperm.slane %v2166_v11, 2 }
  0x16   : > { %483 = vrot.lane.b32.xlu1 %v476_v5, %s2096_s24  ;;  %479 = vrot.lane.b32.xlu0 %v474_v6, %s2096_s24  ;;  %v295_v17 = vmul.f32 %v2173_v14, %v258_v13  ;;  %v290_v19 = vmul.f32 %v2173_v14, %v253_v16  ;;  %v294_v37 = vmul.f32 %v2192_v26, %v257_v28  ;;  %v263_v45 = vunpack.c.l.bf16 %v2210_v38  ;;  %v249_v58 = vld [vmem:[%s2158_s29 + $0x4c] sm:$0xf]  ;;  %v388_v16 = vld [vmem:[%s3672_s2 + $0x50] sm:$0xff] }
  0x17   : > { %v299_v31 = vmul.f32 %v2192_v26, %v262_v25  ;;  %v304_v33 = vmul.f32 %v2192_v26, %v267_v27  ;;  %v305_v48 = vmul.f32 %v2173_v14, %v268_v39  ;;  %v272_v0 = vunpack.c.l.bf16 %v249_v58  ;;  %v239_v13 = vld [vmem:[%s2158_s29 + $0x8] sm:$0xff]  ;;  %3702 = vst [vmem:[#allocation6_spill] sm:$0xff] %v2275_v20 }
  0x18   : > { %v333_v23 = vadd.f32 %v2183_v18, %v295_v17  ;;  %v328_v24 = vadd.f32 %v2183_v18, %v290_v19  ;;  %v332_v44 = vadd.f32 %v2196_v32, %v294_v37  ;;  %v300_v56 = vmul.f32 %v2173_v14, %v263_v45 }
  0x19   : > { %v337_v42 = vadd.f32 %v2196_v32, %v299_v31  ;;  %v342_v43 = vadd.f32 %v2196_v32, %v304_v33  ;;  %v343_v61 = vadd.f32 %v2183_v18, %v305_v48  ;;  %v255_v19 = vunpack.c.l.bf16 %v239_v13  ;;  %v2293_v31 = vld [vmem:[%s2158_s29 + $0x1c] sm:$0xff] }
  0x1a   : > { %v358_v29 = vmax.f32 %v333_v23, 0.0  ;;  %v353_v30 = vmax.f32 %v328_v24, 0.0  ;;  %v357_v55 = vmax.f32 %v332_v44, 0.0  ;;  %v338_v63 = vadd.f32 %v2183_v18, %v300_v56  ;;  %v397_v33 = vld [vmem:[%s3672_s2 + $0x98] sm:$0xff] }
  0x1b   : > { %v362_v51 = vmax.f32 %v337_v42, 0.0  ;;  %v367_v52 = vmax.f32 %v342_v43, 0.0  ;;  %v368_v5 = vmax.f32 %v343_v61, 0.0  ;;  %v292_v27 = vmul.f32 %v2275_v20, %v255_v19 }
  0x1c   : > { %v2213_v40 = vmul.f32 %v383_v35, %v358_v29  ;;  %v2215_v41 = vmul.f32 %v378_v36, %v353_v30  ;;  %v2248_v62 = vmul.f32 %v382_v57, %v357_v55  ;;  %v2288_v28 = vperm.slane %v2178_v15, 2 }
  0x1d   : > { %v2243_v59 = vmul.f32 %v387_v53, %v362_v51  ;;  %v2245_v60 = vmul.f32 %v392_v54, %v367_v52  ;;  %v261_v36 = vunpack.c.h.bf16 %v2293_v31  ;;  %v2304_v37 = vperm.slane %v2166_v11, 3  ;;  %v380_v51 = vld [vmem:[%s3672_s2 + $0x10] sm:$0xff] }
  0x1e   : > { %630 = vrot.lane.b32.xlu0 %v626_v7, %s2097_s25  ;;  %632 = vrot.lane.b32.xlu1 %v627_v8, %s2097_s25  ;;  %v393_v7 = vld [vmem:[%s3672_s2 + $0x78] sm:$0xff]  ;;  %v363_v8 = vmax.f32 %v338_v63, 0.0  ;;  %3703 = vst [vmem:[#allocation7_spill] sm:$0xff] %v2288_v28  ;;  %v330_v35 = vadd.f32 %v2288_v28, %v292_v27  ;;  %v264_v52 = vunpack.c.h.bf16 %v2210_v38  ;;  %v2331_v55 = vperm.slane %v2166_v11, 1 }
  0x1f   : > { %3700 = vst [vmem:[#allocation4_spill] sm:$0xff] %v2243_v59  ;;  %v2272_v17 = vmul.f32 %v393_v7, %v368_v5  ;;  %v298_v48 = vmul.f32 %v2304_v37, %v261_v36  ;;  %v256_v56 = vunpack.c.h.bf16 %v239_v13  ;;  %v2343_v38 = vperm.slane %v2178_v15, 1  ;;  %v386_v5 = vld [vmem:[%s3672_s2 + $0x40] sm:$0xff] }
  0x20   : > { %3701 = vst [vmem:[#allocation5_spill] sm:$0xff] %v2245_v60  ;;  %v2277_v21 = vmul.f32 %v388_v16, %v363_v8  ;;  %v355_v45 = vmax.f32 %v330_v35, 0.0  ;;  %v254_v16 = vunpack.c.h.bf16 %v2169_v12  ;;  %v389_v12 = vld [vmem:[%s3672_s2 + $0x58] sm:$0xff] }
  0x21   : > { %3706 = vst [vmem:[#allocation10_spill] sm:$0xff] %v2331_v55 }
  0x22   : > { %v2327_v53 = vmul.f32 %v380_v51, %v355_v45  ;;  %3707 = vst [vmem:[#allocation11_spill] sm:$0xff] %v2343_v38 }
  0x26   : > { %636 = vrot.lane.b32.xlu0 %v629_v9, %s2097_s25  ;;  %v309_v9 = vmul.f32 %v2192_v26, %v272_v0  ;;  %v301_v0 = vmul.f32 %v2331_v55, %v264_v52 }
  0x28   : > { %v347_v22 = vadd.f32 %v2196_v32, %v309_v9  ;;  %v339_v8 = vadd.f32 %v2343_v38, %v301_v0 }
  0x2a   : > { %v372_v30 = vmax.f32 %v347_v22, 0.0 }
  0x2c   : > { %v2306_v39 = vmul.f32 %v397_v33, %v372_v30 }
  0x2e   : > { %3704 = vst [vmem:[#allocation8_spill] sm:$0xff] %v2306_v39 }
  0x80   : > { %v2221_v46 = vpop.permute.xlu1 %481  ;;  %v2223_v47 = vpop.permute.xlu0 %477 }
  0x81   : > { %v499_v49 = vmul.f32 %v2223_v47, %v2213_v40  ;;  %v494_v50 = vmul.f32 %v2223_v47, %v2215_v41  ;;  %v509_v24 = vmul.f32 %v2223_v47, %v2272_v17  ;;  %v504_v29 = vmul.f32 %v2223_v47, %v2277_v21 }
  0x83   : > { %544 = vrot.lane.b32.xlu0 %v499_v49, %s2098_s17  ;;  %534 = vrot.lane.b32.xlu2 %v494_v50, %s2098_s17  ;;  %v2316_v49 = vperm.slane %v2178_v15, 3 }
  0x85   : > { %3705 = vst [vmem:[#allocation9_spill] sm:$0xff] %v2316_v49  ;;  %v336_v54 = vadd.f32 %v2316_v49, %v298_v48 }
  0x87   : > { %v361_v11 = vmax.f32 %v336_v54, 0.0 }
  0x88   : > { %v2251_v1 = vpop.permute.xlu1 %483  ;;  %v2253_v2 = vpop.permute.xlu0 %479 }
  0x89   : > { %v503_v3 = vmul.f32 %v2251_v1, %v2243_v59  ;;  %v508_v4 = vmul.f32 %v2251_v1, %v2245_v60  ;;  %v498_v6 = vmul.f32 %v2251_v1, %v2248_v62  ;;  %v513_v50 = vmul.f32 %v2251_v1, %v2306_v39 }
  0x8a   : > { %v2336_v57 = vsel %vm485_vm0, %v2253_v2, %v2221_v46  ;;  %v2357_v7 = vmul.f32 %v386_v5, %v361_v11  ;;  %v2364_v13 = vsel %vm485_vm0, %v2221_v46, %v2251_v1  ;;  %v381_v46 = vld [vmem:[%s3672_s2 + $0x18] sm:$0xff]  ;;  %v291_v1 = vmul.f32 %v2331_v55, %v254_v16  ;;  %v379_v11 = vld [vmem:[%s3672_s2 + $0x8] sm:$0xff] }
  0x8b   : > { %552 = vrot.lane.b32.xlu1 %v503_v3, %s2098_s17  ;;  %562 = vrot.lane.b32.xlu0 %v508_v4, %s2098_s17  ;;  %v496_v63 = vmul.f32 %v2336_v57, %v2327_v53  ;;  %v293_v3 = vmul.f32 %v2304_v37, %v256_v56  ;;  %v248_v4 = vld [vmem:[%s2158_s29 + $0x44] sm:$0xff]  ;;  %v2395_v45 = vsel %vm485_vm0, %v2223_v47, %v2253_v2  ;;  %v384_v2 = vld [vmem:[%s3672_s2 + $0x30] sm:$0xff] }
  0x8c   : > { %542 = vrot.lane.b32.xlu2 %v498_v6, %s2098_s17  ;;  %v270_v15 = vunpack.c.l.bf16 %v248_v4  ;;  %v259_v6 = vunpack.c.h.bf16 %v2161_v10  ;;  %v502_v10 = vmul.f32 %v2364_v13, %v2357_v7  ;;  %v329_v48 = vadd.f32 %v2343_v38, %v291_v1  ;;  %v395_v47 = vld [vmem:[%s3672_s2 + $0x88] sm:$0xff] }
  0x8d   : > { %v331_v9 = vadd.f32 %v2316_v49, %v293_v3 }
  0x8e   : > { %v307_v19 = vmul.f32 %v2275_v20, %v270_v15  ;;  %v296_v22 = vmul.f32 %v2331_v55, %v259_v6  ;;  %v271_v15 = vunpack.c.h.bf16 %v248_v4  ;;  %v390_v4 = vld [vmem:[%s3672_s2 + $0x60] sm:$0xff] }
  0x8f   : > { %v356_v27 = vmax.f32 %v331_v9, 0.0 }
  0x90   : > { %v2280_v23 = vpop.permute.xlu0 %630 }
  0x91   : > { %v652_v25 = vmul.f32 %v2280_v23, %v2213_v40  ;;  %v647_v42 = vmul.f32 %v2280_v23, %v2215_v41  ;;  %v657_v30 = vmul.f32 %v2280_v23, %v2277_v21  ;;  %v2388_v36 = vmul.f32 %v381_v46, %v356_v27 }
  0x93   : > { %564 = vrot.lane.b32.xlu1 %v509_v24, %s2098_s17  ;;  %697 = vrot.lane.b32.xlu0 %v652_v25, %s2099_s28  ;;  %v662_v24 = vmul.f32 %v2280_v23, %v2272_v17  ;;  %v364_v25 = vmax.f32 %v339_v8, 0.0  ;;  %v497_v54 = vmul.f32 %v2364_v13, %v2388_v36 }
  0x94   : > { %554 = vrot.lane.b32.xlu2 %v504_v29, %s2098_s17  ;;  %v245_v29 = vld [vmem:[%s2158_s29 + $0x30] sm:$0xff] }
  0x95   : > { %v265_v33 = vunpack.c.l.bf16 %v245_v29  ;;  %v2386_v35 = vmul.f32 %v389_v12, %v364_v25  ;;  %v266_v9 = vunpack.c.h.bf16 %v245_v29  ;;  %v633_v29 = vpop.permute.xlu1 %632  ;;  %v385_v12 = vld [vmem:[%s3672_s2 + $0x38] sm:$0xff] }
  0x97   : > { %v302_v51 = vmul.f32 %v2275_v20, %v265_v33  ;;  %v505_v52 = vmul.f32 %v2395_v45, %v2386_v35  ;;  %v303_v27 = vmul.f32 %v2304_v37, %v266_v9 }
  0x98   : > { %v2310_v43 = vpop.permute.xlu0 %636 }
  0x99   : > { %v661_v44 = vmul.f32 %v2310_v43, %v2245_v60  ;;  %v656_v58 = vmul.f32 %v2310_v43, %v2243_v59  ;;  %v651_v61 = vmul.f32 %v2310_v43, %v2248_v62  ;;  %v340_v5 = vadd.f32 %v2288_v28, %v302_v51 }
  0x9b   : > { %715 = vrot.lane.b32.xlu0 %v661_v44, %s2099_s28  ;;  %687 = vrot.lane.b32.xlu1 %v647_v42, %s2099_s28  ;;  %v345_v42 = vadd.f32 %v2288_v28, %v307_v19  ;;  %v334_v44 = vadd.f32 %v2343_v38, %v296_v22  ;;  %v365_v22 = vmax.f32 %v340_v5, 0.0 }
  0x9c   : > { %572 = vrot.lane.b32.xlu2 %v513_v50, %s2098_s17  ;;  %v260_v50 = vunpack.c.l.bf16 %v2293_v31  ;;  %v354_v31 = vmax.f32 %v329_v48, 0.0  ;;  %v269_v48 = vunpack.c.h.bf16 %v2200_v34  ;;  %v391_v34 = vld [vmem:[%s3672_s2 + $0x68] sm:$0xff] }
  0x9d   : > { %v370_v56 = vmax.f32 %v345_v42, 0.0  ;;  %v2445_v1 = vmul.f32 %v390_v4, %v365_v22 }
  0x9e   : > { %v2424_v6 = vmul.f32 %v379_v11, %v354_v31 }
  0x9f   : > { %v2419_v0 = vmul.f32 %v395_v47, %v370_v56  ;;  %v506_v51 = vmul.f32 %v2336_v57, %v2445_v1  ;;  %v396_v56 = vld [vmem:[%s3672_s2 + $0x90] sm:$0xff] }
  0xa1   : > { %v511_v16 = vmul.f32 %v2336_v57, %v2419_v0 }
  0xa3   : > { %538 = vrot.lane.b32.xlu0 %v496_v63, %s2098_s17  ;;  %705 = vrot.lane.b32.xlu1 %v656_v58, %s2099_s28  ;;  %v359_v58 = vmax.f32 %v334_v44, 0.0  ;;  %v297_v63 = vmul.f32 %v2275_v20, %v260_v50  ;;  %v341_v44 = vadd.f32 %v2316_v49, %v303_v27 }
  0xa4   : > { %695 = vrot.lane.b32.xlu2 %v651_v61, %s2099_s28  ;;  %v666_v61 = vmul.f32 %v2310_v43, %v2306_v39 }
  0xa5   : > { %v2421_v3 = vmul.f32 %v384_v2, %v359_v58  ;;  %v335_v8 = vadd.f32 %v2288_v28, %v297_v63  ;;  %v366_v58 = vmax.f32 %v341_v44, 0.0 }
  0xa7   : > { %v500_v19 = vmul.f32 %v2395_v45, %v2421_v3  ;;  %v360_v25 = vmax.f32 %v335_v8, 0.0  ;;  %v2471_v2 = vmul.f32 %v391_v34, %v366_v58  ;;  %v639_v8 = vsel %vm638_vm1, %v2280_v23, %v633_v29 }
  0xa8   : > { %v648_v23 = vmul.f32 %v639_v8, %v2424_v6 }
  0xa9   : > { %v2448_v42 = vmul.f32 %v385_v12, %v360_v25  ;;  %v507_v5 = vmul.f32 %v2364_v13, %v2471_v2 }
  0xab   : > { %550 = vrot.lane.b32.xlu0 %v502_v10, %s2098_s17  ;;  %717 = vrot.lane.b32.xlu1 %v662_v24, %s2099_s28  ;;  %v308_v10 = vmul.f32 %v2304_v37, %v271_v15  ;;  %v495_v24 = vmul.f32 %v2395_v45, %v2424_v6 }
  0xac   : > { %707 = vrot.lane.b32.xlu2 %v657_v30, %s2099_s28  ;;  %v635_v30 = vpop.permute.xlu2 %634 }
  0xad   : > { %v640_v46 = vsel %vm638_vm1, %v633_v29, %v635_v30  ;;  %v346_v33 = vadd.f32 %v2316_v49, %v308_v10  ;;  %v653_v10 = vmul.f32 %v639_v8, %v2421_v3 }
  0xae   : > { %v649_v50 = vmul.f32 %v640_v46, %v2327_v53  ;;  %v664_v22 = vmul.f32 %v640_v46, %v2419_v0  ;;  %v659_v25 = vmul.f32 %v640_v46, %v2445_v1  ;;  %v654_v27 = vmul.f32 %v640_v46, %v2448_v42 }
  0xb3   : > { %556 = vrot.lane.b32.xlu0 %v505_v52, %s2098_s17  ;;  %540 = vrot.lane.b32.xlu1 %v497_v54, %s2098_s17  ;;  %v371_v52 = vmax.f32 %v346_v33, 0.0  ;;  %v501_v54 = vmul.f32 %v2336_v57, %v2448_v42  ;;  %v641_v57 = vsel %vm638_vm1, %v635_v30, %v2310_v43  ;;  %v394_v43 = vld [vmem:[%s3672_s2 + $0x80] sm:$0xff] }
  0xb4   : > { %725 = vrot.lane.b32.xlu2 %v666_v61, %s2099_s28  ;;  %v306_v61 = vmul.f32 %v2331_v55, %v269_v48  ;;  %v655_v63 = vmul.f32 %v641_v57, %v2357_v7  ;;  %v660_v33 = vmul.f32 %v641_v57, %v2471_v2 }
  0xb5   : > { %v2467_v47 = vmul.f32 %v396_v56, %v371_v52 }
  0xb6   : > { %v344_v31 = vadd.f32 %v2343_v38, %v306_v61 }
  0xb7   : > { %v512_v11 = vmul.f32 %v2364_v13, %v2467_v47  ;;  %v650_v13 = vmul.f32 %v641_v57, %v2388_v36  ;;  %v665_v12 = vmul.f32 %v641_v57, %v2467_v47 }
  0xb8   : > { %v369_v15 = vmax.f32 %v344_v31, 0.0 }
  0xba   : > { %v2487_v9 = vmul.f32 %v394_v43, %v369_v15 }
  0xbb   : > { %568 = vrot.lane.b32.xlu0 %v511_v16, %s2098_s17  ;;  %546 = vrot.lane.b32.xlu1 %v500_v19, %s2098_s17  ;;  %v658_v16 = vmul.f32 %v639_v8, %v2386_v35 }
  0xbc   : > { %536 = vrot.lane.b32.xlu2 %v495_v24, %s2098_s17  ;;  %v510_v19 = vmul.f32 %v2395_v45, %v2487_v9  ;;  %v2066_v45 = vld [vmem:[%s3673_s3 + $0x4] ss:$8 sm:$0xf]  ;;  %v663_v48 = vmul.f32 %v639_v8, %v2487_v9 }
  0xbd   : > { %v899_v4 = vperm.slane %v2066_v45, 0  ;;  %v902_v30 = vperm.slane %v2066_v45, 3  ;;  %v900_v46 = vperm.slane %v2066_v45, 1  ;;  %v901_v52 = vperm.slane %v2066_v45, 2 }
  0xc3   : > { %691 = vrot.lane.b32.xlu0 %v649_v50, %s2099_s28  ;;  %558 = vrot.lane.b32.xlu1 %v506_v51, %s2098_s17 }
  0xc4   : > { %548 = vrot.lane.b32.xlu2 %v501_v54, %s2098_s17 }
  0xcb   : > { %703 = vrot.lane.b32.xlu0 %v655_v63, %s2099_s28  ;;  %570 = vrot.lane.b32.xlu1 %v512_v11, %s2098_s17 }
  0xcc   : > { %560 = vrot.lane.b32.xlu2 %v507_v5, %s2098_s17 }
  0xd3   : > { %709 = vrot.lane.b32.xlu0 %v658_v16, %s2099_s28  ;;  %693 = vrot.lane.b32.xlu1 %v650_v13, %s2099_s28 }
  0xd4   : > { %566 = vrot.lane.b32.xlu2 %v510_v19, %s2098_s17 }
  0xdb   : > { %721 = vrot.lane.b32.xlu0 %v664_v22, %s2099_s28  ;;  %699 = vrot.lane.b32.xlu1 %v653_v10, %s2099_s28 }
  0xdc   : > { %689 = vrot.lane.b32.xlu2 %v648_v23, %s2099_s28 }
  0xdd   : > { %v535_v24 = vpop.permute.xlu2 %534 }
  0xe3   : > { %903 = vrot.lane.b32.xlu0 %v899_v4, %s2096_s24  ;;  %711 = vrot.lane.b32.xlu1 %v659_v25, %s2099_s28 }
  0xe4   : > { %701 = vrot.lane.b32.xlu2 %v654_v27, %s2099_s28 }
  0xe6   : > { %v543_v29 = vpop.permute.xlu2 %542 }
  0xeb   : > { %909 = vrot.lane.b32.xlu0 %v902_v30, %s2096_s24  ;;  %723 = vrot.lane.b32.xlu1 %v665_v12, %s2099_s28 }
  0xec   : > { %713 = vrot.lane.b32.xlu2 %v660_v33, %s2099_s28  ;;  %v428_v33 = vld [vmem:[%s3673_s3] ss:$8 sm:$0xf] }
  0xed   : > { %v2553_v32 = vperm.slane %v428_v33, 3  ;;  %v2555_v39 = vperm.slane %v428_v33, 2 }
  0xee   : > { %v555_v44 = vpop.permute.xlu2 %554 }
  0xf3   : > { %905 = vrot.lane.b32.xlu1 %v900_v46, %s2096_s24 }
  0xf4   : > { %719 = vrot.lane.b32.xlu2 %v663_v48, %s2099_s28 }
  0xf5   : > { %v545_v50 = vpop.permute.xlu0 %544 }
  0xf6   : > { %v2518_v51 = vpop.permute.xlu2 %572 }
  0xfc   : > { %907 = vrot.lane.b32.xlu2 %v901_v52, %s2096_s24  ;;  %v430_v52 = vperm.slane %v428_v33, 0 }
  0xfd   : > { %v553_v54 = vpop.permute.xlu1 %552  ;;  %v563_v56 = vpop.permute.xlu0 %562 }
  0xfe   : > { %v2521_v58 = vpop.permute.xlu2 %695 }
 0x105   : > { %v565_v61 = vpop.permute.xlu1 %564  ;;  %v2523_v34 = vpop.permute.xlu0 %697 }
 0x106   : > { %v2525_v57 = vpop.permute.xlu2 %707 }
 0x10d   : > { %v2527_v31 = vpop.permute.xlu0 %715  ;;  %v688_v63 = vpop.permute.xlu1 %687 }
 0x10e   : > { %v2529_v11 = vpop.permute.xlu2 %725 }
 0x115   : > { %v539_v5 = vpop.permute.xlu0 %538  ;;  %v706_v15 = vpop.permute.xlu1 %705 }
 0x116   : > { %v537_v43 = vpop.permute.xlu2 %536 }
 0x117   : > { %v575_v8 = vsel %vm574_vm2, %v535_v24, %v537_v43  ;;  %v576_v16 = vsel %vm574_vm2, %v537_v43, %v539_v5 }
 0x11d   : > { %v551_v13 = vpop.permute.xlu0 %550  ;;  %v2533_v19 = vpop.permute.xlu1 %717 }
 0x11e   : > { %v582_v22 = vsel %vm574_vm2, %v551_v13, %v553_v54  ;;  %v549_v10 = vpop.permute.xlu2 %548  ;;  %v2544_v54 = vperm.slane %v428_v33, 1  ;;  %v445_v33 = vmul.f32 %v2553_v32, %v2357_v7 }
 0x11f   : > { %v581_v23 = vsel %vm574_vm2, %v549_v10, %v551_v13 }
 0x125   : > { %v557_v45 = vpop.permute.xlu0 %556  ;;  %v541_v4 = vpop.permute.xlu1 %540 }
 0x126   : > { %v583_v25 = vsel %vm574_vm2, %v555_v44, %v557_v45  ;;  %v577_v27 = vsel %vm574_vm2, %v539_v5, %v541_v4  ;;  %v578_v30 = vsel %vm574_vm2, %v541_v4, %v543_v29  ;;  %v561_v12 = vpop.permute.xlu2 %560  ;;  %v438_v4 = vmul.f32 %v430_v52, %v2215_v41 }
 0x127   : > { %v586_v24 = vsel %vm574_vm2, %v561_v12, %v563_v56  ;;  %v439_v56 = vmul.f32 %v2544_v54, %v2424_v6 }
 0x129   : > { %v608_v38 = vadd.f32 %v576_v16, %v439_v56  ;;  %v614_v16 = vadd.f32 %v582_v22, %v445_v33  ;;  %v446_v22 = vmul.f32 %v430_v52, %v2277_v21 }
 0x12d   : > { %v569_v46 = vpop.permute.xlu0 %568  ;;  %v547_v48 = vpop.permute.xlu1 %546 }
 0x12e   : > { %v579_v43 = vsel %vm574_vm2, %v545_v50, %v547_v48  ;;  %v580_v44 = vsel %vm574_vm2, %v547_v48, %v549_v10  ;;  %v567_v13 = vpop.permute.xlu2 %566  ;;  %v607_v50 = vadd.f32 %v575_v8, %v438_v4  ;;  %v444_v8 = vmul.f32 %v2555_v39, %v2448_v42 }
 0x12f   : > { %v587_v5 = vsel %vm574_vm2, %v565_v61, %v567_v13  ;;  %v588_v29 = vsel %vm574_vm2, %v567_v13, %v569_v46 }
 0x130   : > { %v613_v4 = vadd.f32 %v581_v23, %v444_v8  ;;  %v440_v23 = vmul.f32 %v2555_v39, %v2327_v53 }
 0x135   : > { %v692_v26 = vpop.permute.xlu0 %691  ;;  %v559_v28 = vpop.permute.xlu1 %558 }
 0x136   : > { %v584_v10 = vsel %vm574_vm2, %v557_v45, %v559_v28  ;;  %v585_v61 = vsel %vm574_vm2, %v559_v28, %v561_v12  ;;  %v690_v48 = vpop.permute.xlu2 %689 }
 0x137   : > { %v728_v13 = vsel %vm727_vm3, %v688_v63, %v690_v48  ;;  %v729_v20 = vsel %vm727_vm3, %v690_v48, %v692_v26 }
 0x138   : > { %v2561_v55 = vadd.f32 %v728_v13, %v607_v50  ;;  %v2563_v49 = vadd.f32 %v729_v20, %v608_v38  ;;  %v609_v13 = vadd.f32 %v577_v27, %v440_v23 }
 0x13a   : > { %3708 = vst [vmem:[#allocation12_spill] sm:$0xff] %v2563_v49 }
 0x13d   : > { %v704_v56 = vpop.permute.xlu0 %703  ;;  %v571_v45 = vpop.permute.xlu1 %570 }
 0x13e   : > { %v735_v28 = vsel %vm727_vm3, %v704_v56, %v706_v15  ;;  %v2571_v63 = vsel %vm574_vm2, %v569_v46, %v571_v45  ;;  %v2575_v12 = vsel %vm574_vm2, %v571_v45, %v2518_v51  ;;  %v702_v20 = vpop.permute.xlu2 %701  ;;  %v441_v15 = vmul.f32 %v2553_v32, %v2388_v36 }
 0x13f   : > { %v2577_v38 = vadd.f32 %v735_v28, %v614_v16  ;;  %v734_v50 = vsel %vm727_vm3, %v702_v20, %v704_v56  ;;  %v449_v46 = vmul.f32 %v2553_v32, %v2471_v2  ;;  %v615_v51 = vadd.f32 %v583_v25, %v446_v22 }
 0x140   : > { %v2580_v48 = vadd.f32 %v734_v50, %v613_v4  ;;  %v610_v33 = vadd.f32 %v578_v30, %v441_v15  ;;  %v442_v30 = vmul.f32 %v430_v52, %v2213_v40 }
 0x141   : > { %3709 = vst [vmem:[#allocation13_spill] sm:$0xff] %v2577_v38  ;;  %v618_v45 = vadd.f32 %v586_v24, %v449_v46 }
 0x142   : > { %3710 = vst [vmem:[#allocation14_spill] sm:$0xff] %v2580_v48  ;;  %v611_v24 = vadd.f32 %v579_v43, %v442_v30 }
 0x145   : > { %v710_v8 = vpop.permute.xlu0 %709  ;;  %v694_v16 = vpop.permute.xlu1 %693 }
 0x146   : > { %v736_v56 = vsel %vm727_vm3, %v2525_v57, %v710_v8  ;;  %v730_v4 = vsel %vm727_vm3, %v692_v26, %v694_v16  ;;  %v731_v28 = vsel %vm727_vm3, %v694_v16, %v2521_v58  ;;  %v714_v50 = vpop.permute.xlu2 %713  ;;  %v443_v26 = vmul.f32 %v2544_v54, %v2421_v3 }
 0x147   : > { %v2594_v38 = vadd.f32 %v736_v56, %v615_v51  ;;  %v2596_v48 = vadd.f32 %v730_v4, %v609_v13  ;;  %v2598_v49 = vadd.f32 %v731_v28, %v610_v33  ;;  %v739_v25 = vsel %vm727_vm3, %v714_v50, %v2527_v31 }
 0x148   : > { %v2602_v27 = vadd.f32 %v739_v25, %v618_v45  ;;  %v450_v57 = vmul.f32 %v430_v52, %v2272_v17  ;;  %v451_v58 = vmul.f32 %v2544_v54, %v2487_v9  ;;  %v612_v22 = vadd.f32 %v580_v44, %v443_v26 }
 0x14a   : > { %v619_v46 = vadd.f32 %v587_v5, %v450_v57  ;;  %v620_v51 = vadd.f32 %v588_v29, %v451_v58  ;;  %v447_v5 = vmul.f32 %v2544_v54, %v2386_v35  ;;  %v452_v58 = vmul.f32 %v2555_v39, %v2419_v0 }
 0x14c   : > { %v616_v29 = vadd.f32 %v584_v10, %v447_v5  ;;  %v2676_v5 = vld [vmem:[%s2158_s29 + $0x50] sm:$0x11] }
 0x14d   : > { %v722_v23 = vpop.permute.xlu0 %721  ;;  %v700_v15 = vpop.permute.xlu1 %699 }
 0x14e   : > { %v732_v31 = vsel %vm727_vm3, %v2523_v34, %v700_v15  ;;  %v733_v13 = vsel %vm727_vm3, %v700_v15, %v702_v20  ;;  %v720_v33 = vpop.permute.xlu2 %719  ;;  %v448_v34 = vmul.f32 %v2555_v39, %v2445_v1 }
 0x14f   : > { %v2613_v16 = vadd.f32 %v732_v31, %v611_v24  ;;  %v2615_v45 = vadd.f32 %v733_v13, %v612_v22  ;;  %v740_v52 = vsel %vm727_vm3, %v2533_v19, %v720_v33  ;;  %v741_v43 = vsel %vm727_vm3, %v720_v33, %v722_v23 }
 0x150   : > { %v2620_v44 = vadd.f32 %v740_v52, %v619_v46  ;;  %v2622_v56 = vadd.f32 %v741_v43, %v620_v51  ;;  %v617_v20 = vadd.f32 %v585_v61, %v448_v34  ;;  %v621_v22 = vadd.f32 %v2571_v63, %v452_v58 }
 0x155   : > { %v2628_v4 = vpop.permute.xlu0 %903  ;;  %v712_v28 = vpop.permute.xlu1 %711 }
 0x156   : > { %v737_v25 = vsel %vm727_vm3, %v710_v8, %v712_v28  ;;  %v738_v19 = vsel %vm727_vm3, %v712_v28, %v714_v50  ;;  %v919_v30 = vmul.f32 %v2628_v4, %v2215_v41  ;;  %v2636_v26 = vmul.f32 %v2628_v4, %v2213_v40  ;;  %v908_v24 = vpop.permute.xlu2 %907 }
 0x157   : > { %v2638_v54 = vadd.f32 %v737_v25, %v616_v29  ;;  %v2640_v57 = vadd.f32 %v738_v19, %v617_v20  ;;  %v453_v8 = vmul.f32 %v2553_v32, %v2467_v47 }
 0x158   : > { %v969_v10 = vrot.slane %v919_v30, 1  ;;  %v970_v61 = vrot.slane %v2636_v26, 1  ;;  %v273_v26 = vunpack.c.l.bf16 %v2676_v5 }
 0x159   : > { %v622_v15 = vadd.f32 %v2575_v12, %v453_v8 }
 0x15a   : > { %v971_v50 = vsel %vm827_vm4, %v969_v10, %v970_v61 }
 0x15b   : > { %1014 = vrot.lane.b32.xlu1 %v971_v50, %s2098_s17 }
 0x15d   : > { %v2651_v46 = vpop.permute.xlu0 %909  ;;  %v724_v51 = vpop.permute.xlu1 %723 }
 0x15e   : > { %v742_v31 = vsel %vm727_vm3, %v722_v23, %v724_v51  ;;  %v743_v39 = vsel %vm727_vm3, %v724_v51, %v2529_v11  ;;  %v2658_v32 = vsel %vm485_vm0, %v908_v24, %v2651_v46 }
 0x15f   : > { %v2660_v13 = vadd.f32 %v742_v31, %v621_v22  ;;  %v2662_v33 = vadd.f32 %v743_v39, %v622_v15  ;;  %v922_v63 = vmul.f32 %v2658_v32, %v2388_v36  ;;  %v2668_v12 = vmul.f32 %v2658_v32, %v2357_v7 }
 0x160   : > { %v923_v22 = vmul.f32 %v2651_v46, %v2248_v62  ;;  %v928_v31 = vmul.f32 %v2651_v46, %v2243_v59  ;;  %v2709_v39 = vmul.f32 %v2651_v46, %v2245_v60  ;;  %v937_v59 = vmul.f32 %v2658_v32, %v2467_v47 }
 0x161   : > { %v978_v52 = vrot.slane %v922_v63, 1  ;;  %v979_v23 = vrot.slane %v2668_v12, 1 }
 0x163   : > { %v980_v11 = vsel %vm827_vm4, %v978_v52, %v979_v23  ;;  %v929_v52 = vmul.f32 %v2628_v4, %v2277_v21 }
 0x164   : > { %1020 = vrot.lane.b32.xlu1 %v980_v11, %s2098_s17  ;;  %v310_v11 = vmul.f32 %v2173_v14, %v273_v26  ;;  %v932_v26 = vmul.f32 %v2658_v32, %v2471_v2 }
 0x165   : > { %v906_v43 = vpop.permute.xlu1 %905 }
 0x166   : > { %v2680_v34 = vsel %vm485_vm0, %v2628_v4, %v906_v43  ;;  %v2683_v29 = vsel %vm485_vm0, %v906_v43, %v908_v24  ;;  %v251_v43 = vld [vmem:[%s2158_s29 + $0x58] sm:$0x11] }
 0x167   : > { %v920_v20 = vmul.f32 %v2680_v34, %v2424_v6  ;;  %v925_v28 = vmul.f32 %v2680_v34, %v2421_v3  ;;  %v2691_v25 = vmul.f32 %v2680_v34, %v2386_v35  ;;  %v921_v19 = vmul.f32 %v2683_v29, %v2327_v53 }
 0x168   : > { %v926_v30 = vmul.f32 %v2683_v29, %v2448_v42  ;;  %v2729_v14 = vmul.f32 %v2683_v29, %v2419_v0 }
 0x169   : > { %v972_v10 = vrot.slane %v920_v20, 1  ;;  %v973_v58 = vrot.slane %v925_v28, 1  ;;  %v3687_v8 = vrot.slane %v2691_v25, 1  ;;  %v975_v50 = vrot.slane %v921_v19, 1 }
 0x16a   : > { %v976_v24 = vrot.slane %v926_v30, 1  ;;  %v981_v20 = vrot.slane %v923_v22, 1  ;;  %v982_v28 = vrot.slane %v928_v31, 1  ;;  %v3685_v19 = vrot.slane %v2709_v39, 1 }
 0x16b   : > { %v974_v15 = vsel %vm827_vm4, %v972_v10, %v973_v58  ;;  %v987_v51 = vsel %vm827_vm4, %v973_v58, %v3687_v8  ;;  %v984_v30 = vrot.slane %v929_v52, 1  ;;  %v348_v10 = vadd.f32 %v2183_v18, %v310_v11  ;;  %v3715_v8 = vld [vmem:[#allocation7_spill] sm:$0xff] }
 0x16c   : > { %1016 = vrot.lane.b32.xlu2 %v974_v15, %s2098_s17  ;;  %1026 = vrot.lane.b32.xlu1 %v987_v51, %s2098_s17  ;;  %v977_v63 = vsel %vm827_vm4, %v975_v50, %v976_v24  ;;  %v276_v58 = vunpack.c.h.bf16 %v251_v43  ;;  %v983_v15 = vsel %vm827_vm4, %v981_v20, %v982_v28  ;;  %v993_v50 = vsel %vm827_vm4, %v982_v28, %v3685_v19 }
 0x16d   : > { %1018 = vrot.lane.b32.xlu0 %v977_v63, %s2098_s17  ;;  %v931_v51 = vmul.f32 %v2683_v29, %v2445_v1  ;;  %v985_v18 = vsel %vm827_vm4, %v970_v61, %v984_v30  ;;  %v373_v22 = vmax.f32 %v348_v10, 0.0  ;;  %v398_v63 = vld [vmem:[%s3672_s2 + $0xa0] sm:$0x3]  ;;  %v3686_v11 = vrot.slane %v2729_v14, 1  ;;  %v3711_v61 = vld [vmem:[#allocation9_spill] sm:$0xff] }
 0x16e   : > { %v313_v31 = vmul.f32 %v2304_v37, %v276_v58  ;;  %v990_v20 = vrot.slane %v932_v26, 1  ;;  %v275_v19 = vunpack.c.l.bf16 %v251_v43  ;;  %v934_v58 = vmul.f32 %v2628_v4, %v2272_v17  ;;  %v3712_v26 = vld [vmem:[#allocation10_spill] sm:$0xff] }
 0x16f   : > { %v988_v52 = vrot.slane %v931_v51, 1  ;;  %v2742_v28 = vmul.f32 %v398_v63, %v373_v22  ;;  %v935_v43 = vmul.f32 %v2680_v34, %v2487_v9 }
 0x171   : > { %v999_v10 = vsel %vm827_vm4, %v988_v52, %v3686_v11  ;;  %v989_v37 = vsel %vm827_vm4, %v976_v24, %v988_v52  ;;  %v939_v51 = vmul.f32 %v2628_v4, %v2742_v28  ;;  %v401_v4 = vld [vmem:[%s3672_s2 + $0xb8] sm:$0x3]  ;;  %v996_v12 = vrot.slane %v935_v43, 1  ;;  %v399_v43 = vld [vmem:[%s3672_s2 + $0xa8] sm:$0x3] }
 0x174   : > { %1022 = vrot.lane.b32.xlu2 %v983_v15, %s2098_s17  ;;  %1032 = vrot.lane.b32.xlu1 %v993_v50, %s2098_s17  ;;  %v351_v15 = vadd.f32 %v3711_v61, %v313_v31  ;;  %v274_v50 = vunpack.c.h.bf16 %v2676_v5  ;;  %v991_v5 = vsel %vm827_vm4, %v979_v23, %v990_v20  ;;  %v3713_v31 = vld [vmem:[#allocation6_spill] sm:$0xff]  ;;  %v994_v61 = vrot.slane %v934_v58, 1  ;;  %v3714_v23 = vld [vmem:[#allocation11_spill] sm:$0xff] }
 0x175   : > { %1024 = vrot.lane.b32.xlu0 %v985_v18, %s2098_s17  ;;  %v252_v18 = vld [vmem:[%s2158_s29 + $0x60] sm:$0x1]  ;;  %v312_v63 = vmul.f32 %v3713_v31, %v275_v19  ;;  %v3717_v58 = vrot.slane %v2691_v25, 1  ;;  %v3719_v25 = vld [vmem:[#allocation3_spill] sm:$0xff]  ;;  %s237_s29 = scalar_lea.vmem %s3675_s5, %s2074_s21 }
 0x176   : > { %v376_v24 = vmax.f32 %v351_v15, 0.0  ;;  %v311_v22 = vmul.f32 %v3712_v26, %v274_v50  ;;  %v277_v52 = vunpack.c.l.bf16 %v252_v18  ;;  %v995_v26 = vsel %vm827_vm4, %v984_v30, %v994_v61 }
 0x177   : > { %v350_v60 = vadd.f32 %v3715_v8, %v312_v63  ;;  %v997_v8 = vsel %vm827_vm4, %v3717_v58, %v996_v12 }
 0x178   : > { %v349_v11 = vadd.f32 %v3714_v23, %v311_v22  ;;  %v3720_v23 = vrot.slane %v2709_v39, 1 }
 0x17a   : > { %v374_v30 = vmax.f32 %v349_v11, 0.0 }
 0x17c   : > { %1038 = vrot.lane.b32.xlu1 %v999_v10, %s2098_s17  ;;  %1028 = vrot.lane.b32.xlu2 %v989_v37, %s2098_s17  ;;  %v1004_v10 = vrot.slane %v939_v51, 1  ;;  %v2768_v37 = vmul.f32 %v401_v4, %v376_v24  ;;  %v3718_v51 = vld [vmem:[#allocation8_spill] sm:$0xff]  ;;  %v375_v24 = vmax.f32 %v350_v60, 0.0 }
 0x17d   : > { %1030 = vrot.lane.b32.xlu0 %v991_v5, %s2098_s17  ;;  %v3716_v5 = vld [vmem:[#allocation2_spill] sm:$0xff]  ;;  %v938_v18 = vmul.f32 %v2651_v46, %v3718_v51  ;;  %v400_v4 = vld [vmem:[%s3672_s2 + $0xb0] sm:$0x3] }
 0x17e   : > { %v314_v15 = vmul.f32 %v3716_v5, %v277_v52  ;;  %v1005_v50 = vsel %vm827_vm4, %v994_v61, %v1004_v10  ;;  %v942_v19 = vmul.f32 %v2658_v32, %v2768_v37  ;;  %v1000_v32 = vrot.slane %v937_v59, 1 }
 0x17f   : > { %v1002_v63 = vrot.slane %v938_v18, 1  ;;  %v2794_v52 = vmul.f32 %v399_v43, %v374_v30  ;;  %v2796_v61 = vmul.f32 %v400_v4, %v375_v24 }
 0x180   : > { %v1010_v22 = vrot.slane %v942_v19, 1  ;;  %v352_v31 = vadd.f32 %v3719_v25, %v314_v15  ;;  %v1001_v10 = vsel %vm827_vm4, %v990_v20, %v1000_v32 }
 0x181   : > { %v940_v60 = vmul.f32 %v2680_v34, %v2794_v52  ;;  %v1003_v5 = vsel %vm827_vm4, %v3720_v23, %v1002_v63  ;;  %v941_v15 = vmul.f32 %v2683_v29, %v2796_v61  ;;  %v2067_v34 = vld [vmem:[%s3673_s3 + $0x5] ss:$8 sm:$0xf] }
 0x182   : > { %v1011_v11 = vsel %vm827_vm4, %v1000_v32, %v1010_v22  ;;  %v377_v59 = vmax.f32 %v352_v31, 0.0  ;;  %v1106_v19 = vperm.slane %v2067_v34, 1  ;;  %v1105_v43 = vperm.slane %v2067_v34, 0 }
 0x183   : > { %v1006_v20 = vrot.slane %v940_v60, 1  ;;  %v1008_v39 = vrot.slane %v941_v15, 1 }
 0x184   : > { %1044 = vrot.lane.b32.xlu1 %v1005_v50, %s2098_s17  ;;  %1034 = vrot.lane.b32.xlu2 %v995_v26, %s2098_s17  ;;  %v402_v50 = vld [vmem:[%s3672_s2 + $0xc0] sm:$0x3] }
 0x185   : > { %1036 = vrot.lane.b32.xlu0 %v997_v8, %s2098_s17  ;;  %v2816_v26 = vmul.f32 %v402_v50, %v377_v59  ;;  %v1007_v58 = vsel %vm827_vm4, %v996_v12, %v1006_v20  ;;  %v3721_v8 = vrot.slane %v2729_v14, 1  ;;  %v1107_v12 = vperm.slane %v2067_v34, 2  ;;  %v2065_v14 = vld [vmem:[%s3673_s3 + $0x3] ss:$8 sm:$0xf] }
 0x186   : > { %v2835_v32 = vperm.slane %v2065_v14, 0 }
 0x187   : > { %v943_v29 = vmul.f32 %v2651_v46, %v2816_v26  ;;  %v1009_v18 = vsel %vm827_vm4, %v3721_v8, %v1008_v39  ;;  %v1108_v46 = vperm.slane %v2067_v34, 3 }
 0x188   : > { %v787_v22 = vmul.f32 %v2835_v32, %v2215_v41  ;;  %v791_v4 = vmul.f32 %v2835_v32, %v2213_v40 }
 0x189   : > { %v1012_v30 = vrot.slane %v943_v29, 1 }
 0x18a   : > { %v828_v31 = vrot.slane %v787_v22, 1 }
 0x18b   : > { %v1013_v24 = vsel %vm827_vm4, %v1002_v63, %v1012_v30  ;;  %v829_v63 = vrot.slane %v791_v4, 1 }
 0x18c   : > { %1050 = vrot.lane.b32.xlu1 %v1011_v11, %s2098_s17  ;;  %1040 = vrot.lane.b32.xlu2 %v1001_v10, %s2098_s17  ;;  %v2841_v11 = vperm.slane %v2065_v14, 3 }
 0x18d   : > { %1042 = vrot.lane.b32.xlu0 %v1003_v5, %s2098_s17  ;;  %v830_v10 = vsel %vm827_vm4, %v828_v31, %v829_v63 }
 0x18e   : > { %v790_v60 = vmul.f32 %v2841_v11, %v2388_v36  ;;  %v880_v23 = vadd.f32 %v830_v10, %v2561_v55  ;;  %v794_v5 = vmul.f32 %v2841_v11, %v2357_v7 }
 0x190   : > { %v837_v20 = vrot.slane %v790_v60, 1  ;;  %v838_v39 = vrot.slane %v794_v5, 1 }
 0x192   : > { %v839_v29 = vsel %vm827_vm4, %v837_v20, %v838_v39 }
 0x194   : > { %1111 = vrot.lane.b32.xlu1 %v1106_v19, %s2097_s25  ;;  %1046 = vrot.lane.b32.xlu2 %v1007_v58, %s2098_s17  ;;  %v2852_v19 = vperm.slane %v2065_v14, 1  ;;  %v2854_v58 = vperm.slane %v2065_v14, 2 }
 0x195   : > { %1048 = vrot.lane.b32.xlu0 %v1009_v18, %s2098_s17 }
 0x196   : > { %v2859_v8 = vmul.f32 %v2852_v19, %v2386_v35  ;;  %v792_v55 = vmul.f32 %v2852_v19, %v2421_v3  ;;  %v788_v18 = vmul.f32 %v2852_v19, %v2424_v6  ;;  %v789_v30 = vmul.f32 %v2854_v58, %v2327_v53 }
 0x198   : > { %v842_v22 = vrot.slane %v2859_v8, 1  ;;  %v832_v31 = vrot.slane %v792_v55, 1  ;;  %v831_v10 = vrot.slane %v788_v18, 1  ;;  %v834_v60 = vrot.slane %v789_v30, 1 }
 0x19a   : > { %v833_v5 = vsel %vm827_vm4, %v831_v10, %v832_v31 }
 0x19c   : > { %1052 = vrot.lane.b32.xlu2 %v1013_v24, %s2098_s17 }
 0x19d   : > { %1109 = vrot.lane.b32.xlu0 %v1105_v43, %s2097_s25  ;;  %v883_v43 = vadd.f32 %v839_v29, %v2598_v49 }
 0x1a4   : > { %1113 = vrot.lane.b32.xlu2 %v1107_v12, %s2097_s25 }
 0x1a5   : > { %1115 = vrot.lane.b32.xlu0 %v1108_v46, %s2097_s25  ;;  %v793_v46 = vmul.f32 %v2854_v58, %v2448_v42 }
 0x1c6   : > { %v1017_v25 = vpop.permute.xlu2 %1016 }
 0x1cd   : > { %v1015_v59 = vpop.permute.xlu1 %1014 }
 0x1ce   : > { %v1054_v15 = vsel %vm574_vm2, %v1015_v59, %v1017_v25  ;;  %v1023_v50 = vpop.permute.xlu2 %1022  ;;  %v835_v59 = vrot.slane %v793_v46, 1 }
 0x1cf   : > { %v2850_v34 = vadd.f32 %v1054_v15, %v880_v23  ;;  %v843_v23 = vsel %vm827_vm4, %v832_v31, %v842_v22 }
 0x1d0   : > { %v836_v49 = vsel %vm827_vm4, %v834_v60, %v835_v59  ;;  %v885_v15 = vadd.f32 %v843_v23, %v2615_v45  ;;  %v2893_v23 = vmul.f32 %v2854_v58, %v2419_v0 }
 0x1d1   : > { %3722 = vst [vmem:[#allocation9_spill] sm:$0xff] %v2850_v34  ;;  %v882_v18 = vadd.f32 %v836_v49, %v2596_v48  ;;  %v797_v48 = vmul.f32 %v2854_v58, %v2445_v1  ;;  %v798_v49 = vmul.f32 %v2841_v11, %v2471_v2 }
 0x1d6   : > { %v1021_v24 = vpop.permute.xlu1 %1020  ;;  %v1029_v12 = vpop.permute.xlu2 %1028 }
 0x1d7   : > { %v1057_v14 = vsel %vm574_vm2, %v1021_v24, %v1023_v50  ;;  %v795_v50 = vmul.f32 %v2835_v32, %v2277_v21 }
 0x1d8   : > { %v2872_v4 = vadd.f32 %v1057_v14, %v883_v43  ;;  %v3724_v43 = vld [vmem:[#allocation12_spill] sm:$0xff] }
 0x1d9   : > { %v881_v55 = vadd.f32 %v833_v5, %v3724_v43  ;;  %v840_v60 = vrot.slane %v795_v50, 1 }
 0x1da   : > { %3723 = vst [vmem:[#allocation10_spill] sm:$0xff] %v2872_v4 }
 0x1db   : > { %v841_v5 = vsel %vm827_vm4, %v829_v63, %v840_v60 }
 0x1de   : > { %v1027_v20 = vpop.permute.xlu1 %1026  ;;  %v1035_v29 = vpop.permute.xlu2 %1034 }
 0x1df   : > { %v1059_v8 = vsel %vm574_vm2, %v1027_v20, %v1029_v12  ;;  %v1019_v30 = vpop.permute.xlu0 %1018 }
 0x1e0   : > { %v2883_v46 = vadd.f32 %v1059_v8, %v885_v15  ;;  %v1055_v14 = vsel %vm574_vm2, %v1017_v25, %v1019_v30  ;;  %v1056_v31 = vsel %vm574_vm2, %v1019_v30, %v1021_v24  ;;  %v884_v24 = vadd.f32 %v841_v5, %v2613_v16 }
 0x1e1   : > { %v2887_v10 = vadd.f32 %v1055_v14, %v881_v55  ;;  %v2889_v45 = vadd.f32 %v1056_v31, %v882_v18  ;;  %v852_v8 = vrot.slane %v2893_v23, 1  ;;  %v844_v55 = vrot.slane %v797_v48, 1 }
 0x1e2   : > { %3725 = vst [vmem:[#allocation6_spill] sm:$0xff] %v2883_v46  ;;  %v846_v18 = vrot.slane %v798_v49, 1  ;;  %v803_v14 = vmul.f32 %v2835_v32, %v2742_v28  ;;  %v799_v16 = vmul.f32 %v2835_v32, %v2272_v17  ;;  %v800_v5 = vmul.f32 %v2852_v19, %v2487_v9  ;;  %v3729_v49 = vld [vmem:[#allocation14_spill] sm:$0xff] }
 0x1e3   : > { %3726 = vst [vmem:[#allocation11_spill] sm:$0xff] %v2887_v10  ;;  %v853_v63 = vsel %vm827_vm4, %v844_v55, %v852_v8  ;;  %v845_v31 = vsel %vm827_vm4, %v835_v59, %v844_v55 }
 0x1e4   : > { %3727 = vst [vmem:[#allocation7_spill] sm:$0xff] %v2889_v45  ;;  %v847_v46 = vsel %vm827_vm4, %v838_v39, %v846_v18  ;;  %v890_v23 = vadd.f32 %v853_v63, %v2640_v57  ;;  %v856_v4 = vrot.slane %v803_v14, 1  ;;  %v848_v55 = vrot.slane %v799_v16, 1 }
 0x1e5   : > { %v850_v34 = vrot.slane %v800_v5, 1 }
 0x1e6   : > { %v1033_v25 = vpop.permute.xlu1 %1032  ;;  %v1041_v43 = vpop.permute.xlu2 %1040  ;;  %v857_v10 = vsel %vm827_vm4, %v848_v55, %v856_v4  ;;  %v849_v14 = vsel %vm827_vm4, %v840_v60, %v848_v55 }
 0x1e7   : > { %v1025_v15 = vpop.permute.xlu0 %1024 }
 0x1e8   : > { %v1058_v50 = vsel %vm574_vm2, %v1025_v15, %v1027_v20  ;;  %v3730_v15 = vld [vmem:[#allocation13_spill] sm:$0xff] }
 0x1e9   : > { %v2903_v30 = vadd.f32 %v1058_v50, %v884_v24  ;;  %v886_v24 = vadd.f32 %v845_v31, %v3729_v49  ;;  %v887_v50 = vadd.f32 %v847_v46, %v3730_v15  ;;  %v806_v46 = vmul.f32 %v2841_v11, %v2768_v37 }
 0x1ea   : > { %v851_v31 = vsel %vm827_vm4, %v842_v22, %v850_v34 }
 0x1eb   : > { %3728 = vst [vmem:[#allocation2_spill] sm:$0xff] %v2903_v30  ;;  %v889_v5 = vadd.f32 %v851_v31, %v2638_v54  ;;  %v804_v54 = vmul.f32 %v2852_v19, %v2794_v52 }
 0x1ed   : > { %v858_v31 = vrot.slane %v804_v54, 1 }
 0x1ee   : > { %v1039_v20 = vpop.permute.xlu1 %1038  ;;  %v1047_v45 = vpop.permute.xlu2 %1046 }
 0x1ef   : > { %v1064_v48 = vsel %vm574_vm2, %v1039_v20, %v1041_v43  ;;  %v1031_v30 = vpop.permute.xlu0 %1030  ;;  %v859_v19 = vsel %vm827_vm4, %v850_v34, %v858_v31 }
 0x1f0   : > { %v2918_v59 = vadd.f32 %v1064_v48, %v890_v23  ;;  %v1060_v39 = vsel %vm574_vm2, %v1029_v12, %v1031_v30  ;;  %v1061_v32 = vsel %vm574_vm2, %v1031_v30, %v1033_v25  ;;  %v802_v12 = vmul.f32 %v2841_v11, %v2467_v47 }
 0x1f1   : > { %v2922_v57 = vadd.f32 %v1060_v39, %v886_v24  ;;  %v2924_v63 = vadd.f32 %v1061_v32, %v887_v50  ;;  %v892_v25 = vadd.f32 %v857_v10, %v2620_v44  ;;  %v888_v23 = vadd.f32 %v849_v14, %v2594_v38 }
 0x1f2   : > { %v862_v48 = vrot.slane %v806_v46, 1  ;;  %v854_v24 = vrot.slane %v802_v12, 1  ;;  %v805_v50 = vmul.f32 %v2854_v58, %v2796_v61 }
 0x1f4   : > { %v863_v44 = vsel %vm827_vm4, %v854_v24, %v862_v48  ;;  %v855_v38 = vsel %vm827_vm4, %v846_v18, %v854_v24  ;;  %v860_v18 = vrot.slane %v805_v50, 1 }
 0x1f5   : > { %v891_v32 = vadd.f32 %v855_v38, %v2602_v27 }
 0x1f6   : > { %v1045_v30 = vpop.permute.xlu1 %1044  ;;  %v1053_v10 = vpop.permute.xlu2 %1052  ;;  %v861_v58 = vsel %vm827_vm4, %v852_v8, %v860_v18 }
 0x1f7   : > { %v1066_v16 = vsel %vm574_vm2, %v1045_v30, %v1047_v45  ;;  %v1037_v4 = vpop.permute.xlu0 %1036  ;;  %v893_v30 = vadd.f32 %v859_v19, %v2622_v56 }
 0x1f8   : > { %v2937_v49 = vadd.f32 %v1066_v16, %v892_v25  ;;  %v1062_v60 = vsel %vm574_vm2, %v1035_v29, %v1037_v4  ;;  %v1063_v22 = vsel %vm574_vm2, %v1037_v4, %v1039_v20  ;;  %v895_v29 = vadd.f32 %v863_v44, %v2662_v33 }
 0x1f9   : > { %v2941_v15 = vadd.f32 %v1062_v60, %v888_v23  ;;  %v2943_v11 = vadd.f32 %v1063_v22, %v889_v5  ;;  %v894_v16 = vadd.f32 %v861_v58, %v2660_v13 }
 0x1fe   : > { %v1051_v39 = vpop.permute.xlu1 %1050  ;;  %v1114_v25 = vpop.permute.xlu2 %1113 }
 0x1ff   : > { %v1069_v20 = vsel %vm574_vm2, %v1051_v39, %v1053_v10  ;;  %v1043_v55 = vpop.permute.xlu0 %1042 }
 0x200   : > { %v2954_v46 = vadd.f32 %v1069_v20, %v895_v29  ;;  %v1065_v14 = vsel %vm574_vm2, %v1041_v43, %v1043_v55 }
 0x201   : > { %v2957_v12 = vadd.f32 %v1065_v14, %v891_v32 }
 0x206   : > { %v1112_v33 = vpop.permute.xlu1 %1111 }
 0x207   : > { %v1049_v27 = vpop.permute.xlu0 %1048  ;;  %v2964_v23 = vsel %vm638_vm1, %v1112_v33, %v1114_v25 }
 0x208   : > { %v1067_v43 = vsel %vm574_vm2, %v1047_v45, %v1049_v27  ;;  %v1068_v5 = vsel %vm574_vm2, %v1049_v27, %v1051_v39  ;;  %v1127_v4 = vmul.f32 %v2964_v23, %v2327_v53  ;;  %v1132_v34 = vmul.f32 %v2964_v23, %v2448_v42 }
 0x209   : > { %v2972_v8 = vadd.f32 %v1067_v43, %v893_v30  ;;  %v2974_v48 = vadd.f32 %v1068_v5, %v894_v16 }
 0x20a   : > { %v1181_v56 = vrot.slane %v1127_v4, 1  ;;  %v1182_v13 = vrot.slane %v1132_v34, 1 }
 0x20c   : > { %v1183_v60 = vsel %vm827_vm4, %v1181_v56, %v1182_v13 }
 0x20d   : > { %1224 = vrot.lane.b32.xlu0 %v1183_v60, %s2099_s28 }
 0x20f   : > { %v2978_v22 = vpop.permute.xlu0 %1109 }
 0x210   : > { %v2982_v45 = vsel %vm638_vm1, %v2978_v22, %v1112_v33  ;;  %v1125_v24 = vmul.f32 %v2978_v22, %v2215_v41  ;;  %v1130_v44 = vmul.f32 %v2978_v22, %v2213_v40  ;;  %v1135_v10 = vmul.f32 %v2978_v22, %v2277_v21  ;;  %v3731_v33 = vld [vmem:[#allocation4_spill] sm:$0xff] }
 0x211   : > { %v1126_v38 = vmul.f32 %v2982_v45, %v2424_v6  ;;  %v1131_v54 = vmul.f32 %v2982_v45, %v2421_v3 }
 0x212   : > { %v1175_v50 = vrot.slane %v1125_v24, 1  ;;  %v1176_v29 = vrot.slane %v1130_v44, 1  ;;  %v1190_v39 = vrot.slane %v1135_v10, 1  ;;  %v1136_v10 = vmul.f32 %v2982_v45, %v2386_v35 }
 0x213   : > { %v1178_v20 = vrot.slane %v1126_v38, 1  ;;  %v1179_v32 = vrot.slane %v1131_v54, 1  ;;  %v1137_v38 = vmul.f32 %v2964_v23, %v2445_v1  ;;  %v1141_v54 = vmul.f32 %v2982_v45, %v2487_v9 }
 0x214   : > { %v1177_v55 = vsel %vm827_vm4, %v1175_v50, %v1176_v29  ;;  %v1191_v14 = vsel %vm827_vm4, %v1176_v29, %v1190_v39  ;;  %v1192_v50 = vrot.slane %v1136_v10, 1 }
 0x215   : > { %1220 = vrot.lane.b32.xlu1 %v1177_v55, %s2099_s28  ;;  %v1180_v31 = vsel %vm827_vm4, %v1178_v20, %v1179_v32  ;;  %1230 = vrot.lane.b32.xlu0 %v1191_v14, %s2099_s28  ;;  %v1194_v29 = vrot.slane %v1137_v38, 1  ;;  %v1202_v20 = vrot.slane %v1141_v54, 1 }
 0x216   : > { %1222 = vrot.lane.b32.xlu2 %v1180_v31, %s2099_s28  ;;  %v1193_v55 = vsel %vm827_vm4, %v1179_v32, %v1192_v50  ;;  %v3732_v31 = vld [vmem:[#allocation5_spill] sm:$0xff] }
 0x217   : > { %v3000_v18 = vpop.permute.xlu0 %1115  ;;  %v1195_v14 = vsel %vm827_vm4, %v1182_v13, %v1194_v29 }
 0x218   : > { %v1119_v19 = vsel %vm638_vm1, %v1114_v25, %v3000_v18  ;;  %v1129_v58 = vmul.f32 %v3000_v18, %v2248_v62  ;;  %v1134_v30 = vmul.f32 %v3000_v18, %v3731_v33 }
 0x219   : > { %v1128_v16 = vmul.f32 %v1119_v19, %v2388_v36  ;;  %v1133_v27 = vmul.f32 %v1119_v19, %v2357_v7  ;;  %v1138_v43 = vmul.f32 %v1119_v19, %v2471_v2 }
 0x21a   : > { %v1187_v5 = vrot.slane %v1129_v58, 1  ;;  %v1188_v4 = vrot.slane %v1134_v30, 1  ;;  %v1139_v58 = vmul.f32 %v3000_v18, %v3732_v31  ;;  %v1140_v30 = vmul.f32 %v2978_v22, %v2272_v17 }
 0x21b   : > { %v1184_v34 = vrot.slane %v1128_v16, 1  ;;  %v1185_v56 = vrot.slane %v1133_v27, 1  ;;  %v1196_v60 = vrot.slane %v1138_v43, 1  ;;  %v1203_v16 = vsel %vm827_vm4, %v1192_v50, %v1202_v20 }
 0x21c   : > { %v1189_v24 = vsel %vm827_vm4, %v1187_v5, %v1188_v4  ;;  %v1144_v27 = vmul.f32 %v3000_v18, %v3718_v51  ;;  %v1198_v32 = vrot.slane %v1139_v58, 1  ;;  %v1200_v43 = vrot.slane %v1140_v30, 1 }
 0x21d   : > { %v1186_v25 = vsel %vm827_vm4, %v1184_v34, %v1185_v56  ;;  %v1197_v44 = vsel %vm827_vm4, %v1185_v56, %v1196_v60  ;;  %v1142_v56 = vmul.f32 %v2964_v23, %v2419_v0  ;;  %v1145_v50 = vmul.f32 %v2978_v22, %v2742_v28 }
 0x21e   : > { %1228 = vrot.lane.b32.xlu2 %v1189_v24, %s2099_s28  ;;  %1226 = vrot.lane.b32.xlu1 %v1186_v25, %s2099_s28  ;;  %v1208_v13 = vrot.slane %v1144_v27, 1  ;;  %v1199_v5 = vsel %vm827_vm4, %v1188_v4, %v1198_v32  ;;  %v1201_v34 = vsel %vm827_vm4, %v1190_v39, %v1200_v43  ;;  %v1143_v24 = vmul.f32 %v1119_v19, %v2467_v47 }
 0x21f   : > { %1236 = vrot.lane.b32.xlu0 %v1197_v44, %s2099_s28  ;;  %v1147_v44 = vmul.f32 %v2964_v23, %v2796_v61  ;;  %v1204_v10 = vrot.slane %v1142_v56, 1 }
 0x220   : > { %v1209_v25 = vsel %vm827_vm4, %v1198_v32, %v1208_v13  ;;  %v1206_v4 = vrot.slane %v1143_v24, 1 }
 0x221   : > { %v1214_v38 = vrot.slane %v1147_v44, 1  ;;  %v1205_v39 = vsel %vm827_vm4, %v1194_v29, %v1204_v10  ;;  %v2069_v29 = vld [vmem:[%s3673_s3 + $0x7] ss:$8 sm:$0xf] }
 0x222   : > { %v1207_v54 = vsel %vm827_vm4, %v1196_v60, %v1206_v4  ;;  %v1431_v58 = vperm.slane %v2069_v29, 0  ;;  %v3733_v44 = vld [vmem:[#allocation11_spill] sm:$0xff] }
 0x223   : > { %v1215_v23 = vsel %vm827_vm4, %v1204_v10, %v1214_v38 }
 0x226   : > { %1232 = vrot.lane.b32.xlu1 %v1193_v55, %s2099_s28  ;;  %1234 = vrot.lane.b32.xlu2 %v1195_v14, %s2099_s28  ;;  %v1146_v55 = vmul.f32 %v2982_v45, %v2794_v52  ;;  %v1210_v14 = vrot.slane %v1145_v50, 1  ;;  %v1148_v45 = vmul.f32 %v1119_v19, %v2768_v37  ;;  %v1433_v19 = vperm.slane %v2069_v29, 2 }
 0x227   : > { %1242 = vrot.lane.b32.xlu0 %v1203_v16, %s2099_s28  ;;  %v1149_v16 = vmul.f32 %v3000_v18, %v2816_v26  ;;  %v1432_v18 = vperm.slane %v2069_v29, 1 }
 0x228   : > { %v1212_v60 = vrot.slane %v1146_v55, 1  ;;  %v1211_v22 = vsel %vm827_vm4, %v1200_v43, %v1210_v14  ;;  %v1216_v27 = vrot.slane %v1148_v45, 1 }
 0x229   : > { %v1218_v32 = vrot.slane %v1149_v16, 1 }
 0x22a   : > { %v1213_v30 = vsel %vm827_vm4, %v1202_v20, %v1212_v60 }
 0x22b   : > { %v1219_v43 = vsel %vm827_vm4, %v1208_v13, %v1218_v32 }
 0x22e   : > { %1238 = vrot.lane.b32.xlu1 %v1199_v5, %s2099_s28  ;;  %1240 = vrot.lane.b32.xlu2 %v1201_v34, %s2099_s28  ;;  %v1434_v5 = vperm.slane %v2069_v29, 3  ;;  %v1217_v34 = vsel %vm827_vm4, %v1206_v4, %v1216_v27 }
 0x22f   : > { %1248 = vrot.lane.b32.xlu0 %v1209_v25, %s2099_s28 }
 0x236   : > { %1244 = vrot.lane.b32.xlu1 %v1205_v39, %s2099_s28  ;;  %1246 = vrot.lane.b32.xlu2 %v1207_v54, %s2099_s28  ;;  %v3734_v54 = vld [vmem:[#allocation9_spill] sm:$0xff] }
 0x237   : > { %1254 = vrot.lane.b32.xlu0 %v1215_v23, %s2099_s28 }
 0x23e   : > { %1250 = vrot.lane.b32.xlu1 %v1211_v22, %s2099_s28  ;;  %1252 = vrot.lane.b32.xlu2 %v1213_v30, %s2099_s28  ;;  %v3736_v30 = vld [vmem:[#allocation10_spill] sm:$0xff] }
 0x23f   : > { %1435 = vrot.lane.b32.xlu0 %v1431_v58, %s2096_s24  ;;  %v3735_v58 = vld [vmem:[#allocation7_spill] sm:$0xff] }
 0x246   : > { %1256 = vrot.lane.b32.xlu1 %v1217_v34, %s2099_s28  ;;  %1258 = vrot.lane.b32.xlu2 %v1219_v43, %s2099_s28 }
 0x247   : > { %1441 = vrot.lane.b32.xlu0 %v1434_v5, %s2096_s24 }
 0x24e   : > { %1437 = vrot.lane.b32.xlu1 %v1432_v18, %s2096_s24  ;;  %1439 = vrot.lane.b32.xlu2 %v1433_v19, %s2096_s24  ;;  %v3737_v18 = vld [vmem:[#allocation2_spill] sm:$0xff] }
 0x270   : > { %v1223_v20 = vpop.permute.xlu2 %1222 }
 0x278   : > { %v1229_v56 = vpop.permute.xlu2 %1228 }
 0x27f   : > { %v1225_v24 = vpop.permute.xlu0 %1224 }
 0x280   : > { %v1261_v25 = vsel %vm727_vm3, %v1223_v20, %v1225_v24  ;;  %v1235_v13 = vpop.permute.xlu2 %1234 }
 0x281   : > { %v3076_v10 = vadd.f32 %v1261_v25, %v3733_v44 }
 0x287   : > { %v1221_v4 = vpop.permute.xlu1 %1220  ;;  %v1231_v38 = vpop.permute.xlu0 %1230 }
 0x288   : > { %v1260_v39 = vsel %vm727_vm3, %v1221_v4, %v1223_v20  ;;  %v1241_v23 = vpop.permute.xlu2 %1240  ;;  %v3738_v20 = vld [vmem:[#allocation6_spill] sm:$0xff] }
 0x289   : > { %v3080_v50 = vadd.f32 %v1260_v39, %v3734_v54 }
 0x290   : > { %v1227_v55 = vpop.permute.xlu1 %1226  ;;  %v1247_v25 = vpop.permute.xlu2 %1246 }
 0x291   : > { %v1262_v29 = vsel %vm727_vm3, %v1225_v24, %v1227_v55  ;;  %v1263_v14 = vsel %vm727_vm3, %v1227_v55, %v1229_v56  ;;  %v1237_v60 = vpop.permute.xlu0 %1236 }
 0x292   : > { %v3085_v22 = vadd.f32 %v1262_v29, %v3735_v58  ;;  %v3088_v45 = vadd.f32 %v1263_v14, %v3736_v30  ;;  %v1266_v16 = vsel %vm727_vm3, %v1235_v13, %v1237_v60 }
 0x293   : > { %v3092_v27 = vadd.f32 %v1266_v16, %v2922_v57 }
 0x298   : > { %v1233_v32 = vpop.permute.xlu1 %1232  ;;  %v1253_v55 = vpop.permute.xlu2 %1252 }
 0x299   : > { %v1264_v5 = vsel %vm727_vm3, %v1231_v38, %v1233_v32  ;;  %v1265_v34 = vsel %vm727_vm3, %v1233_v32, %v1235_v13  ;;  %v1243_v43 = vpop.permute.xlu0 %1242 }
 0x29a   : > { %v3097_v19 = vadd.f32 %v1264_v5, %v3737_v18  ;;  %v3100_v56 = vadd.f32 %v1265_v34, %v3738_v20  ;;  %v1268_v24 = vsel %vm727_vm3, %v1241_v23, %v1243_v43 }
 0x29b   : > { %v3104_v44 = vadd.f32 %v1268_v24, %v2941_v15 }
 0x2a0   : > { %v1239_v57 = vpop.permute.xlu1 %1238 }
 0x2a1   : > { %v1267_v4 = vsel %vm727_vm3, %v1237_v60, %v1239_v57  ;;  %v1249_v39 = vpop.permute.xlu0 %1248 }
 0x2a2   : > { %v3108_v38 = vadd.f32 %v1267_v4, %v2924_v63  ;;  %v1271_v13 = vsel %vm727_vm3, %v1247_v25, %v1249_v39 }
 0x2a3   : > { %v3112_v54 = vadd.f32 %v1271_v13, %v2957_v12  ;;  %v1259_v12 = vpop.permute.xlu2 %1258 }
 0x2a5   : > { %3739 = vst [vmem:[#allocation8_spill] sm:$0xff] %v3112_v54 }
 0x2a8   : > { %v1245_v29 = vpop.permute.xlu1 %1244 }
 0x2a9   : > { %v1269_v23 = vsel %vm727_vm3, %v1243_v43, %v1245_v29  ;;  %v1270_v14 = vsel %vm727_vm3, %v1245_v29, %v1247_v25  ;;  %v1255_v15 = vpop.permute.xlu0 %1254 }
 0x2aa   : > { %v3117_v58 = vadd.f32 %v1269_v23, %v2943_v11  ;;  %v3120_v60 = vadd.f32 %v1270_v14, %v2918_v59  ;;  %v1273_v63 = vsel %vm727_vm3, %v1253_v55, %v1255_v15 }
 0x2ab   : > { %v3124_v30 = vadd.f32 %v1273_v63, %v2972_v8  ;;  %v1440_v20 = vpop.permute.xlu2 %1439 }
 0x2ad   : > { %3740 = vst [vmem:[#allocation3_spill] sm:$0xff] %v3124_v30 }
 0x2b0   : > { %v1251_v16 = vpop.permute.xlu1 %1250 }
 0x2b1   : > { %v1272_v32 = vsel %vm727_vm3, %v1251_v16, %v1253_v55  ;;  %v3127_v5 = vpop.permute.xlu0 %1435 }
 0x2b2   : > { %v3130_v34 = vadd.f32 %v1272_v32, %v2937_v49  ;;  %v1451_v11 = vmul.f32 %v3127_v5, %v2215_v41  ;;  %v1456_v59 = vmul.f32 %v3127_v5, %v2213_v40 }
 0x2b4   : > { %3741 = vst [vmem:[#allocation12_spill] sm:$0xff] %v3130_v34  ;;  %v1501_v43 = vrot.slane %v1451_v11, 2  ;;  %v1502_v18 = vrot.slane %v1456_v59, 2 }
 0x2b6   : > { %v1503_v8 = vsel %vm1359_vm5, %v1501_v43, %v1502_v18 }
 0x2b7   : > { %1546 = vrot.lane.b32.xlu1 %v1503_v8, %s2098_s17 }
 0x2b8   : > { %v1257_v24 = vpop.permute.xlu1 %1256 }
 0x2b9   : > { %v1274_v25 = vsel %vm727_vm3, %v1255_v15, %v1257_v24  ;;  %v1275_v49 = vsel %vm727_vm3, %v1257_v24, %v1259_v12  ;;  %v3140_v57 = vpop.permute.xlu0 %1441 }
 0x2ba   : > { %v3143_v4 = vadd.f32 %v1274_v25, %v2974_v48  ;;  %v3146_v39 = vadd.f32 %v1275_v49, %v2954_v46  ;;  %v1445_v13 = vsel %vm485_vm0, %v1440_v20, %v3140_v57 }
 0x2bb   : > { %v1454_v55 = vmul.f32 %v1445_v13, %v2388_v36  ;;  %v1459_v29 = vmul.f32 %v1445_v13, %v2357_v7  ;;  %v3154_v63 = vmul.f32 %v1445_v13, %v2467_v47  ;;  %v1474_v48 = vmul.f32 %v1445_v13, %v2768_v37 }
 0x2bc   : > { %3742 = vst [vmem:[#allocation14_spill] sm:$0xff] %v3143_v4  ;;  %v1460_v4 = vmul.f32 %v3140_v57, %v3731_v33 }
 0x2bd   : > { %3743 = vst [vmem:[#allocation13_spill] sm:$0xff] %v3146_v39  ;;  %v1510_v23 = vrot.slane %v1454_v55, 2  ;;  %v1511_v14 = vrot.slane %v1459_v29, 2  ;;  %v1542_v25 = vrot.slane %v1474_v48, 2  ;;  %v1455_v39 = vmul.f32 %v3140_v57, %v2248_v62 }
 0x2be   : > { %v1461_v48 = vmul.f32 %v3127_v5, %v2277_v21 }
 0x2bf   : > { %v1512_v15 = vsel %vm1359_vm5, %v1510_v23, %v1511_v14 }
 0x2c0   : > { %1552 = vrot.lane.b32.xlu1 %v1512_v15, %s2098_s17  ;;  %v1438_v46 = vpop.permute.xlu1 %1437 }
 0x2c1   : > { %v3160_v12 = vsel %vm485_vm0, %v3127_v5, %v1438_v46  ;;  %v3163_v16 = vsel %vm485_vm0, %v1438_v46, %v1440_v20 }
 0x2c2   : > { %v1452_v32 = vmul.f32 %v3160_v12, %v2424_v6  ;;  %v1457_v11 = vmul.f32 %v3160_v12, %v2421_v3  ;;  %v1462_v59 = vmul.f32 %v3160_v12, %v2386_v35  ;;  %v1453_v43 = vmul.f32 %v3163_v16, %v2327_v53 }
 0x2c3   : > { %v1458_v8 = vmul.f32 %v3163_v16, %v2448_v42 }
 0x2c4   : > { %v1504_v20 = vrot.slane %v1452_v32, 2  ;;  %v1505_v49 = vrot.slane %v1457_v11, 2  ;;  %v1518_v55 = vrot.slane %v1462_v59, 2  ;;  %v1507_v29 = vrot.slane %v1453_v43, 2 }
 0x2c5   : > { %v1508_v23 = vrot.slane %v1458_v8, 2  ;;  %v3744_v32 = vrot.slane %v3154_v63, 2  ;;  %v2070_v59 = vld [vmem:[%s3673_s3 + $0x20] ss:$8 sm:$0xf]  ;;  %v1513_v43 = vrot.slane %v1455_v39, 2  ;;  %v1467_v39 = vmul.f32 %v3160_v12, %v2487_v9 }
 0x2c6   : > { %v1506_v15 = vsel %vm1359_vm5, %v1504_v20, %v1505_v49  ;;  %v1519_v46 = vsel %vm1359_vm5, %v1505_v49, %v1518_v55  ;;  %v1514_v8 = vrot.slane %v1460_v4, 2  ;;  %v1516_v20 = vrot.slane %v1461_v48, 2 }
 0x2c7   : > { %1548 = vrot.lane.b32.xlu2 %v1506_v15, %s2098_s17  ;;  %v1509_v24 = vsel %vm1359_vm5, %v1507_v29, %v1508_v23  ;;  %v3191_v11 = vsel %vm1359_vm5, %v3744_v32, %v1542_v25  ;;  %v1639_v49 = vperm.slane %v2070_v59, 2  ;;  %v1637_v25 = vperm.slane %v2070_v59, 0 }
 0x2c8   : > { %1558 = vrot.lane.b32.xlu1 %v1519_v46, %s2098_s17  ;;  %1550 = vrot.lane.b32.xlu0 %v1509_v24, %s2098_s17  ;;  %v1515_v29 = vsel %vm1359_vm5, %v1513_v43, %v1514_v8  ;;  %v1517_v15 = vsel %vm1359_vm5, %v1502_v18, %v1516_v20  ;;  %v1464_v24 = vmul.f32 %v1445_v13, %v2471_v2  ;;  %v1638_v32 = vperm.slane %v2070_v59, 1 }
 0x2c9   : > { %v1463_v48 = vmul.f32 %v3163_v16, %v2445_v1  ;;  %v1640_v18 = vperm.slane %v2070_v59, 3  ;;  %v1528_v13 = vrot.slane %v1467_v39, 2 }
 0x2ca   : > { %v1522_v46 = vrot.slane %v1464_v24, 2  ;;  %v1466_v24 = vmul.f32 %v3127_v5, %v2272_v17 }
 0x2cb   : > { %v1520_v43 = vrot.slane %v1463_v48, 2  ;;  %v1473_v48 = vmul.f32 %v3163_v16, %v2796_v61 }
 0x2cc   : > { %v1523_v4 = vsel %vm1359_vm5, %v1511_v14, %v1522_v46  ;;  %v1529_v14 = vsel %vm1359_vm5, %v1518_v55, %v1528_v13  ;;  %v1468_v55 = vmul.f32 %v3163_v16, %v2419_v0  ;;  %v1472_v16 = vmul.f32 %v3160_v12, %v2794_v52 }
 0x2cf   : > { %1554 = vrot.lane.b32.xlu2 %v1515_v29, %s2098_s17  ;;  %v1521_v29 = vsel %vm1359_vm5, %v1508_v23, %v1520_v43 }
 0x2d0   : > { %1645 = vrot.lane.b32.xlu1 %v1639_v49, %s2097_s25  ;;  %1556 = vrot.lane.b32.xlu0 %v1517_v15, %s2098_s17  ;;  %v1465_v49 = vmul.f32 %v3140_v57, %v3732_v31  ;;  %v3217_v15 = vmul.f32 %v3140_v57, %v3718_v51 }
 0x2d2   : > { %v1524_v59 = vrot.slane %v1465_v49, 2 }
 0x2d7   : > { %1641 = vrot.lane.b32.xlu2 %v1637_v25, %s2097_s25  ;;  %v3693_v25 = vrot.slane %v3217_v15, 2 }
 0x2d8   : > { %1562 = vrot.lane.b32.xlu1 %v1523_v4, %s2098_s17  ;;  %1643 = vrot.lane.b32.xlu0 %v1638_v32, %s2097_s25  ;;  %v1526_v32 = vrot.slane %v1466_v24, 2  ;;  %v1525_v4 = vsel %vm1359_vm5, %v1514_v8, %v1524_v59  ;;  %v1540_v8 = vrot.slane %v1473_v48, 2 }
 0x2d9   : > { %v1535_v23 = vsel %vm1359_vm5, %v1524_v59, %v3693_v25 }
 0x2da   : > { %v1527_v39 = vsel %vm1359_vm5, %v1516_v20, %v1526_v32  ;;  %v3745_v20 = vrot.slane %v3154_v63, 2  ;;  %v2068_v63 = vld [vmem:[%s3673_s3 + $0x6] ss:$8 sm:$0xf] }
 0x2db   : > { %v3261_v48 = vperm.slane %v2068_v63, 3 }
 0x2dc   : > { %v1533_v24 = vsel %vm1359_vm5, %v1522_v46, %v3745_v20  ;;  %v3255_v46 = vperm.slane %v2068_v63, 0 }
 0x2de   : > { %v1319_v12 = vmul.f32 %v3255_v46, %v2215_v41 }
 0x2df   : > { %1647 = vrot.lane.b32.xlu2 %v1640_v18, %s2097_s25  ;;  %v1530_v18 = vrot.slane %v1468_v55, 2  ;;  %v1323_v55 = vmul.f32 %v3255_v46, %v2213_v40 }
 0x2e0   : > { %1568 = vrot.lane.b32.xlu1 %v1529_v14, %s2098_s17  ;;  %1560 = vrot.lane.b32.xlu0 %v1521_v29, %s2098_s17  ;;  %v1471_v14 = vmul.f32 %v3127_v5, %v2742_v28 }
 0x2e1   : > { %v1531_v49 = vsel %vm1359_vm5, %v1520_v43, %v1530_v18  ;;  %v1541_v29 = vsel %vm1359_vm5, %v1530_v18, %v1540_v8  ;;  %v1538_v43 = vrot.slane %v1472_v16, 2  ;;  %v1322_v18 = vmul.f32 %v3261_v48, %v2388_v36 }
 0x2e2   : > { %v1536_v59 = vrot.slane %v1471_v14, 2  ;;  %v3268_v8 = vmul.f32 %v3261_v48, %v2357_v7 }
 0x2e3   : > { %v1539_v5 = vsel %vm1359_vm5, %v1528_v13, %v1538_v43 }
 0x2e4   : > { %v3692_v43 = vrot.slane %v3268_v8, 2 }
 0x2e7   : > { %1564 = vrot.lane.b32.xlu2 %v1525_v4, %s2098_s17  ;;  %v1537_v4 = vsel %vm1359_vm5, %v1526_v32, %v1536_v59  ;;  %v1360_v32 = vrot.slane %v1319_v12, 2  ;;  %v1369_v59 = vrot.slane %v1322_v18, 2 }
 0x2e8   : > { %1574 = vrot.lane.b32.xlu1 %v1535_v23, %s2098_s17  ;;  %1566 = vrot.lane.b32.xlu0 %v1527_v39, %s2098_s17  ;;  %v1361_v39 = vrot.slane %v1323_v55, 2 }
 0x2e9   : > { %v1371_v12 = vsel %vm1359_vm5, %v1369_v59, %v3692_v43 }
 0x2ea   : > { %v1362_v13 = vsel %vm1359_vm5, %v1360_v32, %v1361_v39 }
 0x2eb   : > { %v1412_v14 = vadd.f32 %v1362_v13, %v3080_v50 }
 0x2ef   : > { %1570 = vrot.lane.b32.xlu2 %v1531_v49, %s2098_s17 }
 0x2f0   : > { %1580 = vrot.lane.b32.xlu1 %v1541_v29, %s2098_s17  ;;  %1572 = vrot.lane.b32.xlu0 %v1533_v24, %s2098_s17  ;;  %v3272_v24 = vperm.slane %v2068_v63, 1 }
 0x2f2   : > { %3746 = vst [vmem:[#allocation4_spill] sm:$0xff] %v3272_v24  ;;  %v1324_v55 = vmul.f32 %v3272_v24, %v2421_v3 }
 0x2f7   : > { %1576 = vrot.lane.b32.xlu2 %v1537_v4, %s2098_s17  ;;  %v3277_v4 = vperm.slane %v2068_v63, 2  ;;  %v1415_v63 = vadd.f32 %v1371_v12, %v3088_v45  ;;  %v3305_v45 = vmul.f32 %v3255_v46, %v2277_v21 }
 0x2f8   : > { %1578 = vrot.lane.b32.xlu0 %v1539_v5, %s2098_s17  ;;  %v1320_v5 = vmul.f32 %v3272_v24, %v2424_v6 }
 0x2f9   : > { %v1321_v50 = vmul.f32 %v3277_v4, %v2327_v53  ;;  %v3290_v32 = vmul.f32 %v3277_v4, %v2448_v42 }
 0x2fa   : > { %v1363_v18 = vrot.slane %v1320_v5, 2 }
 0x2fb   : > { %v1366_v59 = vrot.slane %v1321_v50, 2  ;;  %v3694_v43 = vrot.slane %v3290_v32, 2 }
 0x2fd   : > { %v1368_v34 = vsel %vm1359_vm5, %v1366_v59, %v3694_v43 }
 0x2fe   : > { %v1414_v12 = vadd.f32 %v1368_v34, %v3085_v22 }
 0x321   : > { %v1549_v23 = vpop.permute.xlu2 %1548 }
 0x329   : > { %v1547_v49 = vpop.permute.xlu1 %1546  ;;  %v1555_v29 = vpop.permute.xlu2 %1554 }
 0x32a   : > { %v1586_v20 = vsel %vm574_vm2, %v1547_v49, %v1549_v23 }
 0x32b   : > { %v3274_v16 = vadd.f32 %v1586_v20, %v1412_v14  ;;  %v1364_v20 = vrot.slane %v1324_v55, 2 }
 0x32d   : > { %3747 = vst [vmem:[#allocation5_spill] sm:$0xff] %v3274_v16  ;;  %v1365_v30 = vsel %vm1359_vm5, %v1363_v18, %v1364_v20  ;;  %v1372_v18 = vrot.slane %v3305_v45, 2 }
 0x32f   : > { %v1373_v43 = vsel %vm1359_vm5, %v1361_v39, %v1372_v18 }
 0x331   : > { %v3294_v14 = vpop.permute.xlu2 %1641 }
 0x332   : > { %v1553_v13 = vpop.permute.xlu1 %1552 }
 0x333   : > { %v1589_v49 = vsel %vm574_vm2, %v1553_v13, %v1555_v29  ;;  %v1413_v29 = vadd.f32 %v1365_v30, %v3076_v10  ;;  %v1416_v10 = vadd.f32 %v1373_v43, %v3097_v19  ;;  %v1328_v43 = vmul.f32 %v3272_v24, %v2386_v35 }
 0x334   : > { %v3297_v25 = vadd.f32 %v1589_v49, %v1415_v63 }
 0x339   : > { %v3316_v59 = vpop.permute.xlu2 %1647 }
 0x33a   : > { %v1559_v5 = vpop.permute.xlu1 %1558  ;;  %v1551_v50 = vpop.permute.xlu0 %1550 }
 0x33b   : > { %v1587_v55 = vsel %vm574_vm2, %v1549_v23, %v1551_v50  ;;  %v1588_v63 = vsel %vm574_vm2, %v1551_v50, %v1553_v13 }
 0x33c   : > { %v3312_v49 = vadd.f32 %v1587_v55, %v1413_v29  ;;  %v3314_v16 = vadd.f32 %v1588_v63, %v1414_v12  ;;  %v3340_v12 = vmul.f32 %v3272_v24, %v2487_v9 }
 0x341   : > { %v3334_v19 = vpop.permute.xlu2 %1564 }
 0x342   : > { %v1646_v54 = vpop.permute.xlu1 %1645  ;;  %v1557_v30 = vpop.permute.xlu0 %1556 }
 0x343   : > { %v3322_v22 = vsel %vm638_vm1, %v1646_v54, %v3316_v59  ;;  %v1590_v34 = vsel %vm574_vm2, %v1557_v30, %v1559_v5  ;;  %v3370_v30 = vmul.f32 %v3255_v46, %v2272_v17 }
 0x344   : > { %v3325_v23 = vadd.f32 %v1590_v34, %v1416_v10  ;;  %v1660_v13 = vmul.f32 %v3322_v22, %v2388_v36  ;;  %v3331_v45 = vmul.f32 %v3322_v22, %v2357_v7  ;;  %v1374_v10 = vrot.slane %v1328_v43, 2 }
 0x346   : > { %3748 = vst [vmem:[#allocation11_spill] sm:$0xff] %v3325_v23  ;;  %v1716_v39 = vrot.slane %v1660_v13, 2  ;;  %v3695_v29 = vrot.slane %v3331_v45, 2  ;;  %v3749_v23 = vrot.slane %v3340_v12, 2 }
 0x348   : > { %v1718_v36 = vsel %vm1359_vm5, %v1716_v39, %v3695_v29 }
 0x349   : > { %1758 = vrot.lane.b32.xlu1 %v1718_v36, %s2099_s28 }
 0x34a   : > { %v3346_v7 = vpop.permute.xlu1 %1562  ;;  %v1644_v50 = vpop.permute.xlu0 %1643 }
 0x34b   : > { %v3350_v55 = vsel %vm638_vm1, %v3294_v14, %v1644_v50  ;;  %v3353_v63 = vsel %vm638_vm1, %v1644_v50, %v1646_v54 }
 0x34c   : > { %v1659_v34 = vmul.f32 %v3353_v63, %v2327_v53  ;;  %v1664_v13 = vmul.f32 %v3353_v63, %v2448_v42  ;;  %v1658_v39 = vmul.f32 %v3350_v55, %v2424_v6  ;;  %v1663_v36 = vmul.f32 %v3350_v55, %v2421_v3 }
 0x34d   : > { %v3366_v29 = vmul.f32 %v3353_v63, %v2445_v1  ;;  %v1383_v6 = vsel %vm1359_vm5, %v1374_v10, %v3749_v23  ;;  %v1375_v3 = vsel %vm1359_vm5, %v1364_v20, %v1374_v10  ;;  %v1661_v23 = vmul.f32 %v3316_v59, %v2248_v62 }
 0x34e   : > { %v1713_v54 = vrot.slane %v1659_v34, 2  ;;  %v1714_v43 = vrot.slane %v1664_v13, 2  ;;  %v1710_v50 = vrot.slane %v1658_v39, 2  ;;  %v1711_v53 = vrot.slane %v1663_v36, 2  ;;  %v1571_v13 = vpop.permute.xlu2 %1570 }
 0x34f   : > { %v3697_v42 = vrot.slane %v3366_v29, 2  ;;  %v3380_v34 = vmul.f32 %v3350_v55, %v2386_v35  ;;  %v1666_v20 = vmul.f32 %v3316_v59, %v3731_v33  ;;  %v1421_v35 = vadd.f32 %v1383_v6, %v3117_v58 }
 0x350   : > { %v1715_v24 = vsel %vm1359_vm5, %v1713_v54, %v1714_v43  ;;  %v1712_v39 = vsel %vm1359_vm5, %v1710_v50, %v1711_v53  ;;  %v1380_v62 = vrot.slane %v3370_v30, 2  ;;  %v3411_v6 = vmul.f32 %v3277_v4, %v2419_v0 }
 0x351   : > { %1756 = vrot.lane.b32.xlu0 %v1715_v24, %s2099_s28  ;;  %v1727_v36 = vsel %vm1359_vm5, %v1714_v43, %v3697_v42  ;;  %1754 = vrot.lane.b32.xlu2 %v1712_v39, %s2099_s28  ;;  %v1417_v24 = vadd.f32 %v1375_v3, %v3100_v56  ;;  %v1724_v39 = vrot.slane %v3380_v34, 2  ;;  %v1720_v58 = vrot.slane %v1666_v20, 2 }
 0x352   : > { %1766 = vrot.lane.b32.xlu1 %v1727_v36, %s2099_s28  ;;  %v1569_v10 = vpop.permute.xlu1 %1568  ;;  %v3395_v54 = vpop.permute.xlu0 %1560  ;;  %v1719_v36 = vrot.slane %v1661_v23, 2  ;;  %v1381_v56 = vsel %vm1359_vm5, %v1372_v18, %v1380_v62  ;;  %v1670_v18 = vmul.f32 %v3322_v22, %v2471_v2  ;;  %v1662_v23 = vmul.f32 %v3294_v14, %v2213_v40 }
 0x353   : > { %v1595_v50 = vsel %vm574_vm2, %v1569_v10, %v1571_v13  ;;  %v1591_v43 = vsel %vm574_vm2, %v1559_v5, %v3395_v54  ;;  %v3415_v5 = vmul.f32 %v3277_v4, %v2445_v1  ;;  %v1725_v3 = vsel %vm1359_vm5, %v1711_v53, %v1724_v39 }
 0x354   : > { %v3401_v42 = vadd.f32 %v1595_v50, %v1421_v35  ;;  %v3403_v33 = vadd.f32 %v1591_v43, %v1417_v24  ;;  %v3420_v35 = vmul.f32 %v3316_v59, %v3732_v31  ;;  %v1721_v34 = vsel %vm1359_vm5, %v1719_v36, %v1720_v58 }
 0x355   : > { %v1667_v1 = vmul.f32 %v3294_v14, %v2277_v21  ;;  %v1420_v31 = vadd.f32 %v1381_v56, %v3104_v44  ;;  %v1384_v24 = vrot.slane %v3411_v6, 2  ;;  %v1376_v40 = vrot.slane %v3415_v5, 2 }
 0x356   : > { %v1730_v43 = vrot.slane %v3420_v35, 2  ;;  %v1728_v36 = vrot.slane %v1670_v18, 2  ;;  %v1708_v21 = vrot.slane %v1662_v23, 2  ;;  %v3750_v56 = vrot.slane %v3331_v45, 2 }
 0x357   : > { %v1385_v44 = vsel %vm1359_vm5, %v1376_v40, %v1384_v24  ;;  %v1475_v18 = vmul.f32 %v3140_v57, %v2816_v26  ;;  %v1675_v23 = vmul.f32 %v3322_v22, %v2467_v47 }
 0x358   : > { %v1729_v35 = vsel %vm1359_vm5, %v3750_v56, %v1728_v36  ;;  %v3751_v56 = vrot.slane %v3217_v15, 2 }
 0x359   : > { %1764 = vrot.lane.b32.xlu0 %v1725_v3, %s2099_s28  ;;  %1760 = vrot.lane.b32.xlu2 %v1721_v34, %s2099_s28  ;;  %v1722_v3 = vrot.slane %v1667_v1, 2 }
 0x35a   : > { %1582 = vrot.lane.b32.xlu1 %v3191_v11, %s2098_s17  ;;  %v1567_v53 = vpop.permute.xlu0 %1566  ;;  %v1731_v11 = vsel %vm1359_vm5, %v1720_v58, %v1730_v43 }
 0x35b   : > { %v1594_v20 = vsel %vm574_vm2, %v1567_v53, %v1569_v10  ;;  %v1657_v10 = vmul.f32 %v3294_v14, %v2215_v41  ;;  %v1723_v34 = vsel %vm1359_vm5, %v1708_v21, %v1722_v3  ;;  %v1422_v41 = vadd.f32 %v1385_v44, %v3120_v60 }
 0x35c   : > { %v3436_v50 = vadd.f32 %v1594_v20, %v1420_v31  ;;  %v1544_v53 = vrot.slane %v1475_v18, 2  ;;  %v1738_v20 = vrot.slane %v1675_v23, 2  ;;  %v1676_v18 = vmul.f32 %v3316_v59, %v3718_v51 }
 0x35d   : > { %v1707_v31 = vrot.slane %v1657_v10, 2  ;;  %v1678_v10 = vmul.f32 %v3350_v55, %v2794_v52  ;;  %v1681_v23 = vmul.f32 %v3316_v59, %v2816_v26  ;;  %v1679_v26 = vmul.f32 %v3353_v63, %v2796_v61 }
 0x35e   : > { %v1545_v60 = vsel %vm1359_vm5, %v3751_v56, %v1544_v53  ;;  %v1739_v44 = vsel %vm1359_vm5, %v1728_v36, %v1738_v20  ;;  %v1672_v36 = vmul.f32 %v3294_v14, %v2272_v17  ;;  %v3514_v56 = vpop.permute.xlu1 %1574 }
 0x35f   : > { %v1709_v57 = vsel %vm1359_vm5, %v1707_v31, %v1708_v21  ;;  %v1746_v53 = vrot.slane %v1679_v26, 2 }
 0x361   : > { %1770 = vrot.lane.b32.xlu0 %v1731_v11, %s2099_s28  ;;  %1768 = vrot.lane.b32.xlu2 %v1729_v35, %s2099_s28  ;;  %v1674_v11 = vmul.f32 %v3353_v63, %v2419_v0  ;;  %v1744_v35 = vrot.slane %v1678_v10, 2 }
 0x362   : > { %1762 = vrot.lane.b32.xlu1 %v1723_v34, %s2099_s28  ;;  %v3460_v58 = vpop.permute.xlu0 %1572  ;;  %v3752_v34 = vrot.slane %v3366_v29, 2  ;;  %v1732_v29 = vrot.slane %v1672_v36, 2 }
 0x363   : > { %v1596_v45 = vsel %vm574_vm2, %v1571_v13, %v3460_v58  ;;  %v1673_v13 = vmul.f32 %v3350_v55, %v2487_v9  ;;  %v1736_v21 = vrot.slane %v1674_v11, 2  ;;  %v3512_v11 = vpop.permute.xlu2 %1576 }
 0x364   : > { %v3464_v1 = vadd.f32 %v1596_v45, %v1422_v41  ;;  %v1740_v41 = vrot.slane %v1676_v18, 2  ;;  %v1750_v45 = vrot.slane %v1681_v23, 2  ;;  %v1733_v17 = vsel %vm1359_vm5, %v1722_v3, %v1732_v29 }
 0x365   : > { %v1734_v0 = vrot.slane %v1673_v13, 2  ;;  %v1737_v15 = vsel %vm1359_vm5, %v3752_v34, %v1736_v21 }
 0x366   : > { %v1741_v31 = vsel %vm1359_vm5, %v1730_v43, %v1740_v41  ;;  %v1751_v51 = vsel %vm1359_vm5, %v1740_v41, %v1750_v45  ;;  %v1677_v43 = vmul.f32 %v3294_v14, %v2742_v28 }
 0x367   : > { %v1735_v9 = vsel %vm1359_vm5, %v1724_v39, %v1734_v0  ;;  %v1745_v55 = vsel %vm1359_vm5, %v1734_v0, %v1744_v35  ;;  %v1680_v39 = vmul.f32 %v3322_v22, %v2768_v37  ;;  %v1747_v22 = vsel %vm1359_vm5, %v1736_v21, %v1746_v53 }
 0x368   : > { %v3753_v21 = vrot.slane %v3290_v32, 2  ;;  %v1592_v35 = vsel %vm574_vm2, %v3395_v54, %v3346_v7  ;;  %v1330_v54 = vmul.f32 %v3261_v48, %v2471_v2 }
 0x369   : > { %1752 = vrot.lane.b32.xlu0 %v1709_v57, %s2099_s28  ;;  %1584 = vrot.lane.b32.xlu2 %v1545_v60, %s2098_s17  ;;  %v1748_v59 = vrot.slane %v1680_v39, 2  ;;  %v1742_v57 = vrot.slane %v1677_v43, 2  ;;  %v3518_v60 = vpop.permute.xlu1 %1580  ;;  %s2073_s17 = sshll.u32 %s3765_s19, 6  ;;  %v3565_v43 = vmul.f32 %v3261_v48, %v2467_v47 }
 0x36a   : > { %1778 = vrot.lane.b32.xlu1 %v1739_v44, %s2099_s28  ;;  %v3520_v13 = vpop.permute.xlu0 %1578  ;;  %v1377_v0 = vsel %vm1359_vm5, %v3753_v21, %v1376_v40  ;;  %s3544_s20 = scalar_lea.vmem %s3674_s4, %s2073_s17 }
 0x36b   : > { %v1749_v3 = vsel %vm1359_vm5, %v1738_v20, %v1748_v59  ;;  %v1743_v63 = vsel %vm1359_vm5, %v1732_v29, %v1742_v57  ;;  %v1418_v34 = vadd.f32 %v1377_v0, %v3092_v27  ;;  %v1599_v30 = vsel %vm574_vm2, %v3520_v13, %v3518_v60 }
 0x371   : > { %1776 = vrot.lane.b32.xlu0 %v1737_v15, %s2099_s28  ;;  %1774 = vrot.lane.b32.xlu2 %v1735_v9, %s2099_s28  ;;  %v1624_v9 = vadd.f32 %v1592_v35, %v1418_v34 }
 0x372   : > { %1784 = vrot.lane.b32.xlu1 %v1745_v55, %s2099_s28 }
 0x379   : > { %1772 = vrot.lane.b32.xlu0 %v1733_v17, %s2099_s28  ;;  %1780 = vrot.lane.b32.xlu2 %v1741_v31, %s2099_s28  ;;  %v1378_v17 = vrot.slane %v1330_v54, 2 }
 0x37a   : > { %1790 = vrot.lane.b32.xlu1 %v1751_v51, %s2099_s28 }
 0x381   : > { %1788 = vrot.lane.b32.xlu0 %v1749_v3, %s2099_s28  ;;  %1786 = vrot.lane.b32.xlu2 %v1747_v22, %s2099_s28  ;;  %v3754_v3 = vrot.slane %v3268_v8, 2  ;;  %v1386_v8 = vrot.slane %v3565_v43, 2 }
 0x383   : > { %v1379_v22 = vsel %vm1359_vm5, %v3754_v3, %v1378_v17 }
 0x389   : > { %1782 = vrot.lane.b32.xlu2 %v1743_v63, %s2099_s28 }
 0x3ab   : > { %v3516_v20 = vpop.permute.xlu2 %1754 }
 0x3b3   : > { %v1761_v44 = vpop.permute.xlu2 %1760 }
 0x3bb   : > { %v1759_v14 = vpop.permute.xlu1 %1758  ;;  %v1769_v10 = vpop.permute.xlu2 %1768 }
 0x3bc   : > { %v1795_v15 = vsel %vm727_vm3, %v1759_v14, %v1761_v44  ;;  %v1593_v44 = vsel %vm574_vm2, %v3346_v7, %v3334_v19  ;;  %v1387_v19 = vsel %vm1359_vm5, %v1378_v17, %v1386_v8  ;;  %v3755_v7 = vld [vmem:[#allocation4_spill] sm:$0xff] }
 0x3bd   : > { %v1827_v32 = vadd.f32 %v1795_v15, %v3297_v25 }
 0x3c3   : > { %v1757_v36 = vpop.permute.xlu0 %1756  ;;  %v3534_v23 = vpop.permute.xlu2 %1584 }
 0x3c4   : > { %v1794_v55 = vsel %vm727_vm3, %v1757_v36, %v1759_v14  ;;  %v1767_v18 = vpop.permute.xlu1 %1766  ;;  %v1793_v45 = vsel %vm727_vm3, %v3516_v20, %v1757_v36  ;;  %v1419_v14 = vadd.f32 %v1379_v22, %v3108_v38  ;;  %v1335_v38 = vmul.f32 %v3255_v46, %v2742_v28 }
 0x3c5   : > { %v1826_v5 = vadd.f32 %v1794_v55, %v3314_v16  ;;  %v1798_v40 = vsel %vm727_vm3, %v1767_v18, %v1769_v10  ;;  %v1825_v2 = vadd.f32 %v1793_v45, %v3312_v49  ;;  %v3756_v55 = vld [vmem:[#allocation11_spill] sm:$0xff]  ;;  %v3759_v22 = vrot.slane %v3340_v12, 2 }
 0x3c6   : > { %v1830_v27 = vadd.f32 %v1798_v40, %v1624_v9  ;;  %v1336_v9 = vmul.f32 %v3755_v7, %v2794_v52 }
 0x3c7   : > { %v1841_v29 = vpack.c.bf16 %v1827_v32, %v1826_v5  ;;  %v1894_v41 = vmul.f32 %v1826_v5, %v1826_v5  ;;  %v1893_v57 = vmul.f32 %v1825_v2, %v1825_v2 }
 0x3c8   : > { %v3548_v25 = vadd.f32 %v1830_v27, %v1826_v5  ;;  %v1898_v16 = vmul.f32 %v1830_v27, %v1830_v27  ;;  %v1895_v5 = vmul.f32 %v1827_v32, %v1827_v32  ;;  %v1390_v28 = vrot.slane %v1336_v9, 2 }
 0x3c9   : > { %1849 = vst [vmem:[%s3544_s20 + $0x8] sm:$0xff] %v1841_v29 }
 0x3ca   : > { %v3551_v39 = vadd.f32 %v1898_v16, %v1894_v41  ;;  %v1597_v41 = vsel %vm574_vm2, %v3460_v58, %v3514_v56  ;;  %v3757_v16 = vld [vmem:[#allocation8_spill] sm:$0xff] }
 0x3cb   : > { %v1765_v31 = vpop.permute.xlu0 %1764  ;;  %v3557_v59 = vpop.permute.xlu2 %1774  ;;  %v1423_v17 = vadd.f32 %v1387_v19, %v3757_v16  ;;  %v1337_v19 = vmul.f32 %v3277_v4, %v2796_v61  ;;  %v1338_v4 = vmul.f32 %v3261_v48, %v2768_v37 }
 0x3cc   : > { %v1797_v51 = vsel %vm727_vm3, %v1765_v31, %v1767_v18  ;;  %v3555_v26 = vpop.permute.xlu1 %1582 }
 0x3cd   : > { %v1829_v53 = vadd.f32 %v1797_v51, %v3403_v33  ;;  %v1625_v33 = vadd.f32 %v1593_v44, %v1419_v14  ;;  %v1629_v52 = vadd.f32 %v1597_v41, %v1423_v17  ;;  %v1600_v6 = vsel %vm574_vm2, %v3518_v60, %v3555_v26 }
 0x3cf   : > { %v3567_v63 = vadd.f32 %v1829_v53, %v1825_v2  ;;  %v1897_v49 = vmul.f32 %v1829_v53, %v1829_v53 }
 0x3d1   : > { %v3573_v21 = vadd.f32 %v1897_v49, %v1893_v57  ;;  %v1391_v57 = vsel %vm1359_vm5, %v3759_v22, %v1390_v28 }
 0x3d3   : > { %v1771_v0 = vpop.permute.xlu0 %1770  ;;  %v1781_v34 = vpop.permute.xlu2 %1780 }
 0x3d4   : > { %v1799_v47 = vsel %vm727_vm3, %v1769_v10, %v1771_v0  ;;  %v1763_v35 = vpop.permute.xlu1 %1762 }
 0x3d5   : > { %v1831_v15 = vadd.f32 %v1799_v47, %v1625_v33  ;;  %v1796_v36 = vsel %vm727_vm3, %v1763_v35, %v1765_v31  ;;  %v1388_v31 = vrot.slane %v1335_v38, 2  ;;  %v1598_v35 = vsel %vm574_vm2, %v3512_v11, %v3520_v13 }
 0x3d6   : > { %v1828_v18 = vadd.f32 %v1796_v36, %v3756_v55 }
 0x3d7   : > { %v1843_v10 = vpack.c.bf16 %v1831_v15, %v1830_v27  ;;  %v1883_v40 = vadd.f32 %v1831_v15, %v1827_v32  ;;  %v1899_v54 = vmul.f32 %v1831_v15, %v1831_v15  ;;  %v1389_v56 = vsel %vm1359_vm5, %v1380_v62, %v1388_v31  ;;  %v3760_v62 = vld [vmem:[#allocation12_spill] sm:$0xff]  ;;  %v3761_v15 = vld [vmem:[#allocation3_spill] sm:$0xff] }
 0x3d8   : > { %v1842_v29 = vpack.c.bf16 %v1829_v53, %v1828_v18  ;;  %v3758_v53 = vld [vmem:[#allocation5_spill] sm:$0xff]  ;;  %v1896_v44 = vmul.f32 %v1828_v18, %v1828_v18  ;;  %v1425_v36 = vadd.f32 %v1391_v57, %v3761_v15 }
 0x3d9   : > { %1851 = vst [vmem:[%s3544_s20 + $0x18] sm:$0xff] %v1843_v10  ;;  %v1935_v45 = vadd.f32 %v1899_v54, %v1895_v5 }
 0x3da   : > { %1850 = vst [vmem:[%s3544_s20 + $0x10] sm:$0xff] %v1842_v29  ;;  %v1631_v9 = vadd.f32 %v1599_v30, %v1425_v36 }
 0x3db   : > { %v1753_v46 = vpop.permute.xlu0 %1752  ;;  %v3594_v27 = vpop.permute.xlu2 %1786 }
 0x3dc   : > { %v1792_v51 = vsel %vm727_vm3, %v1753_v46, %v3516_v20  ;;  %v1779_v32 = vpop.permute.xlu1 %1778 }
 0x3dd   : > { %v1824_v3 = vadd.f32 %v1792_v51, %v3758_v53  ;;  %v1803_v58 = vsel %vm727_vm3, %v1779_v32, %v1781_v34  ;;  %v1424_v34 = vadd.f32 %v1389_v56, %v3760_v62  ;;  %v1394_v51 = vrot.slane %v1338_v4, 2 }
 0x3de   : > { %v1835_v49 = vadd.f32 %v1803_v58, %v1629_v52 }
 0x3df   : > { %v1840_v14 = vpack.c.bf16 %v1825_v2, %v1824_v3  ;;  %v1856_v20 = vadd.f32 %v1828_v18, %v1824_v3  ;;  %v1892_v33 = vmul.f32 %v1824_v3, %v1824_v3  ;;  %v1630_v7 = vadd.f32 %v1598_v35, %v1424_v34 }
 0x3e0   : > { %v3604_v0 = vadd.f32 %v1883_v40, %v1835_v49  ;;  %v1903_v47 = vmul.f32 %v1835_v49, %v1835_v49 }
 0x3e1   : > { %1848 = vst [vmem:[%s3544_s20] sm:$0xff] %v1840_v14  ;;  %v1908_v12 = vadd.f32 %v1896_v44, %v1892_v33  ;;  %v3762_v44 = vld [vmem:[#allocation14_spill] sm:$0xff] }
 0x3e2   : > { %v3615_v2 = vadd.f32 %v1935_v45, %v1903_v47 }
 0x3e3   : > { %v1777_v38 = vpop.permute.xlu0 %1776  ;;  %v1783_v18 = vpop.permute.xlu2 %1782 }
 0x3e4   : > { %v1801_v11 = vsel %vm727_vm3, %v3557_v59, %v1777_v38  ;;  %v1802_v55 = vsel %vm727_vm3, %v1777_v38, %v1779_v32  ;;  %v1785_v13 = vpop.permute.xlu1 %1784 }
 0x3e5   : > { %v1833_v5 = vadd.f32 %v1801_v11, %v3401_v42  ;;  %v1834_v10 = vadd.f32 %v1802_v55, %v3464_v1  ;;  %v1805_v40 = vsel %vm727_vm3, %v1785_v13, %v3594_v27  ;;  %v1804_v61 = vsel %vm727_vm3, %v1783_v18, %v1785_v13 }
 0x3e6   : > { %v1837_v54 = vadd.f32 %v1805_v40, %v1631_v9  ;;  %v1836_v29 = vadd.f32 %v1804_v61, %v1630_v7  ;;  %v1392_v1 = vrot.slane %v1337_v19, 2 }
 0x3e7   : > { %v1845_v41 = vpack.c.bf16 %v1835_v49, %v1834_v10  ;;  %v1866_v45 = vadd.f32 %v3567_v63, %v1833_v5  ;;  %v1875_v16 = vadd.f32 %v3548_v25, %v1834_v10  ;;  %v1901_v17 = vmul.f32 %v1833_v5, %v1833_v5 }
 0x3e8   : > { %v1902_v42 = vmul.f32 %v1834_v10, %v1834_v10  ;;  %v1846_v31 = vpack.c.bf16 %v1837_v54, %v1836_v29  ;;  %v1905_v52 = vmul.f32 %v1837_v54, %v1837_v54  ;;  %v1393_v25 = vsel %vm1359_vm5, %v1384_v24, %v1392_v1 }
 0x3e9   : > { %1853 = vst [vmem:[%s3544_s20 + $0x28] sm:$0xff] %v1845_v41  ;;  %v1918_v28 = vadd.f32 %v3573_v21, %v1901_v17  ;;  %v1867_v46 = vadd.f32 %v1866_v45, %v1837_v54  ;;  %v1426_v14 = vadd.f32 %v1393_v25, %v3762_v44  ;;  %v1601_v24 = vsel %vm574_vm2, %v3555_v26, %v3534_v23 }
 0x3ea   : > { %v1927_v37 = vadd.f32 %v3551_v39, %v1902_v42  ;;  %1854 = vst [vmem:[%s3544_s20 + $0x30] sm:$0xff] %v1846_v31  ;;  %v1395_v39 = vsel %vm1359_vm5, %v1386_v8, %v1394_v51  ;;  %v3763_v8 = vld [vmem:[#allocation13_spill] sm:$0xff]  ;;  %v1904_v35 = vmul.f32 %v1836_v29, %v1836_v29 }
 0x3eb   : > { %v1868_v48 = vrot.slane %v1867_v46, 4  ;;  %v1919_v32 = vadd.f32 %v1918_v28, %v1905_v52  ;;  %v1773_v53 = vpop.permute.xlu0 %1772  ;;  %v1427_v47 = vadd.f32 %v1395_v39, %v3763_v8 }
 0x3ec   : > { %v1800_v63 = vsel %vm727_vm3, %v1773_v53, %v3557_v59  ;;  %v1791_v36 = vpop.permute.xlu1 %1790 }
 0x3ed   : > { %v1869_v3 = vadd.f32 %v1868_v48, %v1867_v46  ;;  %v1920_v58 = vrot.slane %v1919_v32, 4  ;;  %v1832_v21 = vadd.f32 %v1800_v63, %v3436_v50  ;;  %v1633_v60 = vadd.f32 %v1601_v24, %v1427_v47 }
 0x3ef   : > { %v1870_v56 = vrot.slane %v1869_v3, 2  ;;  %v1921_v22 = vadd.f32 %v1920_v58, %v1919_v32  ;;  %v1844_v57 = vpack.c.bf16 %v1833_v5, %v1832_v21  ;;  %v1857_v49 = vadd.f32 %v1856_v20, %v1832_v21 }
 0x3f0   : > { %v1900_v59 = vmul.f32 %v1832_v21, %v1832_v21  ;;  %v1632_v20 = vadd.f32 %v1600_v6, %v1426_v14 }
 0x3f1   : > { %v1871_v50 = vadd.f32 %v1870_v56, %v1869_v3  ;;  %v1922_v33 = vrot.slane %v1921_v22, 2  ;;  %1852 = vst [vmem:[%s3544_s20 + $0x20] sm:$0xff] %v1844_v57  ;;  %v1858_v43 = vadd.f32 %v1857_v49, %v1836_v29 }
 0x3f2   : > { %v1909_v30 = vadd.f32 %v1908_v12, %v1900_v59 }
 0x3f3   : > { %v1872_v62 = vrot.slane %v1871_v50, 1  ;;  %v1923_v34 = vadd.f32 %v1922_v33, %v1921_v22  ;;  %v1859_v15 = vrot.slane %v1858_v43, 4  ;;  %v1789_v19 = vpop.permute.xlu0 %1788 }
 0x3f4   : > { %v1910_v38 = vadd.f32 %v1909_v30, %v1904_v35  ;;  %v1806_v7 = vsel %vm727_vm3, %v3594_v27, %v1789_v19  ;;  %v1807_v23 = vsel %vm727_vm3, %v1789_v19, %v1791_v36 }
 0x3f5   : > { %v1924_v26 = vrot.slane %v1923_v34, 1  ;;  %v1860_v9 = vadd.f32 %v1859_v15, %v1858_v43  ;;  %v1838_v11 = vadd.f32 %v1806_v7, %v1632_v20  ;;  %v1873_v55 = vadd.f32 %v1872_v62, %v1871_v50 }
 0x3f6   : > { %v1911_v12 = vrot.slane %v1910_v38, 4  ;;  %v1839_v13 = vadd.f32 %v1807_v23, %v1633_v60 }
 0x3f7   : > { %v1925_v18 = vadd.f32 %v1924_v26, %v1923_v34  ;;  %v1861_v5 = vrot.slane %v1860_v9, 2  ;;  %v1876_v10 = vadd.f32 %v1875_v16, %v1838_v11  ;;  %v1906_v40 = vmul.f32 %v1838_v11, %v1838_v11 }
 0x3f8   : > { %v1912_v61 = vadd.f32 %v1911_v12, %v1910_v38  ;;  %v1847_v4 = vpack.c.bf16 %v1839_v13, %v1838_v11  ;;  %v1885_v54 = vadd.f32 %v3604_v0, %v1839_v13  ;;  %v1907_v29 = vmul.f32 %v1839_v13, %v1839_v13 }
 0x3f9   : > { %v1946_v27 = vsel %vm1944_vm6, %v1873_v55, %v1925_v18  ;;  %v1862_v41 = vadd.f32 %v1861_v5, %v1860_v9  ;;  %v1877_v45 = vrot.slane %v1876_v10, 4  ;;  %v1928_v17 = vadd.f32 %v1927_v37, %v1906_v40 }
 0x3fa   : > { %v1913_v42 = vrot.slane %v1912_v61, 2  ;;  %1855 = vst [vmem:[%s3544_s20 + $0x38] sm:$0xff] %v1847_v4  ;;  %v1886_v31 = vrot.slane %v1885_v54, 4  ;;  %v1937_v1 = vadd.f32 %v3615_v2, %v1907_v29  ;;  %v1953_v2 = vrot.slane %v1946_v27, 6 }
 0x3fb   : > { %v1878_v28 = vadd.f32 %v1877_v45, %v1876_v10  ;;  %v1929_v46 = vrot.slane %v1928_v17, 4  ;;  %v1863_v52 = vrot.slane %v1862_v41, 1 }
 0x3fc   : > { %v1914_v16 = vadd.f32 %v1913_v42, %v1912_v61  ;;  %v1887_v51 = vadd.f32 %v1886_v31, %v1885_v54  ;;  %v1938_v48 = vrot.slane %v1937_v1, 4 }
 0x3fd   : > { %v1879_v32 = vrot.slane %v1878_v28, 2  ;;  %v1930_v53 = vadd.f32 %v1929_v46, %v1928_v17  ;;  %v1864_v37 = vadd.f32 %v1863_v52, %v1862_v41 }
 0x3fe   : > { %v1915_v0 = vrot.slane %v1914_v16, 1  ;;  %v1888_v63 = vrot.slane %v1887_v51, 2  ;;  %v1939_v25 = vadd.f32 %v1938_v48, %v1937_v1 }
 0x3ff   : > { %v1880_v3 = vadd.f32 %v1879_v32, %v1878_v28  ;;  %v1931_v58 = vrot.slane %v1930_v53, 2 }
 0x400   : > { %v1916_v21 = vadd.f32 %v1915_v0, %v1914_v16  ;;  %v1889_v39 = vadd.f32 %v1888_v63, %v1887_v51  ;;  %v1940_v56 = vrot.slane %v1939_v25, 2 }
 0x401   : > { %v1881_v22 = vrot.slane %v1880_v3, 1  ;;  %v1932_v57 = vadd.f32 %v1931_v58, %v1930_v53 }
 0x402   : > { %v1945_v49 = vsel %vm1944_vm6, %v1864_v37, %v1916_v21  ;;  %v1890_v44 = vrot.slane %v1889_v39, 1  ;;  %v1941_v14 = vadd.f32 %v1940_v56, %v1939_v25 }
 0x403   : > { %v1957_v6 = vsel %vm1956_vm7, %v1945_v49, %v1953_v2  ;;  %v1933_v59 = vrot.slane %v1932_v57, 1  ;;  %v1882_v50 = vadd.f32 %v1881_v22, %v1880_v3 }
 0x404   : > { %v1942_v24 = vrot.slane %v1941_v14, 1  ;;  %v1891_v43 = vadd.f32 %v1890_v44, %v1889_v39 }
 0x405   : > { %v1934_v33 = vadd.f32 %v1933_v59, %v1932_v57 }
 0x406   : > { %v1943_v8 = vadd.f32 %v1942_v24, %v1941_v14 }
 0x407   : > { %v1947_v47 = vsel %vm1944_vm6, %v1882_v50, %v1934_v33 }
 0x408   : > { %v1948_v35 = vsel %vm1944_vm6, %v1891_v43, %v1943_v8  ;;  %v1954_v30 = vrot.slane %v1947_v47, 4 }
 0x409   : > { %v1955_v20 = vrot.slane %v1948_v35, 2 }
 0x40b   : > { %v1959_v62 = vsel %vm1958_vm8, %v1954_v30, %v1955_v20 }
 0x40c   : > { %v1961_v34 = vsel %vm1960_vm9, %v1957_v6, %v1959_v62 }
 0x40d   : > { %1963 = vst [vmem:[%s237_s29] sm:$0xff] %v1961_v34 }
 0x40e PF: > { %s16_s18 = sadd.s32 1, %s2094_s18  }
 0x40f   : > { %p13_p4 = scmp.ge.s32.totalorder %s16_s18, 4  }
 0x411   :  { %15 = sbr.rel (!%p13_p4) target bundleno = 1 (0x1), region = 87 }

// kernel: shuffle_block_forward.7
= control target key start
LH: loop header
LB: loop body
LE: loop exit
PB: predicated region body
PF: predicated region fallthrough
CT: control target
= control target key end

     0   :  { %s537_s0 = inlined_call_operand.vmem [shape: bf16[256,128], index: 0, kind: input, shape index: {}]   ;;  %s538_s1 = inlined_call_operand.vmem [shape: f32[1,128], index: 1, kind: input, shape index: {}]   ;;  %s539_s2 = inlined_call_operand.vmem [shape: f32[1,128], index: 2, kind: input, shape index: {}]   ;;  %s540_s3 = inlined_call_operand.vmem [shape: f32[256,128], index: 3, kind: output, shape index: {}]  }
   0x1   :  { %v219_v0 = vld [vmem:[%s537_s0] sm:$0xff]   ;;  %v282_v5 = vld [vmem:[%s537_s0 + $0x8] sm:$0xff]   ;;  %v283_v8 = vld [vmem:[%s537_s0 + $0x10] sm:$0xff]  }
   0x2   :  { %v325_v1 = vld [vmem:[%s538_s1] ss:$0 sm:$0xff]  ;;  %v220_v2 = vunpack.c.l.bf16 %v219_v0  ;;  %v221_v4 = vunpack.c.h.bf16 %v219_v0  ;;  %v224_v6 = vunpack.c.l.bf16 %v282_v5  ;;  %v225_v7 = vunpack.c.h.bf16 %v282_v5  ;;  %v284_v9 = vld [vmem:[%s537_s0 + $0x18] sm:$0xff]   ;;  %v286_v31 = vld [vmem:[%s537_s0 + $0x28] sm:$0xff]  }
   0x3   :  { %v330_v3 = vld [vmem:[%s539_s2] ss:$0 sm:$0xff]  ;;  %v228_v12 = vunpack.c.l.bf16 %v283_v8  ;;  %v229_v13 = vunpack.c.h.bf16 %v283_v8  ;;  %v232_v16 = vunpack.c.l.bf16 %v284_v9  ;;  %v233_v17 = vunpack.c.h.bf16 %v284_v9  ;;  %v287_v36 = vld [vmem:[%s537_s0 + $0x30] sm:$0xff]   ;;  %v288_v41 = vld [vmem:[%s537_s0 + $0x38] sm:$0xff]  }
   0x4   :  { %v82_v10 = vmul.f32 %v325_v1, %v220_v2  ;;  %v83_v11 = vmul.f32 %v325_v1, %v221_v4  ;;  %v84_v14 = vmul.f32 %v325_v1, %v224_v6  ;;  %v85_v15 = vmul.f32 %v325_v1, %v225_v7  ;;  %v285_v26 = vld [vmem:[%s537_s0 + $0x20] sm:$0xff]   ;;  %v290_v5 = vld [vmem:[%s537_s0 + $0x48] sm:$0xff]  }
   0x5   :  { %v86_v20 = vmul.f32 %v325_v1, %v228_v12  ;;  %v87_v21 = vmul.f32 %v325_v1, %v229_v13  ;;  %v88_v24 = vmul.f32 %v325_v1, %v232_v16  ;;  %v89_v25 = vmul.f32 %v325_v1, %v233_v17  ;;  %v289_v62 = vld [vmem:[%s537_s0 + $0x40] sm:$0xff]  }
   0x6   :  { %v118_v18 = vadd.f32 %v330_v3, %v82_v10  ;;  %v119_v19 = vadd.f32 %v330_v3, %v83_v11  ;;  %v120_v22 = vadd.f32 %v330_v3, %v84_v14  ;;  %v121_v23 = vadd.f32 %v330_v3, %v85_v15  ;;  %v291_v10 = vld [vmem:[%s537_s0 + $0x50] sm:$0xff]   ;;  %v292_v15 = vld [vmem:[%s537_s0 + $0x58] sm:$0xff]  }
   0x7   :  { %v122_v29 = vadd.f32 %v330_v3, %v86_v20  ;;  %v123_v30 = vadd.f32 %v330_v3, %v87_v21  ;;  %v124_v34 = vadd.f32 %v330_v3, %v88_v24  ;;  %v125_v35 = vadd.f32 %v330_v3, %v89_v25 }
   0x8   :  { %v150_v27 = vmax.f32 %v118_v18, 0.0  ;;  %v151_v28 = vmax.f32 %v119_v19, 0.0  ;;  %v152_v32 = vmax.f32 %v120_v22, 0.0  ;;  %v153_v33 = vmax.f32 %v121_v23, 0.0 }
   0x9   :  { %v154_v37 = vmax.f32 %v122_v29, 0.0  ;;  %v155_v38 = vmax.f32 %v123_v30, 0.0  ;;  %v236_v39 = vunpack.c.l.bf16 %v285_v26  ;;  %v237_v40 = vunpack.c.h.bf16 %v285_v26 }
   0xa   :  { %182 = vst [vmem:[%s540_s3] sm:$0xff] %v150_v27  ;;  %v156_v42 = vmax.f32 %v124_v34, 0.0  ;;  %v157_v43 = vmax.f32 %v125_v35, 0.0  ;;  %v240_v44 = vunpack.c.l.bf16 %v286_v31  ;;  %v241_v45 = vunpack.c.h.bf16 %v286_v31 }
   0xb   :  { %183 = vst [vmem:[%s540_s3 + $0x8] sm:$0xff] %v151_v28  ;;  %v90_v46 = vmul.f32 %v325_v1, %v236_v39  ;;  %v91_v47 = vmul.f32 %v325_v1, %v237_v40  ;;  %v244_v48 = vunpack.c.l.bf16 %v287_v36  ;;  %v245_v49 = vunpack.c.h.bf16 %v287_v36  ;;  %v293_v36 = vld [vmem:[%s537_s0 + $0x60] sm:$0xff]  }
   0xc   :  { %184 = vst [vmem:[%s540_s3 + $0x10] sm:$0xff] %v152_v32  ;;  %v92_v50 = vmul.f32 %v325_v1, %v240_v44  ;;  %v93_v51 = vmul.f32 %v325_v1, %v241_v45  ;;  %v248_v52 = vunpack.c.l.bf16 %v288_v41  ;;  %v249_v53 = vunpack.c.h.bf16 %v288_v41  ;;  %v294_v41 = vld [vmem:[%s537_s0 + $0x68] sm:$0xff]  }
   0xd   :  { %185 = vst [vmem:[%s540_s3 + $0x18] sm:$0xff] %v153_v33  ;;  %v126_v54 = vadd.f32 %v330_v3, %v90_v46  ;;  %v127_v55 = vadd.f32 %v330_v3, %v91_v47  ;;  %v94_v56 = vmul.f32 %v325_v1, %v244_v48  ;;  %v95_v57 = vmul.f32 %v325_v1, %v245_v49  ;;  %v295_v46 = vld [vmem:[%s537_s0 + $0x70] sm:$0xff]  }
   0xe   :  { %186 = vst [vmem:[%s540_s3 + $0x20] sm:$0xff] %v154_v37  ;;  %v128_v58 = vadd.f32 %v330_v3, %v92_v50  ;;  %v129_v59 = vadd.f32 %v330_v3, %v93_v51  ;;  %v96_v60 = vmul.f32 %v325_v1, %v248_v52  ;;  %v97_v61 = vmul.f32 %v325_v1, %v249_v53  ;;  %v296_v51 = vld [vmem:[%s537_s0 + $0x78] sm:$0xff]  }
   0xf   :  { %187 = vst [vmem:[%s540_s3 + $0x28] sm:$0xff] %v155_v38  ;;  %v158_v63 = vmax.f32 %v126_v54, 0.0  ;;  %v159_v0 = vmax.f32 %v127_v55, 0.0  ;;  %v130_v2 = vadd.f32 %v330_v3, %v94_v56  ;;  %v131_v4 = vadd.f32 %v330_v3, %v95_v57 }
  0x10   :  { %188 = vst [vmem:[%s540_s3 + $0x30] sm:$0xff] %v156_v42  ;;  %v160_v6 = vmax.f32 %v128_v58, 0.0  ;;  %v161_v7 = vmax.f32 %v129_v59, 0.0  ;;  %v132_v8 = vadd.f32 %v330_v3, %v96_v60  ;;  %v133_v9 = vadd.f32 %v330_v3, %v97_v61 }
  0x11   :  { %189 = vst [vmem:[%s540_s3 + $0x38] sm:$0xff] %v157_v43  ;;  %v162_v11 = vmax.f32 %v130_v2, 0.0  ;;  %v163_v12 = vmax.f32 %v131_v4, 0.0  ;;  %v252_v13 = vunpack.c.l.bf16 %v289_v62  ;;  %v253_v14 = vunpack.c.h.bf16 %v289_v62 }
  0x12   :  { %190 = vst [vmem:[%s540_s3 + $0x40] sm:$0xff] %v158_v63  ;;  %v164_v16 = vmax.f32 %v132_v8, 0.0  ;;  %v165_v17 = vmax.f32 %v133_v9, 0.0  ;;  %v256_v18 = vunpack.c.l.bf16 %v290_v5  ;;  %v257_v19 = vunpack.c.h.bf16 %v290_v5 }
  0x13   :  { %191 = vst [vmem:[%s540_s3 + $0x48] sm:$0xff] %v159_v0  ;;  %v98_v20 = vmul.f32 %v325_v1, %v252_v13  ;;  %v99_v21 = vmul.f32 %v325_v1, %v253_v14  ;;  %v260_v22 = vunpack.c.l.bf16 %v291_v10  ;;  %v261_v23 = vunpack.c.h.bf16 %v291_v10 }
  0x14   :  { %192 = vst [vmem:[%s540_s3 + $0x50] sm:$0xff] %v160_v6  ;;  %v100_v24 = vmul.f32 %v325_v1, %v256_v18  ;;  %v101_v25 = vmul.f32 %v325_v1, %v257_v19  ;;  %v264_v26 = vunpack.c.l.bf16 %v292_v15  ;;  %v265_v27 = vunpack.c.h.bf16 %v292_v15 }
  0x15   :  { %193 = vst [vmem:[%s540_s3 + $0x58] sm:$0xff] %v161_v7  ;;  %v134_v28 = vadd.f32 %v330_v3, %v98_v20  ;;  %v135_v29 = vadd.f32 %v330_v3, %v99_v21  ;;  %v102_v30 = vmul.f32 %v325_v1, %v260_v22  ;;  %v103_v31 = vmul.f32 %v325_v1, %v261_v23 }
  0x16   :  { %194 = vst [vmem:[%s540_s3 + $0x60] sm:$0xff] %v162_v11  ;;  %v136_v32 = vadd.f32 %v330_v3, %v100_v24  ;;  %v137_v33 = vadd.f32 %v330_v3, %v101_v25  ;;  %v104_v34 = vmul.f32 %v325_v1, %v264_v26  ;;  %v105_v35 = vmul.f32 %v325_v1, %v265_v27 }
  0x17   :  { %195 = vst [vmem:[%s540_s3 + $0x68] sm:$0xff] %v163_v12  ;;  %v166_v37 = vmax.f32 %v134_v28, 0.0  ;;  %v167_v38 = vmax.f32 %v135_v29, 0.0  ;;  %v138_v39 = vadd.f32 %v330_v3, %v102_v30  ;;  %v139_v40 = vadd.f32 %v330_v3, %v103_v31 }
  0x18   :  { %196 = vst [vmem:[%s540_s3 + $0x70] sm:$0xff] %v164_v16  ;;  %v168_v42 = vmax.f32 %v136_v32, 0.0  ;;  %v169_v43 = vmax.f32 %v137_v33, 0.0  ;;  %v140_v44 = vadd.f32 %v330_v3, %v104_v34  ;;  %v141_v45 = vadd.f32 %v330_v3, %v105_v35 }
  0x19   :  { %197 = vst [vmem:[%s540_s3 + $0x78] sm:$0xff] %v165_v17  ;;  %v170_v47 = vmax.f32 %v138_v39, 0.0  ;;  %v171_v48 = vmax.f32 %v139_v40, 0.0  ;;  %v268_v49 = vunpack.c.l.bf16 %v293_v36  ;;  %v269_v50 = vunpack.c.h.bf16 %v293_v36 }
  0x1a   :  { %198 = vst [vmem:[%s540_s3 + $0x80] sm:$0xff] %v166_v37  ;;  %v172_v52 = vmax.f32 %v140_v44, 0.0  ;;  %v173_v53 = vmax.f32 %v141_v45, 0.0  ;;  %v272_v54 = vunpack.c.l.bf16 %v294_v41  ;;  %v273_v55 = vunpack.c.h.bf16 %v294_v41 }
  0x1b   :  { %199 = vst [vmem:[%s540_s3 + $0x88] sm:$0xff] %v167_v38  ;;  %v106_v56 = vmul.f32 %v325_v1, %v268_v49  ;;  %v107_v57 = vmul.f32 %v325_v1, %v269_v50  ;;  %v276_v58 = vunpack.c.l.bf16 %v295_v46  ;;  %v277_v59 = vunpack.c.h.bf16 %v295_v46 }
  0x1c   :  { %200 = vst [vmem:[%s540_s3 + $0x90] sm:$0xff] %v168_v42  ;;  %v108_v60 = vmul.f32 %v325_v1, %v272_v54  ;;  %v109_v61 = vmul.f32 %v325_v1, %v273_v55  ;;  %v280_v62 = vunpack.c.l.bf16 %v296_v51  ;;  %v281_v63 = vunpack.c.h.bf16 %v296_v51 }
  0x1d   :  { %201 = vst [vmem:[%s540_s3 + $0x98] sm:$0xff] %v169_v43  ;;  %v142_v0 = vadd.f32 %v330_v3, %v106_v56  ;;  %v143_v2 = vadd.f32 %v330_v3, %v107_v57  ;;  %v110_v4 = vmul.f32 %v325_v1, %v276_v58  ;;  %v111_v5 = vmul.f32 %v325_v1, %v277_v59 }
  0x1e   :  { %202 = vst [vmem:[%s540_s3 + $0xa0] sm:$0xff] %v170_v47  ;;  %v144_v6 = vadd.f32 %v330_v3, %v108_v60  ;;  %v145_v7 = vadd.f32 %v330_v3, %v109_v61  ;;  %v112_v8 = vmul.f32 %v325_v1, %v280_v62  ;;  %v113_v9 = vmul.f32 %v325_v1, %v281_v63 }
  0x1f   :  { %203 = vst [vmem:[%s540_s3 + $0xa8] sm:$0xff] %v171_v48  ;;  %v174_v10 = vmax.f32 %v142_v0, 0.0  ;;  %v175_v11 = vmax.f32 %v143_v2, 0.0  ;;  %v146_v12 = vadd.f32 %v330_v3, %v110_v4  ;;  %v147_v13 = vadd.f32 %v330_v3, %v111_v5 }
  0x20   :  { %204 = vst [vmem:[%s540_s3 + $0xb0] sm:$0xff] %v172_v52  ;;  %v176_v14 = vmax.f32 %v144_v6, 0.0  ;;  %v177_v15 = vmax.f32 %v145_v7, 0.0  ;;  %v148_v16 = vadd.f32 %v330_v3, %v112_v8  ;;  %v149_v1 = vadd.f32 %v330_v3, %v113_v9 }
  0x21   :  { %205 = vst [vmem:[%s540_s3 + $0xb8] sm:$0xff] %v173_v53  ;;  %v178_v17 = vmax.f32 %v146_v12, 0.0  ;;  %v179_v18 = vmax.f32 %v147_v13, 0.0 }
  0x22   :  { %206 = vst [vmem:[%s540_s3 + $0xc0] sm:$0xff] %v174_v10  ;;  %v180_v19 = vmax.f32 %v148_v16, 0.0  ;;  %v181_v3 = vmax.f32 %v149_v1, 0.0 }
  0x23   :  { %207 = vst [vmem:[%s540_s3 + $0xc8] sm:$0xff] %v175_v11 }
  0x24   :  { %208 = vst [vmem:[%s540_s3 + $0xd0] sm:$0xff] %v176_v14 }
  0x25   :  { %209 = vst [vmem:[%s540_s3 + $0xd8] sm:$0xff] %v177_v15 }
  0x26   :  { %210 = vst [vmem:[%s540_s3 + $0xe0] sm:$0xff] %v178_v17 }
  0x27   :  { %211 = vst [vmem:[%s540_s3 + $0xe8] sm:$0xff] %v179_v18 }
  0x28   :  { %212 = vst [vmem:[%s540_s3 + $0xf0] sm:$0xff] %v180_v19 }
  0x29   :  { %213 = vst [vmem:[%s540_s3 + $0xf8] sm:$0xff] %v181_v3 }

</bundles_post_ra>
